<compile_context>
chip_gen: v7x
topology: tpu7x:2x2x1
jax: 0.10.0
libtpu: 0.0.40
codegen_flags: <defaults>
</compile_context>

<pallas_src>
import jax
import jax.numpy as jnp
from jax import lax
from jax.experimental import pallas as pl
from jax.experimental.pallas import tpu as pltpu


# ----------------------------------------------------------------------------
# Fused encoder kernel factory.
# Grid = (B,); each grid step processes one image entirely on-chip.
# Kernel refs: x, [wflat, bias, pool_sel] * 5, lin_w_blocks, lin_b, out, slab.
# ----------------------------------------------------------------------------
def _make_encoder_kernel(H0, W0, n_layers, k):
    def kernel(*refs):
        x_ref = refs[0]
        layer_refs = refs[1:1 + 3 * n_layers]
        lwn_ref = refs[1 + 3 * n_layers]          # (Nf, zs, C5)
        lb_ref = refs[2 + 3 * n_layers]           # (zs, 1)
        o_ref = refs[3 + 3 * n_layers]            # (zs, 1)
        slab_ref = refs[4 + 3 * n_layers]         # (9*max_cin, H0*W0) scratch

        x = x_ref[...]                            # (Cin, H*W), lane-dense spatial
        H, W = H0, W0
        for layer in range(n_layers):             # static unroll over the 5 blocks
            wf_ref = layer_refs[3 * layer]        # (Cout, k*k*Cin)
            b_ref = layer_refs[3 * layer + 1]     # (Cout, 1)
            p_ref = layer_refs[3 * layer + 2]     # (H*W, H*W//4) 0/1 pool gather
            Cout, KC = wf_ref.shape
            Cin = KC // (k * k)
            N = H * W

            # ---- boundary masks for 'same' padding (W is a power of two) ----
            lane = lax.broadcasted_iota(jnp.int32, (1, N), 1)
            col = jnp.bitwise_and(lane, W - 1)
            row = jnp.right_shift(lane, W.bit_length() - 1)
            row_ok = [row >= 1, None, row <= H - 2]      # dy = 0, 1, 2
            col_ok = [col >= 1, None, col <= W - 2]      # dx = 0, 1, 2

            # ---- im2col slab: rows [t*Cin,(t+1)*Cin) = tap-(dy,dx) shift of x.
            # Shifts are lane rolls (XLU); out-of-image lanes are zeroed by the
            # masks, so no physical padding buffer is needed. -------------------
            for dy in range(k):
                for dx in range(k):
                    t = dy * k + dx
                    s = (dy - 1) * W + (dx - 1)
                    patch = x if s == 0 else pltpu.roll(x, shift=(-s) % N, axis=1)
                    m = row_ok[dy]
                    if col_ok[dx] is not None:
                        m = col_ok[dx] if m is None else jnp.logical_and(m, col_ok[dx])
                    if m is not None:
                        patch = jnp.where(m, patch, 0.0)
                    slab_ref[pl.ds(t * Cin, Cin), pl.ds(0, N)] = patch

            # ---- one MXU matmul per layer: (Cout, 9*Cin) @ (9*Cin, N) ----------
            slab = slab_ref[pl.ds(0, k * k * Cin), pl.ds(0, N)]
            acc = jnp.dot(wf_ref[...], slab, preferred_element_type=jnp.float32)
            acc = jnp.maximum(acc + b_ref[...], 0.0)       # bias + ReLU, (Cout, N)

            # ---- 2x2 max-pool in registers + one tiny anchor-gather matmul ----
            xv = jnp.maximum(acc, pltpu.roll(acc, shift=N - W, axis=1))
            xh = jnp.maximum(xv, pltpu.roll(xv, shift=N - 1, axis=1))
            x = jnp.dot(xh, p_ref[...], preferred_element_type=jnp.float32)
            H, W = H // 2, W // 2

        # ---- fused final linear.  x is (C5, Hf*Wf); PyTorch's .view(b, fs)
        # channel-major flatten equals the row-major order of x, so the host
        # passes the weight re-blocked as (Hf*Wf, zs, C5). -----------------------
        z = lb_ref[...]                                     # (zs, 1)
        for n in range(H * W):
            z = z + jnp.dot(lwn_ref[n], x[:, n:n + 1],
                            preferred_element_type=jnp.float32)
        o_ref[...] = z

    return kernel


def _pool_select(H, W):
    """0/1 matrix (H*W, (H/2)*(W/2)); column q=(yo,xo) selects lane 2*yo*W + 2*xo."""
    Ho, Wo = H // 2, W // 2
    q = jnp.arange(Ho * Wo)
    anchor = 2 * (q // Wo) * W + 2 * (q % Wo)
    p = jnp.arange(H * W)
    return (p[:, None] == anchor[None, :]).astype(jnp.float32)


# ----------------------------------------------------------------------------
# Wrapper: host-side weight re-blocking + one pallas_call.
# ----------------------------------------------------------------------------
def encoder_pallas(params, x_nchw):
    B, C0, H0, W0 = x_nchw.shape
    conv_w, conv_b = params["conv_w"], params["conv_b"]
    n_layers = len(conv_w)
    k = conv_w[0].shape[0]
    zs = params["lin_w"].shape[1]

    x = x_nchw.reshape(B, C0, H0 * W0)            # NCHW -> (B, C, H*W), free

    inputs = [x]
    in_specs = [pl.BlockSpec((None, C0, H0 * W0), lambda b: (b, 0, 0))]
    H, W = H0, W0
    for w, bvec in zip(conv_w, conv_b):
        cin, cout = w.shape[2], w.shape[3]
        # (k, k, Cin, Cout) -> (Cout, k*k*Cin), tap-major to match the slab rows.
        wf = jnp.transpose(w, (3, 0, 1, 2)).reshape(cout, k * k * cin)
        psel = _pool_select(H, W)
        inputs += [wf, bvec.reshape(cout, 1), psel]
        in_specs += [pl.BlockSpec(wf.shape, lambda b: (0, 0)),
                     pl.BlockSpec((cout, 1), lambda b: (0, 0)),
                     pl.BlockSpec(psel.shape, lambda b: (0, 0))]
        H, W = H // 2, W // 2

    cf = conv_w[-1].shape[3]
    nf = H * W                                     # final spatial positions
    # PyTorch flatten order is (c, y, x); re-block the linear weight so the kernel
    # contracts one spatial position at a time: lwn[n, j, c] = lin_w[c*nf + n, j].
    lwn = jnp.transpose(params["lin_w"].reshape(cf, nf, zs), (1, 2, 0))
    lb = params["lin_b"].reshape(zs, 1)
    inputs += [lwn, lb]
    in_specs += [pl.BlockSpec(lwn.shape, lambda b: (0, 0, 0)),
                 pl.BlockSpec((zs, 1), lambda b: (0, 0))]

    max_cin = max(w.shape[2] for w in conv_w)
    kernel = _make_encoder_kernel(H0, W0, n_layers, k)
    out = pl.pallas_call(
        kernel,
        out_shape=jax.ShapeDtypeStruct((B, zs, 1), jnp.float32),
        grid_spec=pltpu.PrefetchScalarGridSpec(
            num_scalar_prefetch=0,
            grid=(B,),
            in_specs=in_specs,
            out_specs=pl.BlockSpec((None, zs, 1), lambda b: (b, 0, 0)),
            scratch_shapes=[
                pltpu.VMEM((k * k * max_cin, H0 * W0), jnp.float32),  # im2col slab
            ],
        ),
        compiler_params=pltpu.CompilerParams(
            dimension_semantics=("parallel",)),    # one image per core on v7x
    )(*inputs)
    return out.reshape(B, zs)


encoder_forward = jax.jit(encoder_pallas)


# ----------------------------------------------------------------------------
# Pure-JAX reference (matches PyTorch semantics) and parameter init.
# ----------------------------------------------------------------------------
def encoder_reference(params, x_nchw):
    x = jnp.transpose(x_nchw, (0, 2, 3, 1))
    for w, b in zip(params["conv_w"], params["conv_b"]):
        y = lax.conv_general_dilated(x, w, (1, 1), "SAME",
                                     dimension_numbers=("NHWC", "HWIO", "NHWC"),
                                     precision=lax.Precision.HIGHEST)
        y = jnp.maximum(y + b, 0.0)
        B, H, W, C = y.shape
        x = jnp.max(y.reshape(B, H // 2, 2, W // 2, 2, C), axis=(2, 4))
    B = x.shape[0]
    xf = jnp.transpose(x, (0, 3, 1, 2)).reshape(B, -1)   # PyTorch .view(b, fs) order
    return jnp.dot(xf, params["lin_w"],
                   precision=lax.Precision.HIGHEST) + params["lin_b"]


def init_params(key, in_size, channels, zs, k=3):
    c, h, w = in_size
    cs = (c,) + tuple(channels)
    params = {"conv_w": [], "conv_b": []}
    for i in range(5):
        key, k1, k2 = jax.random.split(key, 3)
        params["conv_w"].append(
            0.1 * jax.random.normal(k1, (k, k, cs[i], cs[i + 1]), jnp.float32))
        params["conv_b"].append(
            0.01 * jax.random.normal(k2, (cs[i + 1],), jnp.float32))
    fs = (h // 2 ** 5) * (w // 2 ** 5) * channels[-1]
    key, k1, k2 = jax.random.split(key, 3)
    params["lin_w"] = 0.1 * jax.random.normal(k1, (fs, zs), jnp.float32)
    params["lin_b"] = 0.01 * jax.random.normal(k2, (zs,), jnp.float32)
    return params, fs


if __name__ == "__main__":
    in_size = (3, 32, 32)          # (c, h, w); h, w must be divisible by 2**5
    channels = (4, 8, 8, 16, 16)
    zs = 32
    B = 2

    key = jax.random.PRNGKey(0)
    pkey, xkey = jax.random.split(key)
    params, fs = init_params(pkey, in_size, channels, zs)
    x = jax.random.normal(xkey, (B,) + in_size, jnp.float32)   # NCHW, like PyTorch

    z = encoder_forward(params, x)
    z = jax.block_until_ready(z)
    assert z.shape == (B, zs), z.shape

    z_ref = encoder_reference(params, x)
    assert jnp.allclose(z, z_ref, atol=1e-3, rtol=1e-3), \
        float(jnp.max(jnp.abs(z - z_ref)))

    print("KERNEL_OK")
</pallas_src>

<mosaic_0001>
module attributes {stable_mosaic.version = 11 : i64} {
  func.func @kernel(%arg0: i32, %arg1: memref<1x3x1024xf32, #tpu.memory_space<vmem>>, %arg2: memref<4x27xf32, #tpu.memory_space<vmem>>, %arg3: memref<4x1xf32, #tpu.memory_space<vmem>>, %arg4: memref<1024x256xf32, #tpu.memory_space<vmem>>, %arg5: memref<8x36xf32, #tpu.memory_space<vmem>>, %arg6: memref<8x1xf32, #tpu.memory_space<vmem>>, %arg7: memref<256x64xf32, #tpu.memory_space<vmem>>, %arg8: memref<8x72xf32, #tpu.memory_space<vmem>>, %arg9: memref<8x1xf32, #tpu.memory_space<vmem>>, %arg10: memref<64x16xf32, #tpu.memory_space<vmem>>, %arg11: memref<16x72xf32, #tpu.memory_space<vmem>>, %arg12: memref<16x1xf32, #tpu.memory_space<vmem>>, %arg13: memref<16x4xf32, #tpu.memory_space<vmem>>, %arg14: memref<16x144xf32, #tpu.memory_space<vmem>>, %arg15: memref<16x1xf32, #tpu.memory_space<vmem>>, %arg16: memref<4x1xf32, #tpu.memory_space<vmem>>, %arg17: memref<1x32x16xf32, #tpu.memory_space<vmem>>, %arg18: memref<32x1xf32, #tpu.memory_space<vmem>>, %arg19: memref<1x32x1xf32, #tpu.memory_space<vmem>>, %arg20: memref<144x1024xf32, #tpu.memory_space<vmem>>) attributes {dimension_semantics = [#tpu.dimension_semantics<parallel>], iteration_bounds = array<i64: 2>, scalar_prefetch = 0 : i64, scratch_operands = 1 : i64, tpu.core_type = #tpu.core_type<tc>, window_params = [{transform_indices = @transform_0, window_bounds = array<i64: 1, 3, 1024>}, {pipeline_mode = #tpu.pipeline_mode<synchronous>, transform_indices = @transform_1, window_bounds = array<i64: 4, 27>}, {pipeline_mode = #tpu.pipeline_mode<synchronous>, transform_indices = @transform_2, window_bounds = array<i64: 4, 1>}, {pipeline_mode = #tpu.pipeline_mode<synchronous>, transform_indices = @transform_3, window_bounds = array<i64: 1024, 256>}, {pipeline_mode = #tpu.pipeline_mode<synchronous>, transform_indices = @transform_4, window_bounds = array<i64: 8, 36>}, {pipeline_mode = #tpu.pipeline_mode<synchronous>, transform_indices = @transform_5, window_bounds = array<i64: 8, 1>}, {pipeline_mode = #tpu.pipeline_mode<synchronous>, transform_indices = @transform_6, window_bounds = array<i64: 256, 64>}, {pipeline_mode = #tpu.pipeline_mode<synchronous>, transform_indices = @transform_7, window_bounds = array<i64: 8, 72>}, {pipeline_mode = #tpu.pipeline_mode<synchronous>, transform_indices = @transform_8, window_bounds = array<i64: 8, 1>}, {pipeline_mode = #tpu.pipeline_mode<synchronous>, transform_indices = @transform_9, window_bounds = array<i64: 64, 16>}, {pipeline_mode = #tpu.pipeline_mode<synchronous>, transform_indices = @transform_10, window_bounds = array<i64: 16, 72>}, {pipeline_mode = #tpu.pipeline_mode<synchronous>, transform_indices = @transform_11, window_bounds = array<i64: 16, 1>}, {pipeline_mode = #tpu.pipeline_mode<synchronous>, transform_indices = @transform_12, window_bounds = array<i64: 16, 4>}, {pipeline_mode = #tpu.pipeline_mode<synchronous>, transform_indices = @transform_13, window_bounds = array<i64: 16, 144>}, {pipeline_mode = #tpu.pipeline_mode<synchronous>, transform_indices = @transform_14, window_bounds = array<i64: 16, 1>}, {pipeline_mode = #tpu.pipeline_mode<synchronous>, transform_indices = @transform_15, window_bounds = array<i64: 4, 1>}, {pipeline_mode = #tpu.pipeline_mode<synchronous>, transform_indices = @transform_16, window_bounds = array<i64: 1, 32, 16>}, {pipeline_mode = #tpu.pipeline_mode<synchronous>, transform_indices = @transform_17, window_bounds = array<i64: 32, 1>}, {transform_indices = @transform_18, window_bounds = array<i64: 1, 32, 1>}]} {
    %c0 = arith.constant 0 : index
    %c0_0 = arith.constant 0 : index
    %c0_1 = arith.constant 0 : index
    %0 = vector.load %arg1[%c0, %c0_0, %c0_1] : memref<1x3x1024xf32, #tpu.memory_space<vmem>>, vector<1x3x1024xf32>
    %1 = vector.shape_cast %0 : vector<1x3x1024xf32> to vector<3x1024xf32>
    %2 = tpu.iota {dimensions = array<i32: 1>} : vector<1x1024xi32>
    %c31_i32 = arith.constant 31 : i32
    %3 = vector.broadcast %c31_i32 : i32 to vector<1x1024xi32>
    %4 = arith.andi %2, %3 : vector<1x1024xi32>
    %c5_i32 = arith.constant 5 : i32
    %5 = vector.broadcast %c5_i32 : i32 to vector<1x1024xi32>
    %6 = arith.shrsi %2, %5 : vector<1x1024xi32>
    %c1_i32 = arith.constant 1 : i32
    %7 = vector.broadcast %c1_i32 : i32 to vector<1x1024xi32>
    %8 = arith.cmpi sge, %6, %7 : vector<1x1024xi32>
    %c30_i32 = arith.constant 30 : i32
    %9 = vector.broadcast %c30_i32 : i32 to vector<1x1024xi32>
    %10 = arith.cmpi sle, %6, %9 : vector<1x1024xi32>
    %c1_i32_2 = arith.constant 1 : i32
    %11 = vector.broadcast %c1_i32_2 : i32 to vector<1x1024xi32>
    %12 = arith.cmpi sge, %4, %11 : vector<1x1024xi32>
    %c30_i32_3 = arith.constant 30 : i32
    %13 = vector.broadcast %c30_i32_3 : i32 to vector<1x1024xi32>
    %14 = arith.cmpi sle, %4, %13 : vector<1x1024xi32>
    %c33_i32 = arith.constant 33 : i32
    %15 = tpu.dynamic_rotate %1 by %c33_i32 dim 1 : vector<3x1024xf32>, i32 -> vector<3x1024xf32>
    %16 = arith.andi %8, %12 : vector<1x1024xi1>
    %cst = arith.constant 0.000000e+00 : f32
    %17 = vector.shape_cast %16 : vector<1x1024xi1> to vector<1x1024xi1>
    %18 = vector.broadcast %17 : vector<1x1024xi1> to vector<3x1024xi1>
    %19 = vector.broadcast %cst : f32 to vector<3x1024xf32>
    %20 = arith.select %18, %15, %19 : vector<3x1024xi1>, vector<3x1024xf32>
    %c0_4 = arith.constant 0 : index
    %c0_5 = arith.constant 0 : index
    %21 = vector.load %arg20[%c0_4, %c0_5] : memref<144x1024xf32, #tpu.memory_space<vmem>>, vector<3x1024xf32>
    tpu.vector_store %arg20[%c0_4, %c0_5], %20 {strides = array<i32>} : memref<144x1024xf32, #tpu.memory_space<vmem>>, vector<3x1024xf32>,
    %c32_i32 = arith.constant 32 : i32
    %22 = tpu.dynamic_rotate %1 by %c32_i32 dim 1 : vector<3x1024xf32>, i32 -> vector<3x1024xf32>
    %cst_6 = arith.constant 0.000000e+00 : f32
    %23 = vector.shape_cast %8 : vector<1x1024xi1> to vector<1x1024xi1>
    %24 = vector.broadcast %23 : vector<1x1024xi1> to vector<3x1024xi1>
    %25 = vector.broadcast %cst_6 : f32 to vector<3x1024xf32>
    %26 = arith.select %24, %22, %25 : vector<3x1024xi1>, vector<3x1024xf32>
    %c3 = arith.constant 3 : index
    %c0_7 = arith.constant 0 : index
    %27 = vector.load %arg20[%c3, %c0_7] : memref<144x1024xf32, #tpu.memory_space<vmem>>, vector<3x1024xf32>
    tpu.vector_store %arg20[%c3, %c0_7], %26 {strides = array<i32>} : memref<144x1024xf32, #tpu.memory_space<vmem>>, vector<3x1024xf32>,
    %c31_i32_8 = arith.constant 31 : i32
    %28 = tpu.dynamic_rotate %1 by %c31_i32_8 dim 1 : vector<3x1024xf32>, i32 -> vector<3x1024xf32>
    %29 = arith.andi %8, %14 : vector<1x1024xi1>
    %cst_9 = arith.constant 0.000000e+00 : f32
    %30 = vector.shape_cast %29 : vector<1x1024xi1> to vector<1x1024xi1>
    %31 = vector.broadcast %30 : vector<1x1024xi1> to vector<3x1024xi1>
    %32 = vector.broadcast %cst_9 : f32 to vector<3x1024xf32>
    %33 = arith.select %31, %28, %32 : vector<3x1024xi1>, vector<3x1024xf32>
    %c6 = arith.constant 6 : index
    %c0_10 = arith.constant 0 : index
    %34 = vector.load %arg20[%c6, %c0_10] : memref<144x1024xf32, #tpu.memory_space<vmem>>, vector<3x1024xf32>
    tpu.vector_store %arg20[%c6, %c0_10], %33 {strides = array<i32>} : memref<144x1024xf32, #tpu.memory_space<vmem>>, vector<3x1024xf32>,
    %c1_i32_11 = arith.constant 1 : i32
    %35 = tpu.dynamic_rotate %1 by %c1_i32_11 dim 1 : vector<3x1024xf32>, i32 -> vector<3x1024xf32>
    %cst_12 = arith.constant 0.000000e+00 : f32
    %36 = vector.shape_cast %12 : vector<1x1024xi1> to vector<1x1024xi1>
    %37 = vector.broadcast %36 : vector<1x1024xi1> to vector<3x1024xi1>
    %38 = vector.broadcast %cst_12 : f32 to vector<3x1024xf32>
    %39 = arith.select %37, %35, %38 : vector<3x1024xi1>, vector<3x1024xf32>
    %c9 = arith.constant 9 : index
    %c0_13 = arith.constant 0 : index
    %40 = vector.load %arg20[%c9, %c0_13] : memref<144x1024xf32, #tpu.memory_space<vmem>>, vector<3x1024xf32>
    tpu.vector_store %arg20[%c9, %c0_13], %39 {strides = array<i32>} : memref<144x1024xf32, #tpu.memory_space<vmem>>, vector<3x1024xf32>,
    %c12 = arith.constant 12 : index
    %c0_14 = arith.constant 0 : index
    %41 = vector.load %arg20[%c12, %c0_14] : memref<144x1024xf32, #tpu.memory_space<vmem>>, vector<3x1024xf32>
    tpu.vector_store %arg20[%c12, %c0_14], %1 {strides = array<i32>} : memref<144x1024xf32, #tpu.memory_space<vmem>>, vector<3x1024xf32>,
    %c1023_i32 = arith.constant 1023 : i32
    %42 = tpu.dynamic_rotate %1 by %c1023_i32 dim 1 : vector<3x1024xf32>, i32 -> vector<3x1024xf32>
    %cst_15 = arith.constant 0.000000e+00 : f32
    %43 = vector.shape_cast %14 : vector<1x1024xi1> to vector<1x1024xi1>
    %44 = vector.broadcast %43 : vector<1x1024xi1> to vector<3x1024xi1>
    %45 = vector.broadcast %cst_15 : f32 to vector<3x1024xf32>
    %46 = arith.select %44, %42, %45 : vector<3x1024xi1>, vector<3x1024xf32>
    %c15 = arith.constant 15 : index
    %c0_16 = arith.constant 0 : index
    %47 = vector.load %arg20[%c15, %c0_16] : memref<144x1024xf32, #tpu.memory_space<vmem>>, vector<3x1024xf32>
    tpu.vector_store %arg20[%c15, %c0_16], %46 {strides = array<i32>} : memref<144x1024xf32, #tpu.memory_space<vmem>>, vector<3x1024xf32>,
    %c993_i32 = arith.constant 993 : i32
    %48 = tpu.dynamic_rotate %1 by %c993_i32 dim 1 : vector<3x1024xf32>, i32 -> vector<3x1024xf32>
    %49 = arith.andi %10, %12 : vector<1x1024xi1>
    %cst_17 = arith.constant 0.000000e+00 : f32
    %50 = vector.shape_cast %49 : vector<1x1024xi1> to vector<1x1024xi1>
    %51 = vector.broadcast %50 : vector<1x1024xi1> to vector<3x1024xi1>
    %52 = vector.broadcast %cst_17 : f32 to vector<3x1024xf32>
    %53 = arith.select %51, %48, %52 : vector<3x1024xi1>, vector<3x1024xf32>
    %c18 = arith.constant 18 : index
    %c0_18 = arith.constant 0 : index
    %54 = vector.load %arg20[%c18, %c0_18] : memref<144x1024xf32, #tpu.memory_space<vmem>>, vector<3x1024xf32>
    tpu.vector_store %arg20[%c18, %c0_18], %53 {strides = array<i32>} : memref<144x1024xf32, #tpu.memory_space<vmem>>, vector<3x1024xf32>,
    %c992_i32 = arith.constant 992 : i32
    %55 = tpu.dynamic_rotate %1 by %c992_i32 dim 1 : vector<3x1024xf32>, i32 -> vector<3x1024xf32>
    %cst_19 = arith.constant 0.000000e+00 : f32
    %56 = vector.shape_cast %10 : vector<1x1024xi1> to vector<1x1024xi1>
    %57 = vector.broadcast %56 : vector<1x1024xi1> to vector<3x1024xi1>
    %58 = vector.broadcast %cst_19 : f32 to vector<3x1024xf32>
    %59 = arith.select %57, %55, %58 : vector<3x1024xi1>, vector<3x1024xf32>
    %c21 = arith.constant 21 : index
    %c0_20 = arith.constant 0 : index
    %60 = vector.load %arg20[%c21, %c0_20] : memref<144x1024xf32, #tpu.memory_space<vmem>>, vector<3x1024xf32>
    tpu.vector_store %arg20[%c21, %c0_20], %59 {strides = array<i32>} : memref<144x1024xf32, #tpu.memory_space<vmem>>, vector<3x1024xf32>,
    %c991_i32 = arith.constant 991 : i32
    %61 = tpu.dynamic_rotate %1 by %c991_i32 dim 1 : vector<3x1024xf32>, i32 -> vector<3x1024xf32>
    %62 = arith.andi %10, %14 : vector<1x1024xi1>
    %cst_21 = arith.constant 0.000000e+00 : f32
    %63 = vector.shape_cast %62 : vector<1x1024xi1> to vector<1x1024xi1>
    %64 = vector.broadcast %63 : vector<1x1024xi1> to vector<3x1024xi1>
    %65 = vector.broadcast %cst_21 : f32 to vector<3x1024xf32>
    %66 = arith.select %64, %61, %65 : vector<3x1024xi1>, vector<3x1024xf32>
    %c24 = arith.constant 24 : index
    %c0_22 = arith.constant 0 : index
    %67 = vector.load %arg20[%c24, %c0_22] : memref<144x1024xf32, #tpu.memory_space<vmem>>, vector<3x1024xf32>
    tpu.vector_store %arg20[%c24, %c0_22], %66 {strides = array<i32>} : memref<144x1024xf32, #tpu.memory_space<vmem>>, vector<3x1024xf32>,
    %c0_23 = arith.constant 0 : index
    %c0_24 = arith.constant 0 : index
    %68 = vector.load %arg20[%c0_23, %c0_24] : memref<144x1024xf32, #tpu.memory_space<vmem>>, vector<27x1024xf32>
    %c0_25 = arith.constant 0 : index
    %c0_26 = arith.constant 0 : index
    %69 = vector.load %arg2[%c0_25, %c0_26] : memref<4x27xf32, #tpu.memory_space<vmem>>, vector<4x27xf32>
    %cst_27 = arith.constant dense<0.000000e+00> : vector<4x1024xf32>
    %70 = tpu.matmul %69, %68, %cst_27 {dimension_numbers = #tpu.dot_dimension_numbers<[1], [0], [0], [1], [0, 0, 1, 1], [], []>} : vector<4x27xf32>, vector<27x1024xf32>, vector<4x1024xf32> -> vector<4x1024xf32>
    %c0_28 = arith.constant 0 : index
    %c0_29 = arith.constant 0 : index
    %71 = vector.load %arg3[%c0_28, %c0_29] : memref<4x1xf32, #tpu.memory_space<vmem>>, vector<4x1xf32>
    %72 = vector.broadcast %71 : vector<4x1xf32> to vector<4x1024xf32>
    %73 = arith.addf %70, %72 : vector<4x1024xf32>
    %cst_30 = arith.constant 0.000000e+00 : f32
    %74 = vector.broadcast %cst_30 : f32 to vector<4x1024xf32>
    %75 = arith.maximumf %73, %74 : vector<4x1024xf32>
    %c992_i32_31 = arith.constant 992 : i32
    %76 = tpu.dynamic_rotate %75 by %c992_i32_31 dim 1 : vector<4x1024xf32>, i32 -> vector<4x1024xf32>
    %77 = arith.maximumf %75, %76 : vector<4x1024xf32>
    %c1023_i32_32 = arith.constant 1023 : i32
    %78 = tpu.dynamic_rotate %77 by %c1023_i32_32 dim 1 : vector<4x1024xf32>, i32 -> vector<4x1024xf32>
    %79 = arith.maximumf %77, %78 : vector<4x1024xf32>
    %c0_33 = arith.constant 0 : index
    %c0_34 = arith.constant 0 : index
    %80 = vector.load %arg4[%c0_33, %c0_34] : memref<1024x256xf32, #tpu.memory_space<vmem>>, vector<1024x256xf32>
    %cst_35 = arith.constant dense<0.000000e+00> : vector<4x256xf32>
    %81 = tpu.matmul %79, %80, %cst_35 {dimension_numbers = #tpu.dot_dimension_numbers<[1], [0], [0], [1], [0, 0, 1, 1], [], []>} : vector<4x1024xf32>, vector<1024x256xf32>, vector<4x256xf32> -> vector<4x256xf32>
    %82 = tpu.iota {dimensions = array<i32: 1>} : vector<1x256xi32>
    %c15_i32 = arith.constant 15 : i32
    %83 = vector.broadcast %c15_i32 : i32 to vector<1x256xi32>
    %84 = arith.andi %82, %83 : vector<1x256xi32>
    %c4_i32 = arith.constant 4 : i32
    %85 = vector.broadcast %c4_i32 : i32 to vector<1x256xi32>
    %86 = arith.shrsi %82, %85 : vector<1x256xi32>
    %c1_i32_36 = arith.constant 1 : i32
    %87 = vector.broadcast %c1_i32_36 : i32 to vector<1x256xi32>
    %88 = arith.cmpi sge, %86, %87 : vector<1x256xi32>
    %c14_i32 = arith.constant 14 : i32
    %89 = vector.broadcast %c14_i32 : i32 to vector<1x256xi32>
    %90 = arith.cmpi sle, %86, %89 : vector<1x256xi32>
    %c1_i32_37 = arith.constant 1 : i32
    %91 = vector.broadcast %c1_i32_37 : i32 to vector<1x256xi32>
    %92 = arith.cmpi sge, %84, %91 : vector<1x256xi32>
    %c14_i32_38 = arith.constant 14 : i32
    %93 = vector.broadcast %c14_i32_38 : i32 to vector<1x256xi32>
    %94 = arith.cmpi sle, %84, %93 : vector<1x256xi32>
    %c17_i32 = arith.constant 17 : i32
    %95 = tpu.dynamic_rotate %81 by %c17_i32 dim 1 : vector<4x256xf32>, i32 -> vector<4x256xf32>
    %96 = arith.andi %88, %92 : vector<1x256xi1>
    %cst_39 = arith.constant 0.000000e+00 : f32
    %97 = vector.shape_cast %96 : vector<1x256xi1> to vector<1x256xi1>
    %98 = vector.broadcast %97 : vector<1x256xi1> to vector<4x256xi1>
    %99 = vector.broadcast %cst_39 : f32 to vector<4x256xf32>
    %100 = arith.select %98, %95, %99 : vector<4x256xi1>, vector<4x256xf32>
    %c0_40 = arith.constant 0 : index
    %c0_41 = arith.constant 0 : index
    %101 = vector.load %arg20[%c0_40, %c0_41] : memref<144x1024xf32, #tpu.memory_space<vmem>>, vector<4x256xf32>
    tpu.vector_store %arg20[%c0_40, %c0_41], %100 {strides = array<i32>} : memref<144x1024xf32, #tpu.memory_space<vmem>>, vector<4x256xf32>,
    %c16_i32 = arith.constant 16 : i32
    %102 = tpu.dynamic_rotate %81 by %c16_i32 dim 1 : vector<4x256xf32>, i32 -> vector<4x256xf32>
    %cst_42 = arith.constant 0.000000e+00 : f32
    %103 = vector.shape_cast %88 : vector<1x256xi1> to vector<1x256xi1>
    %104 = vector.broadcast %103 : vector<1x256xi1> to vector<4x256xi1>
    %105 = vector.broadcast %cst_42 : f32 to vector<4x256xf32>
    %106 = arith.select %104, %102, %105 : vector<4x256xi1>, vector<4x256xf32>
    %c4 = arith.constant 4 : index
    %c0_43 = arith.constant 0 : index
    %107 = vector.load %arg20[%c4, %c0_43] : memref<144x1024xf32, #tpu.memory_space<vmem>>, vector<4x256xf32>
    tpu.vector_store %arg20[%c4, %c0_43], %106 {strides = array<i32>} : memref<144x1024xf32, #tpu.memory_space<vmem>>, vector<4x256xf32>,
    %c15_i32_44 = arith.constant 15 : i32
    %108 = tpu.dynamic_rotate %81 by %c15_i32_44 dim 1 : vector<4x256xf32>, i32 -> vector<4x256xf32>
    %109 = arith.andi %88, %94 : vector<1x256xi1>
    %cst_45 = arith.constant 0.000000e+00 : f32
    %110 = vector.shape_cast %109 : vector<1x256xi1> to vector<1x256xi1>
    %111 = vector.broadcast %110 : vector<1x256xi1> to vector<4x256xi1>
    %112 = vector.broadcast %cst_45 : f32 to vector<4x256xf32>
    %113 = arith.select %111, %108, %112 : vector<4x256xi1>, vector<4x256xf32>
    %c8 = arith.constant 8 : index
    %c0_46 = arith.constant 0 : index
    %114 = vector.load %arg20[%c8, %c0_46] : memref<144x1024xf32, #tpu.memory_space<vmem>>, vector<4x256xf32>
    tpu.vector_store %arg20[%c8, %c0_46], %113 {strides = array<i32>} : memref<144x1024xf32, #tpu.memory_space<vmem>>, vector<4x256xf32>,
    %c1_i32_47 = arith.constant 1 : i32
    %115 = tpu.dynamic_rotate %81 by %c1_i32_47 dim 1 : vector<4x256xf32>, i32 -> vector<4x256xf32>
    %cst_48 = arith.constant 0.000000e+00 : f32
    %116 = vector.shape_cast %92 : vector<1x256xi1> to vector<1x256xi1>
    %117 = vector.broadcast %116 : vector<1x256xi1> to vector<4x256xi1>
    %118 = vector.broadcast %cst_48 : f32 to vector<4x256xf32>
    %119 = arith.select %117, %115, %118 : vector<4x256xi1>, vector<4x256xf32>
    %c12_49 = arith.constant 12 : index
    %c0_50 = arith.constant 0 : index
    %120 = vector.load %arg20[%c12_49, %c0_50] : memref<144x1024xf32, #tpu.memory_space<vmem>>, vector<4x256xf32>
    tpu.vector_store %arg20[%c12_49, %c0_50], %119 {strides = array<i32>} : memref<144x1024xf32, #tpu.memory_space<vmem>>, vector<4x256xf32>,
    %c16 = arith.constant 16 : index
    %c0_51 = arith.constant 0 : index
    %121 = vector.load %arg20[%c16, %c0_51] : memref<144x1024xf32, #tpu.memory_space<vmem>>, vector<4x256xf32>
    tpu.vector_store %arg20[%c16, %c0_51], %81 {strides = array<i32>} : memref<144x1024xf32, #tpu.memory_space<vmem>>, vector<4x256xf32>,
    %c255_i32 = arith.constant 255 : i32
    %122 = tpu.dynamic_rotate %81 by %c255_i32 dim 1 : vector<4x256xf32>, i32 -> vector<4x256xf32>
    %cst_52 = arith.constant 0.000000e+00 : f32
    %123 = vector.shape_cast %94 : vector<1x256xi1> to vector<1x256xi1>
    %124 = vector.broadcast %123 : vector<1x256xi1> to vector<4x256xi1>
    %125 = vector.broadcast %cst_52 : f32 to vector<4x256xf32>
    %126 = arith.select %124, %122, %125 : vector<4x256xi1>, vector<4x256xf32>
    %c20 = arith.constant 20 : index
    %c0_53 = arith.constant 0 : index
    %127 = vector.load %arg20[%c20, %c0_53] : memref<144x1024xf32, #tpu.memory_space<vmem>>, vector<4x256xf32>
    tpu.vector_store %arg20[%c20, %c0_53], %126 {strides = array<i32>} : memref<144x1024xf32, #tpu.memory_space<vmem>>, vector<4x256xf32>,
    %c241_i32 = arith.constant 241 : i32
    %128 = tpu.dynamic_rotate %81 by %c241_i32 dim 1 : vector<4x256xf32>, i32 -> vector<4x256xf32>
    %129 = arith.andi %90, %92 : vector<1x256xi1>
    %cst_54 = arith.constant 0.000000e+00 : f32
    %130 = vector.shape_cast %129 : vector<1x256xi1> to vector<1x256xi1>
    %131 = vector.broadcast %130 : vector<1x256xi1> to vector<4x256xi1>
    %132 = vector.broadcast %cst_54 : f32 to vector<4x256xf32>
    %133 = arith.select %131, %128, %132 : vector<4x256xi1>, vector<4x256xf32>
    %c24_55 = arith.constant 24 : index
    %c0_56 = arith.constant 0 : index
    %134 = vector.load %arg20[%c24_55, %c0_56] : memref<144x1024xf32, #tpu.memory_space<vmem>>, vector<4x256xf32>
    tpu.vector_store %arg20[%c24_55, %c0_56], %133 {strides = array<i32>} : memref<144x1024xf32, #tpu.memory_space<vmem>>, vector<4x256xf32>,
    %c240_i32 = arith.constant 240 : i32
    %135 = tpu.dynamic_rotate %81 by %c240_i32 dim 1 : vector<4x256xf32>, i32 -> vector<4x256xf32>
    %cst_57 = arith.constant 0.000000e+00 : f32
    %136 = vector.shape_cast %90 : vector<1x256xi1> to vector<1x256xi1>
    %137 = vector.broadcast %136 : vector<1x256xi1> to vector<4x256xi1>
    %138 = vector.broadcast %cst_57 : f32 to vector<4x256xf32>
    %139 = arith.select %137, %135, %138 : vector<4x256xi1>, vector<4x256xf32>
    %c28 = arith.constant 28 : index
    %c0_58 = arith.constant 0 : index
    %140 = vector.load %arg20[%c28, %c0_58] : memref<144x1024xf32, #tpu.memory_space<vmem>>, vector<4x256xf32>
    tpu.vector_store %arg20[%c28, %c0_58], %139 {strides = array<i32>} : memref<144x1024xf32, #tpu.memory_space<vmem>>, vector<4x256xf32>,
    %c239_i32 = arith.constant 239 : i32
    %141 = tpu.dynamic_rotate %81 by %c239_i32 dim 1 : vector<4x256xf32>, i32 -> vector<4x256xf32>
    %142 = arith.andi %90, %94 : vector<1x256xi1>
    %cst_59 = arith.constant 0.000000e+00 : f32
    %143 = vector.shape_cast %142 : vector<1x256xi1> to vector<1x256xi1>
    %144 = vector.broadcast %143 : vector<1x256xi1> to vector<4x256xi1>
    %145 = vector.broadcast %cst_59 : f32 to vector<4x256xf32>
    %146 = arith.select %144, %141, %145 : vector<4x256xi1>, vector<4x256xf32>
    %c32 = arith.constant 32 : index
    %c0_60 = arith.constant 0 : index
    %147 = vector.load %arg20[%c32, %c0_60] : memref<144x1024xf32, #tpu.memory_space<vmem>>, vector<4x256xf32>
    tpu.vector_store %arg20[%c32, %c0_60], %146 {strides = array<i32>} : memref<144x1024xf32, #tpu.memory_space<vmem>>, vector<4x256xf32>,
    %c0_61 = arith.constant 0 : index
    %c0_62 = arith.constant 0 : index
    %148 = vector.load %arg20[%c0_61, %c0_62] : memref<144x1024xf32, #tpu.memory_space<vmem>>, vector<36x256xf32>
    %c0_63 = arith.constant 0 : index
    %c0_64 = arith.constant 0 : index
    %149 = vector.load %arg5[%c0_63, %c0_64] : memref<8x36xf32, #tpu.memory_space<vmem>>, vector<8x36xf32>
    %cst_65 = arith.constant dense<0.000000e+00> : vector<8x256xf32>
    %150 = tpu.matmul %149, %148, %cst_65 {dimension_numbers = #tpu.dot_dimension_numbers<[1], [0], [0], [1], [0, 0, 1, 1], [], []>} : vector<8x36xf32>, vector<36x256xf32>, vector<8x256xf32> -> vector<8x256xf32>
    %c0_66 = arith.constant 0 : index
    %c0_67 = arith.constant 0 : index
    %151 = vector.load %arg6[%c0_66, %c0_67] : memref<8x1xf32, #tpu.memory_space<vmem>>, vector<8x1xf32>
    %152 = vector.broadcast %151 : vector<8x1xf32> to vector<8x256xf32>
    %153 = arith.addf %150, %152 : vector<8x256xf32>
    %cst_68 = arith.constant 0.000000e+00 : f32
    %154 = vector.broadcast %cst_68 : f32 to vector<8x256xf32>
    %155 = arith.maximumf %153, %154 : vector<8x256xf32>
    %c240_i32_69 = arith.constant 240 : i32
    %156 = tpu.dynamic_rotate %155 by %c240_i32_69 dim 1 : vector<8x256xf32>, i32 -> vector<8x256xf32>
    %157 = arith.maximumf %155, %156 : vector<8x256xf32>
    %c255_i32_70 = arith.constant 255 : i32
    %158 = tpu.dynamic_rotate %157 by %c255_i32_70 dim 1 : vector<8x256xf32>, i32 -> vector<8x256xf32>
    %159 = arith.maximumf %157, %158 : vector<8x256xf32>
    %c0_71 = arith.constant 0 : index
    %c0_72 = arith.constant 0 : index
    %160 = vector.load %arg7[%c0_71, %c0_72] : memref<256x64xf32, #tpu.memory_space<vmem>>, vector<256x64xf32>
    %cst_73 = arith.constant dense<0.000000e+00> : vector<8x64xf32>
    %161 = tpu.matmul %159, %160, %cst_73 {dimension_numbers = #tpu.dot_dimension_numbers<[1], [0], [0], [1], [0, 0, 1, 1], [], []>} : vector<8x256xf32>, vector<256x64xf32>, vector<8x64xf32> -> vector<8x64xf32>
    %162 = tpu.iota {dimensions = array<i32: 1>} : vector<1x64xi32>
    %c7_i32 = arith.constant 7 : i32
    %163 = vector.broadcast %c7_i32 : i32 to vector<1x64xi32>
    %164 = arith.andi %162, %163 : vector<1x64xi32>
    %c3_i32 = arith.constant 3 : i32
    %165 = vector.broadcast %c3_i32 : i32 to vector<1x64xi32>
    %166 = arith.shrsi %162, %165 : vector<1x64xi32>
    %c1_i32_74 = arith.constant 1 : i32
    %167 = vector.broadcast %c1_i32_74 : i32 to vector<1x64xi32>
    %168 = arith.cmpi sge, %166, %167 : vector<1x64xi32>
    %c6_i32 = arith.constant 6 : i32
    %169 = vector.broadcast %c6_i32 : i32 to vector<1x64xi32>
    %170 = arith.cmpi sle, %166, %169 : vector<1x64xi32>
    %c1_i32_75 = arith.constant 1 : i32
    %171 = vector.broadcast %c1_i32_75 : i32 to vector<1x64xi32>
    %172 = arith.cmpi sge, %164, %171 : vector<1x64xi32>
    %c6_i32_76 = arith.constant 6 : i32
    %173 = vector.broadcast %c6_i32_76 : i32 to vector<1x64xi32>
    %174 = arith.cmpi sle, %164, %173 : vector<1x64xi32>
    %c9_i32 = arith.constant 9 : i32
    %175 = tpu.dynamic_rotate %161 by %c9_i32 dim 1 : vector<8x64xf32>, i32 -> vector<8x64xf32>
    %176 = arith.andi %168, %172 : vector<1x64xi1>
    %cst_77 = arith.constant 0.000000e+00 : f32
    %177 = vector.shape_cast %176 : vector<1x64xi1> to vector<1x64xi1>
    %178 = vector.broadcast %177 : vector<1x64xi1> to vector<8x64xi1>
    %179 = vector.broadcast %cst_77 : f32 to vector<8x64xf32>
    %180 = arith.select %178, %175, %179 : vector<8x64xi1>, vector<8x64xf32>
    %c0_78 = arith.constant 0 : index
    %c0_79 = arith.constant 0 : index
    %181 = vector.load %arg20[%c0_78, %c0_79] : memref<144x1024xf32, #tpu.memory_space<vmem>>, vector<8x64xf32>
    tpu.vector_store %arg20[%c0_78, %c0_79], %180 {strides = array<i32>} : memref<144x1024xf32, #tpu.memory_space<vmem>>, vector<8x64xf32>,
    %c8_i32 = arith.constant 8 : i32
    %182 = tpu.dynamic_rotate %161 by %c8_i32 dim 1 : vector<8x64xf32>, i32 -> vector<8x64xf32>
    %cst_80 = arith.constant 0.000000e+00 : f32
    %183 = vector.shape_cast %168 : vector<1x64xi1> to vector<1x64xi1>
    %184 = vector.broadcast %183 : vector<1x64xi1> to vector<8x64xi1>
    %185 = vector.broadcast %cst_80 : f32 to vector<8x64xf32>
    %186 = arith.select %184, %182, %185 : vector<8x64xi1>, vector<8x64xf32>
    %c8_81 = arith.constant 8 : index
    %c0_82 = arith.constant 0 : index
    %187 = vector.load %arg20[%c8_81, %c0_82] : memref<144x1024xf32, #tpu.memory_space<vmem>>, vector<8x64xf32>
    tpu.vector_store %arg20[%c8_81, %c0_82], %186 {strides = array<i32>} : memref<144x1024xf32, #tpu.memory_space<vmem>>, vector<8x64xf32>,
    %c7_i32_83 = arith.constant 7 : i32
    %188 = tpu.dynamic_rotate %161 by %c7_i32_83 dim 1 : vector<8x64xf32>, i32 -> vector<8x64xf32>
    %189 = arith.andi %168, %174 : vector<1x64xi1>
    %cst_84 = arith.constant 0.000000e+00 : f32
    %190 = vector.shape_cast %189 : vector<1x64xi1> to vector<1x64xi1>
    %191 = vector.broadcast %190 : vector<1x64xi1> to vector<8x64xi1>
    %192 = vector.broadcast %cst_84 : f32 to vector<8x64xf32>
    %193 = arith.select %191, %188, %192 : vector<8x64xi1>, vector<8x64xf32>
    %c16_85 = arith.constant 16 : index
    %c0_86 = arith.constant 0 : index
    %194 = vector.load %arg20[%c16_85, %c0_86] : memref<144x1024xf32, #tpu.memory_space<vmem>>, vector<8x64xf32>
    tpu.vector_store %arg20[%c16_85, %c0_86], %193 {strides = array<i32>} : memref<144x1024xf32, #tpu.memory_space<vmem>>, vector<8x64xf32>,
    %c1_i32_87 = arith.constant 1 : i32
    %195 = tpu.dynamic_rotate %161 by %c1_i32_87 dim 1 : vector<8x64xf32>, i32 -> vector<8x64xf32>
    %cst_88 = arith.constant 0.000000e+00 : f32
    %196 = vector.shape_cast %172 : vector<1x64xi1> to vector<1x64xi1>
    %197 = vector.broadcast %196 : vector<1x64xi1> to vector<8x64xi1>
    %198 = vector.broadcast %cst_88 : f32 to vector<8x64xf32>
    %199 = arith.select %197, %195, %198 : vector<8x64xi1>, vector<8x64xf32>
    %c24_89 = arith.constant 24 : index
    %c0_90 = arith.constant 0 : index
    %200 = vector.load %arg20[%c24_89, %c0_90] : memref<144x1024xf32, #tpu.memory_space<vmem>>, vector<8x64xf32>
    tpu.vector_store %arg20[%c24_89, %c0_90], %199 {strides = array<i32>} : memref<144x1024xf32, #tpu.memory_space<vmem>>, vector<8x64xf32>,
    %c32_91 = arith.constant 32 : index
    %c0_92 = arith.constant 0 : index
    %201 = vector.load %arg20[%c32_91, %c0_92] : memref<144x1024xf32, #tpu.memory_space<vmem>>, vector<8x64xf32>
    tpu.vector_store %arg20[%c32_91, %c0_92], %161 {strides = array<i32>} : memref<144x1024xf32, #tpu.memory_space<vmem>>, vector<8x64xf32>,
    %c63_i32 = arith.constant 63 : i32
    %202 = tpu.dynamic_rotate %161 by %c63_i32 dim 1 : vector<8x64xf32>, i32 -> vector<8x64xf32>
    %cst_93 = arith.constant 0.000000e+00 : f32
    %203 = vector.shape_cast %174 : vector<1x64xi1> to vector<1x64xi1>
    %204 = vector.broadcast %203 : vector<1x64xi1> to vector<8x64xi1>
    %205 = vector.broadcast %cst_93 : f32 to vector<8x64xf32>
    %206 = arith.select %204, %202, %205 : vector<8x64xi1>, vector<8x64xf32>
    %c40 = arith.constant 40 : index
    %c0_94 = arith.constant 0 : index
    %207 = vector.load %arg20[%c40, %c0_94] : memref<144x1024xf32, #tpu.memory_space<vmem>>, vector<8x64xf32>
    tpu.vector_store %arg20[%c40, %c0_94], %206 {strides = array<i32>} : memref<144x1024xf32, #tpu.memory_space<vmem>>, vector<8x64xf32>,
    %c57_i32 = arith.constant 57 : i32
    %208 = tpu.dynamic_rotate %161 by %c57_i32 dim 1 : vector<8x64xf32>, i32 -> vector<8x64xf32>
    %209 = arith.andi %170, %172 : vector<1x64xi1>
    %cst_95 = arith.constant 0.000000e+00 : f32
    %210 = vector.shape_cast %209 : vector<1x64xi1> to vector<1x64xi1>
    %211 = vector.broadcast %210 : vector<1x64xi1> to vector<8x64xi1>
    %212 = vector.broadcast %cst_95 : f32 to vector<8x64xf32>
    %213 = arith.select %211, %208, %212 : vector<8x64xi1>, vector<8x64xf32>
    %c48 = arith.constant 48 : index
    %c0_96 = arith.constant 0 : index
    %214 = vector.load %arg20[%c48, %c0_96] : memref<144x1024xf32, #tpu.memory_space<vmem>>, vector<8x64xf32>
    tpu.vector_store %arg20[%c48, %c0_96], %213 {strides = array<i32>} : memref<144x1024xf32, #tpu.memory_space<vmem>>, vector<8x64xf32>,
    %c56_i32 = arith.constant 56 : i32
    %215 = tpu.dynamic_rotate %161 by %c56_i32 dim 1 : vector<8x64xf32>, i32 -> vector<8x64xf32>
    %cst_97 = arith.constant 0.000000e+00 : f32
    %216 = vector.shape_cast %170 : vector<1x64xi1> to vector<1x64xi1>
    %217 = vector.broadcast %216 : vector<1x64xi1> to vector<8x64xi1>
    %218 = vector.broadcast %cst_97 : f32 to vector<8x64xf32>
    %219 = arith.select %217, %215, %218 : vector<8x64xi1>, vector<8x64xf32>
    %c56 = arith.constant 56 : index
    %c0_98 = arith.constant 0 : index
    %220 = vector.load %arg20[%c56, %c0_98] : memref<144x1024xf32, #tpu.memory_space<vmem>>, vector<8x64xf32>
    tpu.vector_store %arg20[%c56, %c0_98], %219 {strides = array<i32>} : memref<144x1024xf32, #tpu.memory_space<vmem>>, vector<8x64xf32>,
    %c55_i32 = arith.constant 55 : i32
    %221 = tpu.dynamic_rotate %161 by %c55_i32 dim 1 : vector<8x64xf32>, i32 -> vector<8x64xf32>
    %222 = arith.andi %170, %174 : vector<1x64xi1>
    %cst_99 = arith.constant 0.000000e+00 : f32
    %223 = vector.shape_cast %222 : vector<1x64xi1> to vector<1x64xi1>
    %224 = vector.broadcast %223 : vector<1x64xi1> to vector<8x64xi1>
    %225 = vector.broadcast %cst_99 : f32 to vector<8x64xf32>
    %226 = arith.select %224, %221, %225 : vector<8x64xi1>, vector<8x64xf32>
    %c64 = arith.constant 64 : index
    %c0_100 = arith.constant 0 : index
    %227 = vector.load %arg20[%c64, %c0_100] : memref<144x1024xf32, #tpu.memory_space<vmem>>, vector<8x64xf32>
    tpu.vector_store %arg20[%c64, %c0_100], %226 {strides = array<i32>} : memref<144x1024xf32, #tpu.memory_space<vmem>>, vector<8x64xf32>,
    %c0_101 = arith.constant 0 : index
    %c0_102 = arith.constant 0 : index
    %228 = vector.load %arg20[%c0_101, %c0_102] : memref<144x1024xf32, #tpu.memory_space<vmem>>, vector<72x64xf32>
    %c0_103 = arith.constant 0 : index
    %c0_104 = arith.constant 0 : index
    %229 = vector.load %arg8[%c0_103, %c0_104] : memref<8x72xf32, #tpu.memory_space<vmem>>, vector<8x72xf32>
    %cst_105 = arith.constant dense<0.000000e+00> : vector<8x64xf32>
    %230 = tpu.matmul %229, %228, %cst_105 {dimension_numbers = #tpu.dot_dimension_numbers<[1], [0], [0], [1], [0, 0, 1, 1], [], []>} : vector<8x72xf32>, vector<72x64xf32>, vector<8x64xf32> -> vector<8x64xf32>
    %c0_106 = arith.constant 0 : index
    %c0_107 = arith.constant 0 : index
    %231 = vector.load %arg9[%c0_106, %c0_107] : memref<8x1xf32, #tpu.memory_space<vmem>>, vector<8x1xf32>
    %232 = vector.broadcast %231 : vector<8x1xf32> to vector<8x64xf32>
    %233 = arith.addf %230, %232 : vector<8x64xf32>
    %cst_108 = arith.constant 0.000000e+00 : f32
    %234 = vector.broadcast %cst_108 : f32 to vector<8x64xf32>
    %235 = arith.maximumf %233, %234 : vector<8x64xf32>
    %c56_i32_109 = arith.constant 56 : i32
    %236 = tpu.dynamic_rotate %235 by %c56_i32_109 dim 1 : vector<8x64xf32>, i32 -> vector<8x64xf32>
    %237 = arith.maximumf %235, %236 : vector<8x64xf32>
    %c63_i32_110 = arith.constant 63 : i32
    %238 = tpu.dynamic_rotate %237 by %c63_i32_110 dim 1 : vector<8x64xf32>, i32 -> vector<8x64xf32>
    %239 = arith.maximumf %237, %238 : vector<8x64xf32>
    %c0_111 = arith.constant 0 : index
    %c0_112 = arith.constant 0 : index
    %240 = vector.load %arg10[%c0_111, %c0_112] : memref<64x16xf32, #tpu.memory_space<vmem>>, vector<64x16xf32>
    %cst_113 = arith.constant dense<0.000000e+00> : vector<8x16xf32>
    %241 = tpu.matmul %239, %240, %cst_113 {dimension_numbers = #tpu.dot_dimension_numbers<[1], [0], [0], [1], [0, 0, 1, 1], [], []>} : vector<8x64xf32>, vector<64x16xf32>, vector<8x16xf32> -> vector<8x16xf32>
    %242 = tpu.iota {dimensions = array<i32: 1>} : vector<1x16xi32>
    %c3_i32_114 = arith.constant 3 : i32
    %243 = vector.broadcast %c3_i32_114 : i32 to vector<1x16xi32>
    %244 = arith.andi %242, %243 : vector<1x16xi32>
    %c2_i32 = arith.constant 2 : i32
    %245 = vector.broadcast %c2_i32 : i32 to vector<1x16xi32>
    %246 = arith.shrsi %242, %245 : vector<1x16xi32>
    %c1_i32_115 = arith.constant 1 : i32
    %247 = vector.broadcast %c1_i32_115 : i32 to vector<1x16xi32>
    %248 = arith.cmpi sge, %246, %247 : vector<1x16xi32>
    %c2_i32_116 = arith.constant 2 : i32
    %249 = vector.broadcast %c2_i32_116 : i32 to vector<1x16xi32>
    %250 = arith.cmpi sle, %246, %249 : vector<1x16xi32>
    %c1_i32_117 = arith.constant 1 : i32
    %251 = vector.broadcast %c1_i32_117 : i32 to vector<1x16xi32>
    %252 = arith.cmpi sge, %244, %251 : vector<1x16xi32>
    %c2_i32_118 = arith.constant 2 : i32
    %253 = vector.broadcast %c2_i32_118 : i32 to vector<1x16xi32>
    %254 = arith.cmpi sle, %244, %253 : vector<1x16xi32>
    %c5_i32_119 = arith.constant 5 : i32
    %255 = tpu.dynamic_rotate %241 by %c5_i32_119 dim 1 : vector<8x16xf32>, i32 -> vector<8x16xf32>
    %256 = arith.andi %248, %252 : vector<1x16xi1>
    %cst_120 = arith.constant 0.000000e+00 : f32
    %257 = vector.shape_cast %256 : vector<1x16xi1> to vector<1x16xi1>
    %258 = vector.broadcast %257 : vector<1x16xi1> to vector<8x16xi1>
    %259 = vector.broadcast %cst_120 : f32 to vector<8x16xf32>
    %260 = arith.select %258, %255, %259 : vector<8x16xi1>, vector<8x16xf32>
    %c0_121 = arith.constant 0 : index
    %c0_122 = arith.constant 0 : index
    %261 = vector.load %arg20[%c0_121, %c0_122] : memref<144x1024xf32, #tpu.memory_space<vmem>>, vector<8x16xf32>
    tpu.vector_store %arg20[%c0_121, %c0_122], %260 {strides = array<i32>} : memref<144x1024xf32, #tpu.memory_space<vmem>>, vector<8x16xf32>,
    %c4_i32_123 = arith.constant 4 : i32
    %262 = tpu.dynamic_rotate %241 by %c4_i32_123 dim 1 : vector<8x16xf32>, i32 -> vector<8x16xf32>
    %cst_124 = arith.constant 0.000000e+00 : f32
    %263 = vector.shape_cast %248 : vector<1x16xi1> to vector<1x16xi1>
    %264 = vector.broadcast %263 : vector<1x16xi1> to vector<8x16xi1>
    %265 = vector.broadcast %cst_124 : f32 to vector<8x16xf32>
    %266 = arith.select %264, %262, %265 : vector<8x16xi1>, vector<8x16xf32>
    %c8_125 = arith.constant 8 : index
    %c0_126 = arith.constant 0 : index
    %267 = vector.load %arg20[%c8_125, %c0_126] : memref<144x1024xf32, #tpu.memory_space<vmem>>, vector<8x16xf32>
    tpu.vector_store %arg20[%c8_125, %c0_126], %266 {strides = array<i32>} : memref<144x1024xf32, #tpu.memory_space<vmem>>, vector<8x16xf32>,
    %c3_i32_127 = arith.constant 3 : i32
    %268 = tpu.dynamic_rotate %241 by %c3_i32_127 dim 1 : vector<8x16xf32>, i32 -> vector<8x16xf32>
    %269 = arith.andi %248, %254 : vector<1x16xi1>
    %cst_128 = arith.constant 0.000000e+00 : f32
    %270 = vector.shape_cast %269 : vector<1x16xi1> to vector<1x16xi1>
    %271 = vector.broadcast %270 : vector<1x16xi1> to vector<8x16xi1>
    %272 = vector.broadcast %cst_128 : f32 to vector<8x16xf32>
    %273 = arith.select %271, %268, %272 : vector<8x16xi1>, vector<8x16xf32>
    %c16_129 = arith.constant 16 : index
    %c0_130 = arith.constant 0 : index
    %274 = vector.load %arg20[%c16_129, %c0_130] : memref<144x1024xf32, #tpu.memory_space<vmem>>, vector<8x16xf32>
    tpu.vector_store %arg20[%c16_129, %c0_130], %273 {strides = array<i32>} : memref<144x1024xf32, #tpu.memory_space<vmem>>, vector<8x16xf32>,
    %c1_i32_131 = arith.constant 1 : i32
    %275 = tpu.dynamic_rotate %241 by %c1_i32_131 dim 1 : vector<8x16xf32>, i32 -> vector<8x16xf32>
    %cst_132 = arith.constant 0.000000e+00 : f32
    %276 = vector.shape_cast %252 : vector<1x16xi1> to vector<1x16xi1>
    %277 = vector.broadcast %276 : vector<1x16xi1> to vector<8x16xi1>
    %278 = vector.broadcast %cst_132 : f32 to vector<8x16xf32>
    %279 = arith.select %277, %275, %278 : vector<8x16xi1>, vector<8x16xf32>
    %c24_133 = arith.constant 24 : index
    %c0_134 = arith.constant 0 : index
    %280 = vector.load %arg20[%c24_133, %c0_134] : memref<144x1024xf32, #tpu.memory_space<vmem>>, vector<8x16xf32>
    tpu.vector_store %arg20[%c24_133, %c0_134], %279 {strides = array<i32>} : memref<144x1024xf32, #tpu.memory_space<vmem>>, vector<8x16xf32>,
    %c32_135 = arith.constant 32 : index
    %c0_136 = arith.constant 0 : index
    %281 = vector.load %arg20[%c32_135, %c0_136] : memref<144x1024xf32, #tpu.memory_space<vmem>>, vector<8x16xf32>
    tpu.vector_store %arg20[%c32_135, %c0_136], %241 {strides = array<i32>} : memref<144x1024xf32, #tpu.memory_space<vmem>>, vector<8x16xf32>,
    %c15_i32_137 = arith.constant 15 : i32
    %282 = tpu.dynamic_rotate %241 by %c15_i32_137 dim 1 : vector<8x16xf32>, i32 -> vector<8x16xf32>
    %cst_138 = arith.constant 0.000000e+00 : f32
    %283 = vector.shape_cast %254 : vector<1x16xi1> to vector<1x16xi1>
    %284 = vector.broadcast %283 : vector<1x16xi1> to vector<8x16xi1>
    %285 = vector.broadcast %cst_138 : f32 to vector<8x16xf32>
    %286 = arith.select %284, %282, %285 : vector<8x16xi1>, vector<8x16xf32>
    %c40_139 = arith.constant 40 : index
    %c0_140 = arith.constant 0 : index
    %287 = vector.load %arg20[%c40_139, %c0_140] : memref<144x1024xf32, #tpu.memory_space<vmem>>, vector<8x16xf32>
    tpu.vector_store %arg20[%c40_139, %c0_140], %286 {strides = array<i32>} : memref<144x1024xf32, #tpu.memory_space<vmem>>, vector<8x16xf32>,
    %c13_i32 = arith.constant 13 : i32
    %288 = tpu.dynamic_rotate %241 by %c13_i32 dim 1 : vector<8x16xf32>, i32 -> vector<8x16xf32>
    %289 = arith.andi %250, %252 : vector<1x16xi1>
    %cst_141 = arith.constant 0.000000e+00 : f32
    %290 = vector.shape_cast %289 : vector<1x16xi1> to vector<1x16xi1>
    %291 = vector.broadcast %290 : vector<1x16xi1> to vector<8x16xi1>
    %292 = vector.broadcast %cst_141 : f32 to vector<8x16xf32>
    %293 = arith.select %291, %288, %292 : vector<8x16xi1>, vector<8x16xf32>
    %c48_142 = arith.constant 48 : index
    %c0_143 = arith.constant 0 : index
    %294 = vector.load %arg20[%c48_142, %c0_143] : memref<144x1024xf32, #tpu.memory_space<vmem>>, vector<8x16xf32>
    tpu.vector_store %arg20[%c48_142, %c0_143], %293 {strides = array<i32>} : memref<144x1024xf32, #tpu.memory_space<vmem>>, vector<8x16xf32>,
    %c12_i32 = arith.constant 12 : i32
    %295 = tpu.dynamic_rotate %241 by %c12_i32 dim 1 : vector<8x16xf32>, i32 -> vector<8x16xf32>
    %cst_144 = arith.constant 0.000000e+00 : f32
    %296 = vector.shape_cast %250 : vector<1x16xi1> to vector<1x16xi1>
    %297 = vector.broadcast %296 : vector<1x16xi1> to vector<8x16xi1>
    %298 = vector.broadcast %cst_144 : f32 to vector<8x16xf32>
    %299 = arith.select %297, %295, %298 : vector<8x16xi1>, vector<8x16xf32>
    %c56_145 = arith.constant 56 : index
    %c0_146 = arith.constant 0 : index
    %300 = vector.load %arg20[%c56_145, %c0_146] : memref<144x1024xf32, #tpu.memory_space<vmem>>, vector<8x16xf32>
    tpu.vector_store %arg20[%c56_145, %c0_146], %299 {strides = array<i32>} : memref<144x1024xf32, #tpu.memory_space<vmem>>, vector<8x16xf32>,
    %c11_i32 = arith.constant 11 : i32
    %301 = tpu.dynamic_rotate %241 by %c11_i32 dim 1 : vector<8x16xf32>, i32 -> vector<8x16xf32>
    %302 = arith.andi %250, %254 : vector<1x16xi1>
    %cst_147 = arith.constant 0.000000e+00 : f32
    %303 = vector.shape_cast %302 : vector<1x16xi1> to vector<1x16xi1>
    %304 = vector.broadcast %303 : vector<1x16xi1> to vector<8x16xi1>
    %305 = vector.broadcast %cst_147 : f32 to vector<8x16xf32>
    %306 = arith.select %304, %301, %305 : vector<8x16xi1>, vector<8x16xf32>
    %c64_148 = arith.constant 64 : index
    %c0_149 = arith.constant 0 : index
    %307 = vector.load %arg20[%c64_148, %c0_149] : memref<144x1024xf32, #tpu.memory_space<vmem>>, vector<8x16xf32>
    tpu.vector_store %arg20[%c64_148, %c0_149], %306 {strides = array<i32>} : memref<144x1024xf32, #tpu.memory_space<vmem>>, vector<8x16xf32>,
    %c0_150 = arith.constant 0 : index
    %c0_151 = arith.constant 0 : index
    %308 = vector.load %arg20[%c0_150, %c0_151] : memref<144x1024xf32, #tpu.memory_space<vmem>>, vector<72x16xf32>
    %c0_152 = arith.constant 0 : index
    %c0_153 = arith.constant 0 : index
    %309 = vector.load %arg11[%c0_152, %c0_153] : memref<16x72xf32, #tpu.memory_space<vmem>>, vector<16x72xf32>
    %cst_154 = arith.constant dense<0.000000e+00> : vector<16x16xf32>
    %310 = tpu.matmul %309, %308, %cst_154 {dimension_numbers = #tpu.dot_dimension_numbers<[1], [0], [0], [1], [0, 0, 1, 1], [], []>} : vector<16x72xf32>, vector<72x16xf32>, vector<16x16xf32> -> vector<16x16xf32>
    %c0_155 = arith.constant 0 : index
    %c0_156 = arith.constant 0 : index
    %311 = vector.load %arg12[%c0_155, %c0_156] : memref<16x1xf32, #tpu.memory_space<vmem>>, vector<16x1xf32>
    %312 = vector.broadcast %311 : vector<16x1xf32> to vector<16x16xf32>
    %313 = arith.addf %310, %312 : vector<16x16xf32>
    %cst_157 = arith.constant 0.000000e+00 : f32
    %314 = vector.broadcast %cst_157 : f32 to vector<16x16xf32>
    %315 = arith.maximumf %313, %314 : vector<16x16xf32>
    %c12_i32_158 = arith.constant 12 : i32
    %316 = tpu.dynamic_rotate %315 by %c12_i32_158 dim 1 : vector<16x16xf32>, i32 -> vector<16x16xf32>
    %317 = arith.maximumf %315, %316 : vector<16x16xf32>
    %c15_i32_159 = arith.constant 15 : i32
    %318 = tpu.dynamic_rotate %317 by %c15_i32_159 dim 1 : vector<16x16xf32>, i32 -> vector<16x16xf32>
    %319 = arith.maximumf %317, %318 : vector<16x16xf32>
    %c0_160 = arith.constant 0 : index
    %c0_161 = arith.constant 0 : index
    %320 = vector.load %arg13[%c0_160, %c0_161] : memref<16x4xf32, #tpu.memory_space<vmem>>, vector<16x4xf32>
    %cst_162 = arith.constant dense<0.000000e+00> : vector<16x4xf32>
    %321 = tpu.matmul %319, %320, %cst_162 {dimension_numbers = #tpu.dot_dimension_numbers<[1], [0], [0], [1], [0, 0, 1, 1], [], []>} : vector<16x16xf32>, vector<16x4xf32>, vector<16x4xf32> -> vector<16x4xf32>
    %322 = tpu.iota {dimensions = array<i32: 1>} : vector<1x4xi32>
    %c1_i32_163 = arith.constant 1 : i32
    %323 = vector.broadcast %c1_i32_163 : i32 to vector<1x4xi32>
    %324 = arith.andi %322, %323 : vector<1x4xi32>
    %c1_i32_164 = arith.constant 1 : i32
    %325 = vector.broadcast %c1_i32_164 : i32 to vector<1x4xi32>
    %326 = arith.shrsi %322, %325 : vector<1x4xi32>
    %c1_i32_165 = arith.constant 1 : i32
    %327 = vector.broadcast %c1_i32_165 : i32 to vector<1x4xi32>
    %328 = arith.cmpi sge, %326, %327 : vector<1x4xi32>
    %c0_i32 = arith.constant 0 : i32
    %329 = vector.broadcast %c0_i32 : i32 to vector<1x4xi32>
    %330 = arith.cmpi sle, %326, %329 : vector<1x4xi32>
    %c1_i32_166 = arith.constant 1 : i32
    %331 = vector.broadcast %c1_i32_166 : i32 to vector<1x4xi32>
    %332 = arith.cmpi sge, %324, %331 : vector<1x4xi32>
    %c0_i32_167 = arith.constant 0 : i32
    %333 = vector.broadcast %c0_i32_167 : i32 to vector<1x4xi32>
    %334 = arith.cmpi sle, %324, %333 : vector<1x4xi32>
    %c3_i32_168 = arith.constant 3 : i32
    %335 = tpu.dynamic_rotate %321 by %c3_i32_168 dim 1 : vector<16x4xf32>, i32 -> vector<16x4xf32>
    %336 = arith.andi %328, %332 : vector<1x4xi1>
    %cst_169 = arith.constant 0.000000e+00 : f32
    %337 = vector.shape_cast %336 : vector<1x4xi1> to vector<1x4xi1>
    %338 = vector.broadcast %337 : vector<1x4xi1> to vector<16x4xi1>
    %339 = vector.broadcast %cst_169 : f32 to vector<16x4xf32>
    %340 = arith.select %338, %335, %339 : vector<16x4xi1>, vector<16x4xf32>
    %c0_170 = arith.constant 0 : index
    %c0_171 = arith.constant 0 : index
    %341 = vector.load %arg20[%c0_170, %c0_171] : memref<144x1024xf32, #tpu.memory_space<vmem>>, vector<16x4xf32>
    tpu.vector_store %arg20[%c0_170, %c0_171], %340 {strides = array<i32>} : memref<144x1024xf32, #tpu.memory_space<vmem>>, vector<16x4xf32>,
    %c2_i32_172 = arith.constant 2 : i32
    %342 = tpu.dynamic_rotate %321 by %c2_i32_172 dim 1 : vector<16x4xf32>, i32 -> vector<16x4xf32>
    %cst_173 = arith.constant 0.000000e+00 : f32
    %343 = vector.shape_cast %328 : vector<1x4xi1> to vector<1x4xi1>
    %344 = vector.broadcast %343 : vector<1x4xi1> to vector<16x4xi1>
    %345 = vector.broadcast %cst_173 : f32 to vector<16x4xf32>
    %346 = arith.select %344, %342, %345 : vector<16x4xi1>, vector<16x4xf32>
    %c16_174 = arith.constant 16 : index
    %c0_175 = arith.constant 0 : index
    %347 = vector.load %arg20[%c16_174, %c0_175] : memref<144x1024xf32, #tpu.memory_space<vmem>>, vector<16x4xf32>
    tpu.vector_store %arg20[%c16_174, %c0_175], %346 {strides = array<i32>} : memref<144x1024xf32, #tpu.memory_space<vmem>>, vector<16x4xf32>,
    %c1_i32_176 = arith.constant 1 : i32
    %348 = tpu.dynamic_rotate %321 by %c1_i32_176 dim 1 : vector<16x4xf32>, i32 -> vector<16x4xf32>
    %349 = arith.andi %328, %334 : vector<1x4xi1>
    %cst_177 = arith.constant 0.000000e+00 : f32
    %350 = vector.shape_cast %349 : vector<1x4xi1> to vector<1x4xi1>
    %351 = vector.broadcast %350 : vector<1x4xi1> to vector<16x4xi1>
    %352 = vector.broadcast %cst_177 : f32 to vector<16x4xf32>
    %353 = arith.select %351, %348, %352 : vector<16x4xi1>, vector<16x4xf32>
    %c32_178 = arith.constant 32 : index
    %c0_179 = arith.constant 0 : index
    %354 = vector.load %arg20[%c32_178, %c0_179] : memref<144x1024xf32, #tpu.memory_space<vmem>>, vector<16x4xf32>
    tpu.vector_store %arg20[%c32_178, %c0_179], %353 {strides = array<i32>} : memref<144x1024xf32, #tpu.memory_space<vmem>>, vector<16x4xf32>,
    %c1_i32_180 = arith.constant 1 : i32
    %355 = tpu.dynamic_rotate %321 by %c1_i32_180 dim 1 : vector<16x4xf32>, i32 -> vector<16x4xf32>
    %cst_181 = arith.constant 0.000000e+00 : f32
    %356 = vector.shape_cast %332 : vector<1x4xi1> to vector<1x4xi1>
    %357 = vector.broadcast %356 : vector<1x4xi1> to vector<16x4xi1>
    %358 = vector.broadcast %cst_181 : f32 to vector<16x4xf32>
    %359 = arith.select %357, %355, %358 : vector<16x4xi1>, vector<16x4xf32>
    %c48_182 = arith.constant 48 : index
    %c0_183 = arith.constant 0 : index
    %360 = vector.load %arg20[%c48_182, %c0_183] : memref<144x1024xf32, #tpu.memory_space<vmem>>, vector<16x4xf32>
    tpu.vector_store %arg20[%c48_182, %c0_183], %359 {strides = array<i32>} : memref<144x1024xf32, #tpu.memory_space<vmem>>, vector<16x4xf32>,
    %c64_184 = arith.constant 64 : index
    %c0_185 = arith.constant 0 : index
    %361 = vector.load %arg20[%c64_184, %c0_185] : memref<144x1024xf32, #tpu.memory_space<vmem>>, vector<16x4xf32>
    tpu.vector_store %arg20[%c64_184, %c0_185], %321 {strides = array<i32>} : memref<144x1024xf32, #tpu.memory_space<vmem>>, vector<16x4xf32>,
    %c3_i32_186 = arith.constant 3 : i32
    %362 = tpu.dynamic_rotate %321 by %c3_i32_186 dim 1 : vector<16x4xf32>, i32 -> vector<16x4xf32>
    %cst_187 = arith.constant 0.000000e+00 : f32
    %363 = vector.shape_cast %334 : vector<1x4xi1> to vector<1x4xi1>
    %364 = vector.broadcast %363 : vector<1x4xi1> to vector<16x4xi1>
    %365 = vector.broadcast %cst_187 : f32 to vector<16x4xf32>
    %366 = arith.select %364, %362, %365 : vector<16x4xi1>, vector<16x4xf32>
    %c80 = arith.constant 80 : index
    %c0_188 = arith.constant 0 : index
    %367 = vector.load %arg20[%c80, %c0_188] : memref<144x1024xf32, #tpu.memory_space<vmem>>, vector<16x4xf32>
    tpu.vector_store %arg20[%c80, %c0_188], %366 {strides = array<i32>} : memref<144x1024xf32, #tpu.memory_space<vmem>>, vector<16x4xf32>,
    %c3_i32_189 = arith.constant 3 : i32
    %368 = tpu.dynamic_rotate %321 by %c3_i32_189 dim 1 : vector<16x4xf32>, i32 -> vector<16x4xf32>
    %369 = arith.andi %330, %332 : vector<1x4xi1>
    %cst_190 = arith.constant 0.000000e+00 : f32
    %370 = vector.shape_cast %369 : vector<1x4xi1> to vector<1x4xi1>
    %371 = vector.broadcast %370 : vector<1x4xi1> to vector<16x4xi1>
    %372 = vector.broadcast %cst_190 : f32 to vector<16x4xf32>
    %373 = arith.select %371, %368, %372 : vector<16x4xi1>, vector<16x4xf32>
    %c96 = arith.constant 96 : index
    %c0_191 = arith.constant 0 : index
    %374 = vector.load %arg20[%c96, %c0_191] : memref<144x1024xf32, #tpu.memory_space<vmem>>, vector<16x4xf32>
    tpu.vector_store %arg20[%c96, %c0_191], %373 {strides = array<i32>} : memref<144x1024xf32, #tpu.memory_space<vmem>>, vector<16x4xf32>,
    %c2_i32_192 = arith.constant 2 : i32
    %375 = tpu.dynamic_rotate %321 by %c2_i32_192 dim 1 : vector<16x4xf32>, i32 -> vector<16x4xf32>
    %cst_193 = arith.constant 0.000000e+00 : f32
    %376 = vector.shape_cast %330 : vector<1x4xi1> to vector<1x4xi1>
    %377 = vector.broadcast %376 : vector<1x4xi1> to vector<16x4xi1>
    %378 = vector.broadcast %cst_193 : f32 to vector<16x4xf32>
    %379 = arith.select %377, %375, %378 : vector<16x4xi1>, vector<16x4xf32>
    %c112 = arith.constant 112 : index
    %c0_194 = arith.constant 0 : index
    %380 = vector.load %arg20[%c112, %c0_194] : memref<144x1024xf32, #tpu.memory_space<vmem>>, vector<16x4xf32>
    tpu.vector_store %arg20[%c112, %c0_194], %379 {strides = array<i32>} : memref<144x1024xf32, #tpu.memory_space<vmem>>, vector<16x4xf32>,
    %c1_i32_195 = arith.constant 1 : i32
    %381 = tpu.dynamic_rotate %321 by %c1_i32_195 dim 1 : vector<16x4xf32>, i32 -> vector<16x4xf32>
    %382 = arith.andi %330, %334 : vector<1x4xi1>
    %cst_196 = arith.constant 0.000000e+00 : f32
    %383 = vector.shape_cast %382 : vector<1x4xi1> to vector<1x4xi1>
    %384 = vector.broadcast %383 : vector<1x4xi1> to vector<16x4xi1>
    %385 = vector.broadcast %cst_196 : f32 to vector<16x4xf32>
    %386 = arith.select %384, %381, %385 : vector<16x4xi1>, vector<16x4xf32>
    %c128 = arith.constant 128 : index
    %c0_197 = arith.constant 0 : index
    %387 = vector.load %arg20[%c128, %c0_197] : memref<144x1024xf32, #tpu.memory_space<vmem>>, vector<16x4xf32>
    tpu.vector_store %arg20[%c128, %c0_197], %386 {strides = array<i32>} : memref<144x1024xf32, #tpu.memory_space<vmem>>, vector<16x4xf32>,
    %c0_198 = arith.constant 0 : index
    %c0_199 = arith.constant 0 : index
    %388 = vector.load %arg20[%c0_198, %c0_199] : memref<144x1024xf32, #tpu.memory_space<vmem>>, vector<144x4xf32>
    %c0_200 = arith.constant 0 : index
    %c0_201 = arith.constant 0 : index
    %389 = vector.load %arg14[%c0_200, %c0_201] : memref<16x144xf32, #tpu.memory_space<vmem>>, vector<16x144xf32>
    %cst_202 = arith.constant dense<0.000000e+00> : vector<16x4xf32>
    %390 = tpu.matmul %389, %388, %cst_202 {dimension_numbers = #tpu.dot_dimension_numbers<[1], [0], [0], [1], [0, 0, 1, 1], [], []>} : vector<16x144xf32>, vector<144x4xf32>, vector<16x4xf32> -> vector<16x4xf32>
    %c0_203 = arith.constant 0 : index
    %c0_204 = arith.constant 0 : index
    %391 = vector.load %arg15[%c0_203, %c0_204] : memref<16x1xf32, #tpu.memory_space<vmem>>, vector<16x1xf32>
    %392 = vector.broadcast %391 : vector<16x1xf32> to vector<16x4xf32>
    %393 = arith.addf %390, %392 : vector<16x4xf32>
    %cst_205 = arith.constant 0.000000e+00 : f32
    %394 = vector.broadcast %cst_205 : f32 to vector<16x4xf32>
    %395 = arith.maximumf %393, %394 : vector<16x4xf32>
    %c2_i32_206 = arith.constant 2 : i32
    %396 = tpu.dynamic_rotate %395 by %c2_i32_206 dim 1 : vector<16x4xf32>, i32 -> vector<16x4xf32>
    %397 = arith.maximumf %395, %396 : vector<16x4xf32>
    %c3_i32_207 = arith.constant 3 : i32
    %398 = tpu.dynamic_rotate %397 by %c3_i32_207 dim 1 : vector<16x4xf32>, i32 -> vector<16x4xf32>
    %399 = arith.maximumf %397, %398 : vector<16x4xf32>
    %c0_208 = arith.constant 0 : index
    %c0_209 = arith.constant 0 : index
    %400 = vector.load %arg16[%c0_208, %c0_209] : memref<4x1xf32, #tpu.memory_space<vmem>>, vector<4x1xf32>
    %cst_210 = arith.constant dense<0.000000e+00> : vector<16x1xf32>
    %401 = tpu.matmul %399, %400, %cst_210 {dimension_numbers = #tpu.dot_dimension_numbers<[1], [0], [0], [1], [0, 0, 1, 1], [], []>} : vector<16x4xf32>, vector<4x1xf32>, vector<16x1xf32> -> vector<16x1xf32>
    %c0_211 = arith.constant 0 : index
    %c0_212 = arith.constant 0 : index
    %402 = vector.load %arg18[%c0_211, %c0_212] : memref<32x1xf32, #tpu.memory_space<vmem>>, vector<32x1xf32>
    %c0_213 = arith.constant 0 : index
    %c0_214 = arith.constant 0 : index
    %c0_215 = arith.constant 0 : index
    %403 = vector.load %arg17[%c0_213, %c0_214, %c0_215] : memref<1x32x16xf32, #tpu.memory_space<vmem>>, vector<1x32x16xf32>
    %404 = vector.shape_cast %403 : vector<1x32x16xf32> to vector<32x16xf32>
    %cst_216 = arith.constant dense<0.000000e+00> : vector<32x1xf32>
    %405 = tpu.matmul %404, %401, %cst_216 {dimension_numbers = #tpu.dot_dimension_numbers<[1], [0], [0], [1], [0, 0, 1, 1], [], []>} : vector<32x16xf32>, vector<16x1xf32>, vector<32x1xf32> -> vector<32x1xf32>
    %406 = arith.addf %402, %405 : vector<32x1xf32>
    %c0_217 = arith.constant 0 : index
    %c0_218 = arith.constant 0 : index
    %c0_219 = arith.constant 0 : index
    %407 = vector.load %arg19[%c0_217, %c0_218, %c0_219] : memref<1x32x1xf32, #tpu.memory_space<vmem>>, vector<1x32x1xf32>
    %408 = vector.shape_cast %407 : vector<1x32x1xf32> to vector<32x1xf32>
    %409 = vector.shape_cast %406 : vector<32x1xf32> to vector<1x32x1xf32>
    tpu.vector_store %arg19[%c0_217, %c0_218, %c0_219], %409 {strides = array<i32>} : memref<1x32x1xf32, #tpu.memory_space<vmem>>, vector<1x32x1xf32>,
    return
  }
  func.func @transform_0(%arg0: i32) -> (i32, i32, i32) {
    %c0_i32 = arith.constant 0 : i32
    %c0_i32_0 = arith.constant 0 : i32
    %c0_i32_1 = arith.constant 0 : i32
    return %arg0, %c0_i32, %c0_i32_0 : i32, i32, i32
  }
  func.func @transform_1(%arg0: i32) -> (i32, i32) {
    %c0_i32 = arith.constant 0 : i32
    %c0_i32_0 = arith.constant 0 : i32
    %c0_i32_1 = arith.constant 0 : i32
    return %c0_i32, %c0_i32_0 : i32, i32
  }
  func.func @transform_2(%arg0: i32) -> (i32, i32) {
    %c0_i32 = arith.constant 0 : i32
    %c0_i32_0 = arith.constant 0 : i32
    %c0_i32_1 = arith.constant 0 : i32
    return %c0_i32, %c0_i32_0 : i32, i32
  }
  func.func @transform_3(%arg0: i32) -> (i32, i32) {
    %c0_i32 = arith.constant 0 : i32
    %c0_i32_0 = arith.constant 0 : i32
    %c0_i32_1 = arith.constant 0 : i32
    return %c0_i32, %c0_i32_0 : i32, i32
  }
  func.func @transform_4(%arg0: i32) -> (i32, i32) {
    %c0_i32 = arith.constant 0 : i32
    %c0_i32_0 = arith.constant 0 : i32
    %c0_i32_1 = arith.constant 0 : i32
    return %c0_i32, %c0_i32_0 : i32, i32
  }
  func.func @transform_5(%arg0: i32) -> (i32, i32) {
    %c0_i32 = arith.constant 0 : i32
    %c0_i32_0 = arith.constant 0 : i32
    %c0_i32_1 = arith.constant 0 : i32
    return %c0_i32, %c0_i32_0 : i32, i32
  }
  func.func @transform_6(%arg0: i32) -> (i32, i32) {
    %c0_i32 = arith.constant 0 : i32
    %c0_i32_0 = arith.constant 0 : i32
    %c0_i32_1 = arith.constant 0 : i32
    return %c0_i32, %c0_i32_0 : i32, i32
  }
  func.func @transform_7(%arg0: i32) -> (i32, i32) {
    %c0_i32 = arith.constant 0 : i32
    %c0_i32_0 = arith.constant 0 : i32
    %c0_i32_1 = arith.constant 0 : i32
    return %c0_i32, %c0_i32_0 : i32, i32
  }
  func.func @transform_8(%arg0: i32) -> (i32, i32) {
    %c0_i32 = arith.constant 0 : i32
    %c0_i32_0 = arith.constant 0 : i32
    %c0_i32_1 = arith.constant 0 : i32
    return %c0_i32, %c0_i32_0 : i32, i32
  }
  func.func @transform_9(%arg0: i32) -> (i32, i32) {
    %c0_i32 = arith.constant 0 : i32
    %c0_i32_0 = arith.constant 0 : i32
    %c0_i32_1 = arith.constant 0 : i32
    return %c0_i32, %c0_i32_0 : i32, i32
  }
  func.func @transform_10(%arg0: i32) -> (i32, i32) {
    %c0_i32 = arith.constant 0 : i32
    %c0_i32_0 = arith.constant 0 : i32
    %c0_i32_1 = arith.constant 0 : i32
    return %c0_i32, %c0_i32_0 : i32, i32
  }
  func.func @transform_11(%arg0: i32) -> (i32, i32) {
    %c0_i32 = arith.constant 0 : i32
    %c0_i32_0 = arith.constant 0 : i32
    %c0_i32_1 = arith.constant 0 : i32
    return %c0_i32, %c0_i32_0 : i32, i32
  }
  func.func @transform_12(%arg0: i32) -> (i32, i32) {
    %c0_i32 = arith.constant 0 : i32
    %c0_i32_0 = arith.constant 0 : i32
    %c0_i32_1 = arith.constant 0 : i32
    return %c0_i32, %c0_i32_0 : i32, i32
  }
  func.func @transform_13(%arg0: i32) -> (i32, i32) {
    %c0_i32 = arith.constant 0 : i32
    %c0_i32_0 = arith.constant 0 : i32
    %c0_i32_1 = arith.constant 0 : i32
    return %c0_i32, %c0_i32_0 : i32, i32
  }
  func.func @transform_14(%arg0: i32) -> (i32, i32) {
    %c0_i32 = arith.constant 0 : i32
    %c0_i32_0 = arith.constant 0 : i32
    %c0_i32_1 = arith.constant 0 : i32
    return %c0_i32, %c0_i32_0 : i32, i32
  }
  func.func @transform_15(%arg0: i32) -> (i32, i32) {
    %c0_i32 = arith.constant 0 : i32
    %c0_i32_0 = arith.constant 0 : i32
    %c0_i32_1 = arith.constant 0 : i32
    return %c0_i32, %c0_i32_0 : i32, i32
  }
  func.func @transform_16(%arg0: i32) -> (i32, i32, i32) {
    %c0_i32 = arith.constant 0 : i32
    %c0_i32_0 = arith.constant 0 : i32
    %c0_i32_1 = arith.constant 0 : i32
    %c0_i32_2 = arith.constant 0 : i32
    return %c0_i32, %c0_i32_0, %c0_i32_1 : i32, i32, i32
  }
  func.func @transform_17(%arg0: i32) -> (i32, i32) {
    %c0_i32 = arith.constant 0 : i32
    %c0_i32_0 = arith.constant 0 : i32
    %c0_i32_1 = arith.constant 0 : i32
    return %c0_i32, %c0_i32_0 : i32, i32
  }
  func.func @transform_18(%arg0: i32) -> (i32, i32, i32) {
    %c0_i32 = arith.constant 0 : i32
    %c0_i32_0 = arith.constant 0 : i32
    %c0_i32_1 = arith.constant 0 : i32
    return %arg0, %c0_i32, %c0_i32_0 : i32, i32, i32
  }
}

</mosaic_0001>

<bundles_post_ra>
// kernel: encoder_pallas.1
= control target key start
LH: loop header
LB: loop body
LE: loop exit
PB: predicated region body
PF: predicated region fallthrough
CT: control target
= control target key end

     0   :  { %s4605_s27 = smov 0   ;;  %s7023_s0 = inlined_call_operand.vmem [shape: f32[2,3,1024], index: 0, kind: input, shape index: {}]   ;;  %s7024_s1 = inlined_call_operand.vmem [shape: f32[4,27], index: 1, kind: input, shape index: {}]   ;;  %s7025_s2 = inlined_call_operand.vmem [shape: f32[4,1], index: 2, kind: input, shape index: {}]   ;;  %s7026_s3 = inlined_call_operand.vmem [shape: f32[1024,256], index: 3, kind: input, shape index: {}]   ;;  %s7027_s4 = inlined_call_operand.vmem [shape: f32[8,36], index: 4, kind: input, shape index: {}]   ;;  %s7028_s5 = inlined_call_operand.vmem [shape: f32[8,1], index: 5, kind: input, shape index: {}]   ;;  %s7029_s6 = inlined_call_operand.vmem [shape: f32[256,64], index: 6, kind: input, shape index: {}]   ;;  %s7030_s7 = inlined_call_operand.vmem [shape: f32[8,72], index: 7, kind: input, shape index: {}]   ;;  %s7031_s8 = inlined_call_operand.vmem [shape: f32[8,1], index: 8, kind: input, shape index: {}]   ;;  %s7032_s9 = inlined_call_operand.vmem [shape: f32[64,16], index: 9, kind: input, shape index: {}]   ;;  %s7033_s10 = inlined_call_operand.vmem [shape: f32[16,72], index: 10, kind: input, shape index: {}]   ;;  %s7034_s11 = inlined_call_operand.vmem [shape: f32[16,1], index: 11, kind: input, shape index: {}]   ;;  %s7035_s12 = inlined_call_operand.vmem [shape: f32[16,4], index: 12, kind: input, shape index: {}]   ;;  %s7036_s13 = inlined_call_operand.vmem [shape: f32[16,144], index: 13, kind: input, shape index: {}]   ;;  %s7037_s14 = inlined_call_operand.vmem [shape: f32[16,1], index: 14, kind: input, shape index: {}]   ;;  %s7038_s15 = inlined_call_operand.vmem [shape: f32[4,1], index: 15, kind: input, shape index: {}]   ;;  %s7039_s16 = inlined_call_operand.vmem [shape: f32[1,32,16], index: 16, kind: input, shape index: {}]   ;;  %s7040_s17 = inlined_call_operand.vmem [shape: f32[32,1], index: 17, kind: input, shape index: {}]   ;;  %s7041_s18 = inlined_call_operand.vmem [shape: f32[2,32,1], index: 18, kind: output, shape index: {}]  }
   0x1   :  { %7057 = sst [smem:[#allocation3_spill]] %s7023_s0 }
   0x2   :  { %7058 = sst [smem:[#allocation4_spill]] %s7024_s1 }
   0x3   :  { %7059 = sst [smem:[#allocation5_spill]] %s7025_s2 }
   0x4 LB: > { %s3748_s28 = sadd.s32 4294967295, %s4473_s27   ;;  %p3752_p0 = scmp.ge.s32.totalorder %s4473_s27, 1  ;;  %s4473_s27 = sphi %s4605_s27, %s28_s27  }
   0x5   : > { %p512_p1 = scmp.lt.s32.totalorder %s4473_s27, 3 }
   0x7   : > { %p513_p2 = pnand %p3752_p0, %p512_p1 }
   0x8   : > { %p566_p3 = scmp.lt.s32.totalorder (!%p513_p2), %s3748_s28, 1  ;;  %s7060_s19 = sld [smem:[#allocation3_spill]] (!%p513_p2)  ;;  %v4483_v11 = vmov (!%p513_p2), 0.0   ;;  %v580_v12 = vlaneseq (!%p513_p2)  ;;  %v4484_v48 = vmov (!%p513_p2), 0  }
   0x9   : > { %516 = sbr.rel (%p513_p2) target bundleno = 6726 (0x1a46), region = 92  ;;  %s4475_s20 = smov (!%p513_p2), 31   ;;  %1445 = vmatprep.mubr.f32.mxu0 (!%p513_p2), %v4483_v11  ;;  %1516 = vmatprep.mubr.f32.mxu1 (!%p513_p2), %v4483_v11 }
   0xa   : > { %s4476_s21 = smov (!%p513_p2), 32   ;;  %s7054_s22 = smov (!%p513_p2), 1   ;;  %v4703_v13 = vand.u32 (!%p513_p2), 127, %v580_v12  ;;  %4412 = vset.pattern.permute.xlu0 (!%p513_p2), %v4484_v48  ;;  %4448 = vset.pattern.permute.xlu1 (!%p513_p2), %v4484_v48 }
   0xb   : > { %s4478_s2 = smov (!%p513_p2), 127   ;;  %s4479_s23 = smov (!%p513_p2), 33  }
   0xc   : > { %s4480_s24 = smov (!%p513_p2), 97   ;;  %s4481_s25 = smov (!%p513_p2), 96   ;;  %v4709_v14 = vadd.s32 (!%p513_p2), 128, %v4703_v13  ;;  %vm7049_vm2 = vcmp.lt.s32.totalorder (!%p513_p2), %v4703_v13, 31  ;;  %vm7050_vm4 = vcmp.lt.s32.totalorder (!%p513_p2), %v4703_v13, 1  ;;  %vm7044_vm5 = vcmp.lt.s32.totalorder (!%p513_p2), %v4703_v13, 32 }
   0xd   : > { %s4482_s26 = smov (!%p513_p2), 95   ;;  %v589_v30 = vand.u32 (!%p513_p2), 31, %v4703_v13  ;;  %v597_v31 = vshra.s32 (!%p513_p2), %v4703_v13, 5  ;;  %vm7047_vm7 = vcmp.lt.s32.totalorder (!%p513_p2), %v4703_v13, 127  ;;  %vm7046_vm12 = vcmp.lt.s32.totalorder (!%p513_p2), %v4703_v13, 33  ;;  %s4491_s30 = smov (!%p513_p2), 111  }
   0xe   : > { %v590_v16 = vand.u32 (!%p513_p2), 31, %v4709_v14  ;;  %v598_v17 = vshra.s32 (!%p513_p2), %v4709_v14, 5  ;;  %s4498_s0 = smov (!%p513_p2), 121  }
   0xf   : > { %vm4781_vm8 = vcmp.ge.s32.totalorder (!%p513_p2), %v597_v31, 1  ;;  %vm4785_vm9 = vcmp.le.s32.totalorder (!%p513_p2), %v589_v30, 30  ;;  %vm4813_vm11 = vcmp.ge.s32.totalorder (!%p513_p2), %v589_v30, 1 }
  0x10   : > { %s7235_s28 = smov (!%p566_p3, %s3748_s28), 1  ;;  %vm4724_vm0 = vcmp.ge.s32.totalorder %v598_v17, 1  ;;  %vm4728_vm1 = vcmp.le.s32.totalorder %v590_v16, 30  ;;  %vm4752_vm6 = vcmp.ge.s32.totalorder %v590_v16, 1  ;;  %vm820_vm10 = vmand %vm4781_vm8, %vm4785_vm9  ;;  %vm4849_vm15 = vcmp.le.s32.totalorder %v598_v17, 30 }
  0x11   : > { %s7053_s29 = sshll.u32 %s7235_s28, 5  ;;  %vm821_vm3 = vmand %vm4724_vm0, %vm4728_vm1 }
  0x12   : > { %s570_s1 = scalar_lea.vmem %s7060_s19, %s7053_s29  ;;  %s7071_s19 = sld [smem:[#allocation5_spill]]  ;;  %vm675_vm13 = vmand %vm4724_vm0, %vm4752_vm6 }
  0x13   : > { %v576_v0 = vld [vmem:[%s570_s1] sm:$0x77]  ;;  %v4621_v1 = vld [vmem:[%s570_s1 + $0x10] sm:$0x77]  ;;  %v4623_v2 = vld [vmem:[%s570_s1 + $0x18] sm:$0x77] }
  0x14   : > { %795 = vrot.lane.b32.xlu1 %v576_v0, %s4475_s20  ;;  %982 = vst [vmem:[#allocation2 + $0x48] sm:$0x70] %v576_v0  ;;  %986 = vst [vmem:[#allocation2 + $0x68] sm:$0x70] %v4621_v1  ;;  %714 = vrot.lane.b32.xlu0 %v576_v0, %s4476_s21  ;;  %v641_v3 = vcombine.high %v576_v0, %v576_v0  ;;  %v577_v4 = vld [vmem:[%s570_s1 + $0x8] sm:$0x77]  ;;  %v973_v5 = vcombine.low %v576_v0, %v576_v0 }
  0x15   : > { %988 = vst [vmem:[#allocation2 + $0x78] sm:$0x70] %v4623_v2  ;;  %984 = vst [vmem:[#allocation2 + $0x58] sm:$0x70] %v577_v4  ;;  %v4637_v6 = vcombine.high %v4623_v2, %v4623_v2  ;;  %v642_v7 = vcombine.high %v577_v4, %v577_v4  ;;  %v643_v8 = vcombine.high %v4621_v1, %v4621_v1  ;;  %s4500_s1 = smov 120   ;;  %s4503_s29 = smov 117  }
  0x16   : > { %981 = vst [vmem:[#allocation2 + $0x40] sm:$0x70] %v973_v5  ;;  %v974_v9 = vcombine.low %v577_v4, %v577_v4  ;;  %v975_v10 = vcombine.low %v4621_v1, %v4621_v1  ;;  %v976_v15 = vcombine.low %v4623_v2, %v4623_v2  ;;  %vm674_vm14 = vmand %vm4781_vm8, %vm4813_vm11 }
  0x18   : > { %892 = vrot.lane.b32.xlu0 %v576_v0, %s7054_s22  ;;  %797 = vrot.lane.b32.xlu1 %v641_v3, %s4475_s20  ;;  %983 = vst [vmem:[#allocation2 + $0x50] sm:$0x70] %v974_v9  ;;  %985 = vst [vmem:[#allocation2 + $0x60] sm:$0x70] %v975_v10  ;;  %v1346_v45 = vld [vmem:[%s7071_s19] sm:$0xf] }
  0x19   : > { %987 = vst [vmem:[#allocation2 + $0x70] sm:$0x70] %v976_v15  ;;  %s4499_s19 = smov 119  }
  0x1c   : > { %894 = vrot.lane.b32.xlu1 %v641_v3, %s7054_s22  ;;  %716 = vrot.lane.b32.xlu0 %v641_v3, %s4476_s21 }
  0x20   : > { %993 = vrot.lane.b32.xlu1 %v577_v4, %s4478_s2  ;;  %991 = vrot.lane.b32.xlu0 %v641_v3, %s4478_s2 }
  0x24   : > { %809 = vrot.lane.b32.xlu1 %v4637_v6, %s4475_s20  ;;  %728 = vrot.lane.b32.xlu0 %v4637_v6, %s4476_s21 }
  0x28   : > { %989 = vrot.lane.b32.xlu1 %v576_v0, %s4478_s2  ;;  %906 = vrot.lane.b32.xlu0 %v4637_v6, %s7054_s22 }
  0x2c   : > { %651 = vrot.lane.b32.xlu1 %v641_v3, %s4479_s23  ;;  %649 = vrot.lane.b32.xlu0 %v576_v0, %s4479_s23 }
  0x30   : > { %1080 = vrot.lane.b32.xlu1 %v641_v3, %s4480_s24  ;;  %663 = vrot.lane.b32.xlu0 %v4637_v6, %s4479_s23 }
  0x34   : > { %1169 = vrot.lane.b32.xlu1 %v641_v3, %s4481_s25  ;;  %1082 = vrot.lane.b32.xlu0 %v577_v4, %s4480_s24 }
  0x38   : > { %1078 = vrot.lane.b32.xlu1 %v576_v0, %s4480_s24  ;;  %1171 = vrot.lane.b32.xlu0 %v577_v4, %s4481_s25 }
  0x3c   : > { %1250 = vrot.lane.b32.xlu1 %v641_v3, %s4482_s26  ;;  %1167 = vrot.lane.b32.xlu0 %v576_v0, %s4481_s25 }
  0x40   : > { %1248 = vrot.lane.b32.xlu1 %v576_v0, %s4482_s26  ;;  %1252 = vrot.lane.b32.xlu0 %v577_v4, %s4482_s26 }
  0x44   : > { %720 = vrot.lane.b32.xlu1 %v642_v7, %s4476_s21  ;;  %718 = vrot.lane.b32.xlu0 %v577_v4, %s4476_s21 }
  0x48   : > { %724 = vrot.lane.b32.xlu1 %v643_v8, %s4476_s21  ;;  %722 = vrot.lane.b32.xlu0 %v4621_v1, %s4476_s21 }
  0x4c   : > { %801 = vrot.lane.b32.xlu1 %v642_v7, %s4475_s20  ;;  %799 = vrot.lane.b32.xlu0 %v577_v4, %s4475_s20 }
  0x50   : > { %805 = vrot.lane.b32.xlu1 %v643_v8, %s4475_s20  ;;  %803 = vrot.lane.b32.xlu0 %v4621_v1, %s4475_s20 }
  0x54   : > { %898 = vrot.lane.b32.xlu1 %v642_v7, %s7054_s22  ;;  %896 = vrot.lane.b32.xlu0 %v577_v4, %s7054_s22 }
  0x58   : > { %902 = vrot.lane.b32.xlu1 %v643_v8, %s7054_s22  ;;  %900 = vrot.lane.b32.xlu0 %v4621_v1, %s7054_s22 }
  0x5c   : > { %997 = vrot.lane.b32.xlu1 %v4621_v1, %s4478_s2  ;;  %995 = vrot.lane.b32.xlu0 %v642_v7, %s4478_s2 }
  0x60   : > { %1001 = vrot.lane.b32.xlu1 %v4623_v2, %s4478_s2  ;;  %999 = vrot.lane.b32.xlu0 %v643_v8, %s4478_s2 }
  0x64   : > { %655 = vrot.lane.b32.xlu1 %v642_v7, %s4479_s23  ;;  %653 = vrot.lane.b32.xlu0 %v577_v4, %s4479_s23 }
  0x68   : > { %659 = vrot.lane.b32.xlu1 %v643_v8, %s4479_s23  ;;  %657 = vrot.lane.b32.xlu0 %v4621_v1, %s4479_s23 }
  0x6c   : > { %1086 = vrot.lane.b32.xlu1 %v4621_v1, %s4480_s24  ;;  %1084 = vrot.lane.b32.xlu0 %v642_v7, %s4480_s24 }
  0x70   : > { %1090 = vrot.lane.b32.xlu1 %v4623_v2, %s4480_s24  ;;  %1088 = vrot.lane.b32.xlu0 %v643_v8, %s4480_s24 }
  0x74   : > { %1175 = vrot.lane.b32.xlu1 %v4621_v1, %s4481_s25  ;;  %1173 = vrot.lane.b32.xlu0 %v642_v7, %s4481_s25 }
  0x78   : > { %1179 = vrot.lane.b32.xlu1 %v4623_v2, %s4481_s25  ;;  %1177 = vrot.lane.b32.xlu0 %v643_v8, %s4481_s25 }
  0x7c   : > { %1256 = vrot.lane.b32.xlu1 %v4621_v1, %s4482_s26  ;;  %1254 = vrot.lane.b32.xlu0 %v642_v7, %s4482_s26 }
  0x80   : > { %1260 = vrot.lane.b32.xlu1 %v4623_v2, %s4482_s26  ;;  %1258 = vrot.lane.b32.xlu0 %v643_v8, %s4482_s26 }
  0x84   : > { %807 = vrot.lane.b32.xlu1 %v4623_v2, %s4475_s20  ;;  %726 = vrot.lane.b32.xlu0 %v4623_v2, %s4476_s21  ;;  %s7096_s21 = sld [smem:[#allocation4_spill]]  ;;  %s7216_s20 = smov 113  }
  0x86   : > { %v796_v18 = vpop.permute.xlu1 %795  ;;  %v715_v19 = vpop.permute.xlu0 %714 }
  0x88   : > { %1003 = vrot.lane.b32.xlu1 %v4637_v6, %s4478_s2  ;;  %904 = vrot.lane.b32.xlu0 %v4623_v2, %s7054_s22  ;;  %s7186_s22 = smov 1  }
  0x8a   : > { %v893_v22 = vpop.permute.xlu0 %892  ;;  %v4741_v23 = vpop.permute.xlu1 %797 }
  0x8b   : > { %v818_v24 = vsel %vm7049_vm2, %v796_v18, %v4741_v23 }
  0x8c   : > { %v845_v25 = vsel %vm821_vm3, %v818_v24, 0.0  ;;  %1092 = vrot.lane.b32.xlu1 %v4637_v6, %s4480_s24  ;;  %661 = vrot.lane.b32.xlu0 %v4623_v2, %s4479_s23  ;;  %vm1104_vm3 = vmand %vm4849_vm15, %vm4752_vm6  ;;  %s4488_s23 = smov 15   ;;  %s4489_s24 = smov 112  }
  0x8d   : > { %v861_v26 = vrot.slane %v845_v25, 2 }
  0x8e   : > { %v4756_v28 = vpop.permute.xlu1 %894  ;;  %v4758_v29 = vpop.permute.xlu0 %716 }
  0x8f   : > { %877 = vst [vmem:[#allocation2 + $0x48] ss:$-60 sps:$4 sm:$0xc1] %v861_v26   ;;  %v915_v32 = vsel %vm7050_vm4, %v893_v22, %v4756_v28  ;;  %v737_v33 = vsel %vm7044_vm5, %v715_v19, %v4758_v29 }
  0x90   : > { %v934_v34 = vsel %vm4752_vm6, %v915_v32, 0.0  ;;  %v756_v35 = vsel %vm4724_vm0, %v737_v33, 0.0  ;;  %1262 = vrot.lane.b32.xlu1 %v4637_v6, %s4482_s26  ;;  %1181 = vrot.lane.b32.xlu0 %v4637_v6, %s4481_s25  ;;  %vm7045_vm0 = vcmp.lt.s32.totalorder %v4703_v13, 97  ;;  %v4890_v33 = vadd.s32 256, %v4703_v13  ;;  %s7056_s26 = smov 113  }
  0x91   : > { %v950_v36 = vrot.slane %v934_v34, 7  ;;  %v772_v37 = vrot.slane %v756_v35, 5 }
  0x92   : > { %v4777_v38 = vpop.permute.xlu1 %993  ;;  %v992_v39 = vpop.permute.xlu0 %991  ;;  %v599_v48 = vshra.s32 %v4890_v33, 5 }
  0x93   : > { %966 = vst [vmem:[#allocation2 + $0x48] sm:$0xe] %v950_v36  ;;  %788 = vst [vmem:[#allocation2 + $0x8] sm:$0x38] %v772_v37  ;;  %v1011_v42 = vsel %vm7047_vm7, %v992_v39, %v4777_v38  ;;  %v4893_v37 = vadd.s32 384, %v4703_v13 }
  0x94   : > { %v1031_v43 = vsel %vm4728_vm1, %v1011_v42, 0.0  ;;  %1349 = vperm.xlu0 %4412, %v1346_v45  }
  0x95   : > { %v1047_v44 = vrot.slane %v1031_v43, 1  ;;  %v4901_v43 = vadd.s32 512, %v4703_v13 }
  0x96   : > { %v4801_v46 = vpop.permute.xlu1 %809  ;;  %v4803_v47 = vpop.permute.xlu0 %728 }
  0x97   : > { %1063 = vst [vmem:[#allocation2 + $0x88] ss:$-60 sps:$4 sm:$0x83] %v1047_v44   ;;  %v819_v49 = vsel %vm7049_vm2, %v4801_v46, %v796_v18  ;;  %v738_v50 = vsel %vm7044_vm5, %v4803_v47, %v715_v19  ;;  %v593_v6 = vand.u32 31, %v4901_v43 }
  0x98   : > { %v844_v51 = vsel %vm820_vm10, %v819_v49, 0.0  ;;  %v755_v52 = vsel %vm4781_vm8, %v738_v50, 0.0  ;;  %vm4865_vm8 = vcmp.le.s32.totalorder %v597_v31, 30  ;;  %vm7043_vm10 = vcmp.lt.s32.totalorder %v4703_v13, 96 }
  0x99   : > { %v860_v53 = vrot.slane %v844_v51, 2  ;;  %v771_v54 = vrot.slane %v755_v52, 5  ;;  %vm1103_vm6 = vmand %vm4865_vm8, %vm4813_vm11  ;;  %v600_v49 = vshra.s32 %v4893_v37, 5  ;;  %v4917_v50 = vadd.s32 640, %v4703_v13 }
  0x9a   : > { %v4817_v56 = vpop.permute.xlu1 %989  ;;  %v4819_v57 = vpop.permute.xlu0 %906 }
  0x9b   : > { %876 = vst [vmem:[#allocation2 + $0x40] ss:$-60 sps:$4 sm:$0xc1] %v860_v53   ;;  %787 = vst [vmem:[#allocation2] sm:$0x38] %v771_v54  ;;  %v1012_v58 = vsel %vm7047_vm7, %v4817_v56, %v992_v39  ;;  %v916_v59 = vsel %vm7050_vm4, %v4819_v57, %v893_v22  ;;  %v601_v53 = vshra.s32 %v4901_v43, 5 }
  0x9c   : > { %v1030_v60 = vsel %vm4785_vm9, %v1012_v58, 0.0  ;;  %v933_v61 = vsel %vm4813_vm11, %v916_v59, 0.0  ;;  %vm7042_vm11 = vcmp.lt.s32.totalorder %v4703_v13, 95 }
  0x9d   : > { %v1046_v62 = vrot.slane %v1030_v60, 1  ;;  %v949_v63 = vrot.slane %v933_v61, 7  ;;  %v602_v60 = vshra.s32 %v4917_v50, 5  ;;  %v591_v61 = vand.u32 31, %v4890_v33 }
  0x9e   : > { %v4836_v0 = vpop.permute.xlu1 %651  ;;  %v650_v1 = vpop.permute.xlu0 %649  ;;  %v1322_v18 = vld [vmem:[#allocation2 + $0x48] sm:$0xff] }
  0x9f   : > { %1062 = vst [vmem:[#allocation2 + $0x80] ss:$-60 sps:$4 sm:$0x83] %v1046_v62   ;;  %965 = vst [vmem:[#allocation2 + $0x40] sm:$0xe] %v949_v63  ;;  %v672_v2 = vsel %vm7046_vm12, %v650_v1, %v4836_v0 }
  0xa0   : > { %v699_v3 = vsel %vm675_vm13, %v672_v2, 0.0  ;;  %vm1273_vm13 = vmand %vm4865_vm8, %vm4785_vm9  ;;  %vm4938_vm9 = vcmp.ge.s32.totalorder %v600_v49, 1 }
  0xa1   : > { %707 = vst [vmem:[#allocation2 + $0x8] sm:$0x7] %v699_v3 }
  0xa2   : > { %v1081_v4 = vpop.permute.xlu1 %1080  ;;  %v4845_v5 = vpop.permute.xlu0 %663 }
  0xa3   : > { %v673_v7 = vsel %vm7046_vm12, %v4845_v5, %v650_v1  ;;  %v592_v1 = vand.u32 31, %v4893_v37  ;;  %vm7048_vm12 = vcmask 220160  }
  0xa4   : > { %v698_v8 = vsel %vm674_vm14, %v673_v7, 0.0  ;;  %vm1274_vm14 = vmand %vm4849_vm15, %vm4728_vm1  ;;  %vm4932_vm1 = vcmp.ge.s32.totalorder %v599_v48, 1 }
  0xa5   : > { %706 = vst [vmem:[#allocation2] sm:$0x7] %v698_v8  ;;  %vm5059_vm7 = vcmp.ge.s32.totalorder %v592_v1, 1 }
  0xa6   : > { %v1170_v9 = vpop.permute.xlu1 %1169  ;;  %v4861_v10 = vpop.permute.xlu0 %1082  ;;  %v1321_v32 = vld [vmem:[#allocation2 + $0x40] sm:$0xff] }
  0xa7   : > { %v1100_v15 = vsel %vm7045_vm0, %v1081_v4, %v4861_v10 }
  0xa8   : > { %v1128_v16 = vsel %vm1104_vm3, %v1100_v15, 0.0  ;;  %v1314_v17 = vld [vmem:[#allocation2 + $0x8] sm:$0xff]  ;;  %vm1356_vm3 = vcmask 1042432  }
  0xa9   : > { %v1144_v19 = vrot.slane %v1128_v16, 6  ;;  %v3952_v20 = vpack.c.bf16 %v1322_v18, %v1314_v17 }
  0xaa   : > { %v4877_v22 = vpop.permute.xlu1 %1078  ;;  %v4879_v24 = vpop.permute.xlu0 %1171 }
  0xab   : > { %1160 = vst [vmem:[#allocation2 + $0x88] sm:$0x1c] %v1144_v19  ;;  %v1101_v25 = vsel %vm7045_vm0, %v4877_v22, %v1081_v4  ;;  %v1189_v26 = vsel %vm7043_vm10, %v1170_v9, %v4879_v24  ;;  %3953 = vmatprep.subr.bf16.mxu0 %v3952_v20  ;;  %v594_v19 = vand.u32 31, %v4917_v50 }
  0xac   : > { %v1127_v27 = vsel %vm1103_vm6, %v1101_v25, 0.0  ;;  %v1209_v30 = vsel %vm4849_vm15, %v1189_v26, 0.0  ;;  %v1313_v31 = vld [vmem:[#allocation2] sm:$0xff]  ;;  %vm4952_vm15 = vcmp.ge.s32.totalorder %v601_v53, 1  ;;  %vm4969_vm6 = vcmp.le.s32.totalorder %v591_v61, 30 }
  0xad   : > { %v1143_v34 = vrot.slane %v1127_v27, 6  ;;  %v1225_v35 = vrot.slane %v1209_v30, 3  ;;  %v3954_v36 = vpack.c.bf16 %v1321_v32, %v1313_v31  ;;  %v7090_v27 = vmov 0 }
  0xae   : > { %v1251_v39 = vpop.permute.xlu1 %1250  ;;  %v4895_v40 = vpop.permute.xlu0 %1167 }
  0xaf   : > { %1159 = vst [vmem:[#allocation2 + $0x80] sm:$0x1c] %v1143_v34  ;;  %1241 = vst [vmem:[#allocation2 + $0x88] sm:$0xe0] %v1225_v35  ;;  %v1190_v42 = vsel %vm7043_vm10, %v4895_v40, %v1170_v9  ;;  %3955 = vmatpush1.bf16.msra.mxu0 %v3954_v36  ;;  %vm4994_vm10 = vcmp.le.s32.totalorder %v593_v6, 30 }
  0xb0   : > { %v1208_v44 = vsel %vm4865_vm8, %v1190_v42, 0.0  ;;  %vm4963_vm8 = vcmp.ge.s32.totalorder %v602_v60, 1  ;;  %vm824_vm0 = vmand %vm4952_vm15, %vm4994_vm10 }
  0xb1   : > { %v1224_v45 = vrot.slane %v1208_v44, 3 }
  0xb2   : > { %v4919_v51 = vpop.permute.xlu1 %1248  ;;  %v4921_v52 = vpop.permute.xlu0 %1252 }
  0xb3   : > { %1240 = vst [vmem:[#allocation2 + $0x80] sm:$0xe0] %v1224_v45  ;;  %v1271_v41 = vsel %vm7042_vm11, %v4919_v51, %v1251_v39  ;;  %v1270_v21 = vsel %vm7042_vm11, %v1251_v39, %v4921_v52 }
  0xb4   : > { %v1297_v54 = vsel %vm1273_vm13, %v1271_v41, 0.0  ;;  %v1298_v55 = vsel %vm1274_vm14, %v1270_v21, 0.0  ;;  %vm4977_vm13 = vcmp.le.s32.totalorder %v592_v1, 30  ;;  %vm4485_vm14 = vmmov 1  }
  0xb5   : > { %1305 = vst [vmem:[#allocation2 + $0xc0] sm:$0x7] %v1297_v54  ;;  %1306 = vst [vmem:[#allocation2 + $0xc8] sm:$0x7] %v1298_v55 }
  0xb6   : > { %v721_v62 = vpop.permute.xlu1 %720  ;;  %v719_v63 = vpop.permute.xlu0 %718  ;;  %v1330_v26 = vld [vmem:[#allocation2 + $0x88] sm:$0xff]  ;;  %vm4988_vm11 = vmpackc.low %vm1356_vm3, %vm4485_vm14 }
  0xb7   : > { %v735_v2 = vsel %vm7044_vm5, %v719_v63, %v721_v62  ;;  %v736_v3 = vsel %vm7044_vm5, %v4758_v29, %v719_v63  ;;  %v7091_v27 = vsel %vm4988_vm11, 4294967295, %v7090_v27  ;;  %vm822_vm3 = vmand %vm4932_vm1, %vm4969_vm6 }
  0xb8   : > { %v757_v7 = vsel %vm4932_vm1, %v736_v3, 0.0  ;;  %v758_v8 = vsel %vm4938_vm9, %v735_v2, 0.0  ;;  %vm823_vm14 = vmand %vm4938_vm9, %vm4977_vm13 }
  0xb9   : > { %v773_v9 = vrot.slane %v757_v7, 5  ;;  %v774_v12 = vrot.slane %v758_v8, 5 }
  0xba   : > { %v4973_v16 = vpop.permute.xlu1 %724  ;;  %v723_v17 = vpop.permute.xlu0 %722  ;;  %v1329_v30 = vld [vmem:[#allocation2 + $0x80] sm:$0xff] }
  0xbb   : > { %789 = vst [vmem:[#allocation2 + $0x10] sm:$0x38] %v773_v9  ;;  %790 = vst [vmem:[#allocation2 + $0x18] sm:$0x38] %v774_v12  ;;  %v733_v20 = vsel %vm7044_vm5, %v723_v17, %v4973_v16  ;;  %v734_v25 = vsel %vm7044_vm5, %v721_v62, %v723_v17  ;;  %vm5010_vm5 = vcmp.le.s32.totalorder %v594_v19, 30 }
  0xbc   : > { %v759_v32 = vsel %vm4952_vm15, %v734_v25, 0.0  ;;  %v760_v34 = vsel %vm4963_vm8, %v733_v20, 0.0  ;;  %v1338_v35 = vld [vmem:[#allocation2 + $0xc8] sm:$0x7]  ;;  %v1337_v36 = vld [vmem:[#allocation2 + $0xc0] sm:$0x7] }
  0xbd   : > { %v775_v39 = vrot.slane %v759_v32, 5  ;;  %v776_v42 = vrot.slane %v760_v34, 5  ;;  %v3956_v44 = vpack.c.bf16 %v1338_v35, %v1330_v26  ;;  %v3959_v45 = vpack.c.bf16 %v1337_v36, %v1329_v30 }
  0xbe   : > { %v802_v41 = vpop.permute.xlu1 %801  ;;  %v800_v21 = vpop.permute.xlu0 %799 }
  0xbf   : > { %791 = vst [vmem:[#allocation2 + $0x20] sm:$0x38] %v775_v39  ;;  %792 = vst [vmem:[#allocation2 + $0x28] sm:$0x38] %v776_v42  ;;  %v816_v55 = vsel %vm7049_vm2, %v800_v21, %v802_v41  ;;  %v817_v62 = vsel %vm7049_vm2, %v4741_v23, %v800_v21  ;;  %3958 = vmatprep.subr.msk.bf16.mxu0 %vm4988_vm11, %v3956_v44  ;;  %v5035_v23 = vld [vmem:[%s7096_s21] sm:$0xf] }
  0xc0   : > { %v846_v63 = vsel %vm822_vm3, %v817_v62, 0.0  ;;  %v847_v2 = vsel %vm823_vm14, %v816_v55, 0.0  ;;  %3961 = vmatpush1.bf16.msk.msra.mxu0 %vm4988_vm11, %v3959_v45  ;;  %vm825_vm3 = vmand %vm4963_vm8, %vm5010_vm5  ;;  %vm5053_vm14 = vcmp.ge.s32.totalorder %v591_v61, 1  ;;  %s4487_s21 = smov 17  }
  0xc1   : > { %v862_v3 = vrot.slane %v846_v63, 2  ;;  %v863_v7 = vrot.slane %v847_v2, 2 }
  0xc2   : > { %v5041_v8 = vpop.permute.xlu1 %805  ;;  %v804_v9 = vpop.permute.xlu0 %803 }
  0xc3   : > { %878 = vst [vmem:[#allocation2 + $0x50] ss:$-60 sps:$4 sm:$0xc1] %v862_v3   ;;  %879 = vst [vmem:[#allocation2 + $0x58] ss:$-60 sps:$4 sm:$0xc1] %v863_v7   ;;  %v814_v12 = vsel %vm7049_vm2, %v804_v9, %v5041_v8  ;;  %v815_v17 = vsel %vm7049_vm2, %v802_v41, %v804_v9  ;;  %3759 = vmatmul.mubr.msk.f32.vlgmr.msra.gmra.mrb[0].mxu0 %vm7048_vm12, %v5035_v23 }
  0xc4   : > { %v848_v20 = vsel %vm824_vm0, %v815_v17, 0.0  ;;  %v849_v25 = vsel %vm825_vm3, %v814_v12, 0.0  ;;  %1587 = vmatprep.mubr.f32.mxu0 %v4483_v11  ;;  %vm5074_vm0 = vcmp.ge.s32.totalorder %v593_v6, 1  ;;  %vm5078_vm3 = vcmp.ge.s32.totalorder %v594_v19, 1 }
  0xc5   : > { %v864_v26 = vrot.slane %v848_v20, 2  ;;  %v865_v30 = vrot.slane %v849_v25, 2  ;;  %vm7105_vm12 = vcmp.lt.s32.totalorder %v4703_v13, 127 }
  0xc6   : > { %v899_v35 = vpop.permute.xlu1 %898  ;;  %v897_v36 = vpop.permute.xlu0 %896  ;;  %vm7106_vm2 = vmmov %vm7105_vm12 }
  0xc7   : > { %880 = vst [vmem:[#allocation2 + $0x60] ss:$-60 sps:$4 sm:$0xc1] %v864_v26   ;;  %881 = vst [vmem:[#allocation2 + $0x68] ss:$-60 sps:$4 sm:$0xc1] %v865_v30   ;;  %v913_v39 = vsel %vm7050_vm4, %v897_v36, %v899_v35  ;;  %v914_v61 = vsel %vm7050_vm4, %v4756_v28, %v897_v36 }
  0xc8   : > { %v935_v42 = vsel %vm5053_vm14, %v914_v61, 0.0  ;;  %v936_v1 = vsel %vm5059_vm7, %v913_v39, 0.0 }
  0xc9   : > { %v951_v44 = vrot.slane %v935_v42, 7  ;;  %v952_v45 = vrot.slane %v936_v1, 7 }
  0xca   : > { %v5082_v55 = vpop.permute.xlu1 %902  ;;  %v901_v28 = vpop.permute.xlu0 %900 }
  0xcb   : > { %967 = vst [vmem:[#allocation2 + $0x50] sm:$0xe] %v951_v44  ;;  %968 = vst [vmem:[#allocation2 + $0x58] sm:$0xe] %v952_v45  ;;  %v911_v62 = vsel %vm7050_vm4, %v901_v28, %v5082_v55  ;;  %v912_v63 = vsel %vm7050_vm4, %v899_v35, %v901_v28 }
  0xcc   : > { %v937_v6 = vsel %vm5074_vm0, %v912_v63, 0.0  ;;  %v938_v19 = vsel %vm5078_vm3, %v911_v62, 0.0  ;;  %vm7108_vm4 = vmmov %vm7106_vm2 }
  0xcd   : > { %v953_v2 = vrot.slane %v937_v6, 7  ;;  %v954_v3 = vrot.slane %v938_v19, 7 }
  0xce   : > { %v998_v7 = vpop.permute.xlu1 %997  ;;  %v996_v9 = vpop.permute.xlu0 %995 }
  0xcf   : > { %969 = vst [vmem:[#allocation2 + $0x60] sm:$0xe] %v953_v2  ;;  %970 = vst [vmem:[#allocation2 + $0x68] sm:$0xe] %v954_v3  ;;  %v1009_v12 = vsel %vm7105_vm12, %v996_v9, %v998_v7  ;;  %v1010_v17 = vsel %vm7106_vm2, %v4777_v38, %v996_v9 }
  0xd0   : > { %v1032_v20 = vsel %vm4969_vm6, %v1010_v17, 0.0  ;;  %v1033_v25 = vsel %vm4977_vm13, %v1009_v12, 0.0  ;;  %vm7107_vm12 = vmmov %vm7106_vm2 }
  0xd1   : > { %v1048_v26 = vrot.slane %v1032_v20, 1  ;;  %v1049_v30 = vrot.slane %v1033_v25, 1  ;;  %vm676_vm2 = vmand %vm4932_vm1, %vm5053_vm14 }
  0xd2   : > { %v5102_v35 = vpop.permute.xlu1 %1001  ;;  %v1000_v36 = vpop.permute.xlu0 %999  ;;  %vm678_vm1 = vmand %vm4952_vm15, %vm5074_vm0  ;;  %vm7115_vm15 = vcmp.lt.s32.totalorder %v4703_v13, 33 }
  0xd3   : > { %1064 = vst [vmem:[#allocation2 + $0x90] ss:$-60 sps:$4 sm:$0x83] %v1048_v26   ;;  %1065 = vst [vmem:[#allocation2 + $0x98] ss:$-60 sps:$4 sm:$0x83] %v1049_v30   ;;  %v1007_v39 = vsel %vm7107_vm12, %v1000_v36, %v5102_v35  ;;  %v1008_v38 = vsel %vm7108_vm4, %v998_v7, %v1000_v36 }
  0xd4   : > { %v1034_v61 = vsel %vm4994_vm10, %v1008_v38, 0.0  ;;  %v1035_v42 = vsel %vm5010_vm5, %v1007_v39, 0.0  ;;  %vm677_vm12 = vmand %vm4938_vm9, %vm5059_vm7  ;;  %vm7109_vm4 = vcmp.lt.s32.totalorder %v4703_v13, 33 }
  0xd5   : > { %v1050_v1 = vrot.slane %v1034_v61, 1  ;;  %v1051_v44 = vrot.slane %v1035_v42, 1  ;;  %vm7110_vm11 = vmmov %vm7109_vm4 }
  0xd6   : > { %v656_v45 = vpop.permute.xlu1 %655  ;;  %v654_v28 = vpop.permute.xlu0 %653  ;;  %vm679_vm9 = vmand %vm4963_vm8, %vm5078_vm3 }
  0xd7   : > { %1066 = vst [vmem:[#allocation2 + $0xa0] ss:$-60 sps:$4 sm:$0x83] %v1050_v1   ;;  %1067 = vst [vmem:[#allocation2 + $0xa8] ss:$-60 sps:$4 sm:$0x83] %v1051_v44   ;;  %v670_v62 = vsel %vm7109_vm4, %v654_v28, %v656_v45  ;;  %v671_v63 = vsel %vm7110_vm11, %v4836_v0, %v654_v28 }
  0xd8   : > { %v700_v58 = vsel %vm676_vm2, %v671_v63, 0.0  ;;  %v701_v6 = vsel %vm677_vm12, %v670_v62, 0.0  ;;  %vm5136_vm4 = vcmp.le.s32.totalorder %v599_v48, 30  ;;  %vm5144_vm11 = vcmp.le.s32.totalorder %v600_v49, 30  ;;  %vm7116_vm8 = vmmov %vm7115_vm15 }
  0xd9   : > { %708 = vst [vmem:[#allocation2 + $0x10] sm:$0x7] %v700_v58  ;;  %709 = vst [vmem:[#allocation2 + $0x18] sm:$0x7] %v701_v6  ;;  %vm5159_vm12 = vcmp.le.s32.totalorder %v601_v53, 30 }
  0xda   : > { %v5140_v0 = vpop.permute.xlu1 %659  ;;  %v658_v19 = vpop.permute.xlu0 %657  ;;  %vm1105_vm2 = vmand %vm5136_vm4, %vm5053_vm14  ;;  %vm7121_vm14 = vcmp.lt.s32.totalorder %v4703_v13, 97  ;;  %v1324_v34 = vld [vmem:[#allocation2 + $0x58] sm:$0xff]  ;;  %v1323_v12 = vld [vmem:[#allocation2 + $0x50] sm:$0xff] }
  0xdb   : > { %v668_v29 = vsel %vm7115_vm15, %v658_v19, %v5140_v0  ;;  %v669_v33 = vsel %vm7116_vm8, %v656_v45, %v658_v19  ;;  %vm1106_vm15 = vmand %vm5144_vm11, %vm5059_vm7 }
  0xdc   : > { %v702_v48 = vsel %vm678_vm1, %v669_v33, 0.0  ;;  %v703_v2 = vsel %vm679_vm9, %v668_v29, 0.0  ;;  %vm5169_vm1 = vcmp.le.s32.totalorder %v602_v60, 30  ;;  %vm7122_vm9 = vmmov %vm7121_vm14 }
  0xdd   : > { %710 = vst [vmem:[#allocation2 + $0x20] sm:$0x7] %v702_v48  ;;  %711 = vst [vmem:[#allocation2 + $0x28] sm:$0x7] %v703_v2 }
  0xde   : > { %v1087_v49 = vpop.permute.xlu1 %1086  ;;  %v1085_v3 = vpop.permute.xlu0 %1084  ;;  %vm1107_vm7 = vmand %vm5159_vm12, %vm5074_vm0  ;;  %v1326_v38 = vld [vmem:[#allocation2 + $0x68] sm:$0xff]  ;;  %v1325_v44 = vld [vmem:[#allocation2 + $0x60] sm:$0xff] }
  0xdf   : > { %v1098_v43 = vsel %vm7121_vm14, %v1085_v3, %v1087_v49  ;;  %v1099_v53 = vsel %vm7122_vm9, %v4861_v10, %v1085_v3  ;;  %vm1108_vm8 = vmand %vm5169_vm1, %vm5078_vm3  ;;  %vm7125_vm3 = vcmp.lt.s32.totalorder %v4703_v13, 96 }
  0xe0   : > { %v1129_v7 = vsel %vm1105_vm2, %v1099_v53, 0.0  ;;  %v1130_v9 = vsel %vm1106_vm15, %v1098_v43, 0.0  ;;  %v1316_v50 = vld [vmem:[#allocation2 + $0x18] sm:$0xff]  ;;  %v1315_v60 = vld [vmem:[#allocation2 + $0x10] sm:$0xff]  ;;  %vm7123_vm2 = vmmov %vm7122_vm9  ;;  %v588_v53 = vadd.s32 896, %v4703_v13 }
  0xe1   : > { %v1145_v17 = vrot.slane %v1129_v7, 6  ;;  %v1146_v20 = vrot.slane %v1130_v9, 6  ;;  %v3962_v25 = vpack.c.bf16 %v1324_v34, %v1316_v50  ;;  %v3964_v10 = vpack.c.bf16 %v1323_v12, %v1315_v60  ;;  %vm7124_vm15 = vmmov %vm7123_vm2 }
  0xe2   : > { %v5186_v26 = vpop.permute.xlu1 %1090  ;;  %v1089_v30 = vpop.permute.xlu0 %1088  ;;  %vm7126_vm0 = vmmov %vm7125_vm3 }
  0xe3   : > { %1161 = vst [vmem:[#allocation2 + $0x90] sm:$0x1c] %v1145_v17  ;;  %1162 = vst [vmem:[#allocation2 + $0x98] sm:$0x1c] %v1146_v20  ;;  %v1096_v36 = vsel %vm7123_vm2, %v1089_v30, %v5186_v26  ;;  %v1097_v39 = vsel %vm7124_vm15, %v1087_v49, %v1089_v30  ;;  %3963 = vmatprep.subr.bf16.mxu1 %v3962_v25  ;;  %v587_v49 = vadd.s32 768, %v4703_v13  ;;  %v604_v30 = vshra.s32 %v588_v53, 5 }
  0xe4   : > { %v1131_v21 = vsel %vm1107_vm7, %v1097_v39, 0.0  ;;  %v1132_v61 = vsel %vm1108_vm8, %v1096_v36, 0.0  ;;  %3965 = vmatpush1.bf16.msra.mxu1 %v3964_v10  ;;  %v1318_v42 = vld [vmem:[#allocation2 + $0x28] sm:$0xff]  ;;  %v1317_v1 = vld [vmem:[#allocation2 + $0x20] sm:$0xff]  ;;  %vm7127_vm14 = vmmov %vm7126_vm0  ;;  %v596_v10 = vand.u32 31, %v588_v53  ;;  %vm7129_vm2 = vcmp.lt.s32.totalorder %v4703_v13, 95 }
  0xe5   : > { %v1147_v45 = vrot.slane %v1131_v21, 6  ;;  %v1148_v28 = vrot.slane %v1132_v61, 6  ;;  %v3972_v62 = vpack.c.bf16 %v1326_v38, %v1318_v42  ;;  %v3974_v63 = vpack.c.bf16 %v1325_v44, %v1317_v1  ;;  %vm7128_vm9 = vmmov %vm7126_vm0 }
  0xe6   : > { %v1176_v58 = vpop.permute.xlu1 %1175  ;;  %v1174_v6 = vpop.permute.xlu0 %1173  ;;  %vm1275_vm7 = vmand %vm5136_vm4, %vm4969_vm6  ;;  %v595_v12 = vand.u32 31, %v587_v49  ;;  %v603_v17 = vshra.s32 %v587_v49, 5 }
  0xe7   : > { %1163 = vst [vmem:[#allocation2 + $0xa0] sm:$0x1c] %v1147_v45  ;;  %1164 = vst [vmem:[#allocation2 + $0xa8] sm:$0x1c] %v1148_v28  ;;  %v1187_v19 = vsel %vm7125_vm3, %v1174_v6, %v1176_v58  ;;  %v1188_v41 = vsel %vm7126_vm0, %v4879_v24, %v1174_v6  ;;  %3973 = vmatprep.subr.bf16.mxu0 %v3972_v62  ;;  %vm5251_vm3 = vcmp.ge.s32.totalorder %v604_v30, 1 }
  0xe8   : > { %v1210_v29 = vsel %vm5136_vm4, %v1188_v41, 0.0  ;;  %v1211_v33 = vsel %vm5144_vm11, %v1187_v19, 0.0  ;;  %3975 = vmatpush1.bf16.msra.mxu0 %v3974_v63  ;;  %vm1276_vm8 = vmand %vm5144_vm11, %vm4977_vm13  ;;  %vm5241_vm11 = vcmp.ge.s32.totalorder %v603_v17, 1  ;;  %vm5245_vm15 = vcmp.le.s32.totalorder %v595_v12, 30 }
  0xe9   : > { %v1226_v48 = vrot.slane %v1210_v29, 3  ;;  %v1227_v2 = vrot.slane %v1211_v33, 3  ;;  %vm7130_vm6 = vmmov %vm7129_vm2 }
  0xea   : > { %v5208_v3 = vpop.permute.xlu1 %1179  ;;  %v1178_v43 = vpop.permute.xlu0 %1177  ;;  %vm1277_vm13 = vmand %vm5159_vm12, %vm4994_vm10  ;;  %vm5255_vm10 = vcmp.le.s32.totalorder %v596_v10, 30 }
  0xeb   : > { %1242 = vst [vmem:[#allocation2 + $0x90] sm:$0xe0] %v1226_v48  ;;  %1243 = vst [vmem:[#allocation2 + $0x98] sm:$0xe0] %v1227_v2  ;;  %v1185_v24 = vsel %vm7127_vm14, %v1178_v43, %v5208_v3  ;;  %v1186_v34 = vsel %vm7128_vm9, %v1176_v58, %v1178_v43  ;;  %vm5272_vm14 = vcmp.ge.s32.totalorder %v595_v12, 1  ;;  %vm5276_vm9 = vcmp.ge.s32.totalorder %v596_v10, 1 }
  0xec   : > { %v1212_v7 = vsel %vm5159_vm12, %v1186_v34, 0.0  ;;  %v1213_v9 = vsel %vm5169_vm1, %v1185_v24, 0.0  ;;  %vm1278_vm4 = vmand %vm5169_vm1, %vm5010_vm5 }
  0xed   : > { %v1228_v50 = vrot.slane %v1212_v7, 3  ;;  %v1229_v60 = vrot.slane %v1213_v9, 3  ;;  %vm7139_vm5 = vmmov %vm7129_vm2 }
  0xee   : > { %v1257_v20 = vpop.permute.xlu1 %1256  ;;  %v1255_v25 = vpop.permute.xlu0 %1254  ;;  %vm7140_vm12 = vmmov %vm7129_vm2 }
  0xef   : > { %1244 = vst [vmem:[#allocation2 + $0xa0] sm:$0xe0] %v1228_v50  ;;  %1245 = vst [vmem:[#allocation2 + $0xa8] sm:$0xe0] %v1229_v60  ;;  %v1268_v15 = vsel %vm7129_vm2, %v1255_v25, %v1257_v20  ;;  %v1269_v59 = vsel %vm7130_vm6, %v4921_v52, %v1255_v25  ;;  %vm7149_vm2 = vcmp.lt.s32.totalorder %v4703_v13, 31 }
  0xf0   : > { %v1299_v36 = vsel %vm1275_vm7, %v1269_v59, 0.0  ;;  %v1300_v18 = vsel %vm1276_vm8, %v1268_v15, 0.0  ;;  %vm826_vm1 = vmand %vm5241_vm11, %vm5245_vm15  ;;  %vm5280_vm7 = vcmp.le.s32.totalorder %v603_v17, 30  ;;  %vm5284_vm8 = vcmp.le.s32.totalorder %v604_v30, 30 }
  0xf1   : > { %1307 = vst [vmem:[#allocation2 + $0xd0] sm:$0x7] %v1299_v36  ;;  %1308 = vst [vmem:[#allocation2 + $0xd8] sm:$0x7] %v1300_v18 }
  0xf2   : > { %v5249_v39 = vpop.permute.xlu1 %1260  ;;  %v1259_v31 = vpop.permute.xlu0 %1258  ;;  %vm827_vm0 = vmand %vm5251_vm3, %vm5255_vm10  ;;  %v1332_v41 = vld [vmem:[#allocation2 + $0x98] sm:$0xff]  ;;  %v1331_v29 = vld [vmem:[#allocation2 + $0x90] sm:$0xff] }
  0xf3   : > { %v1266_v32 = vsel %vm7139_vm5, %v1259_v31, %v5249_v39  ;;  %v1267_v38 = vsel %vm7140_vm12, %v1257_v20, %v1259_v31  ;;  %vm7150_vm6 = vmmov %vm7149_vm2  ;;  %vm7153_vm12 = vcmp.lt.s32.totalorder %v4703_v13, 127 }
  0xf4   : > { %v1301_v21 = vsel %vm1277_vm13, %v1267_v38, 0.0  ;;  %v1302_v61 = vsel %vm1278_vm4, %v1266_v32, 0.0  ;;  %vm7151_vm13 = vcmp.lt.s32.totalorder %v4703_v13, 32  ;;  %vm1109_vm5 = vmand %vm5280_vm7, %vm5272_vm14 }
  0xf5   : > { %1309 = vst [vmem:[#allocation2 + $0xe0] sm:$0x7] %v1301_v21  ;;  %1310 = vst [vmem:[#allocation2 + $0xe8] sm:$0x7] %v1302_v61 }
  0xf6   : > { %v808_v42 = vpop.permute.xlu1 %807  ;;  %v727_v1 = vpop.permute.xlu0 %726  ;;  %vm7152_vm4 = vmmov %vm7151_vm13  ;;  %v1334_v20 = vld [vmem:[#allocation2 + $0xa8] sm:$0xff]  ;;  %v1333_v25 = vld [vmem:[#allocation2 + $0xa0] sm:$0xff] }
  0xf7   : > { %v812_v63 = vsel %vm7149_vm2, %v808_v42, %v4801_v46  ;;  %v813_v58 = vsel %vm7150_vm6, %v5041_v8, %v808_v42  ;;  %v731_v6 = vsel %vm7151_vm13, %v727_v1, %v4803_v47  ;;  %v732_v19 = vsel %vm7152_vm4, %v4973_v16, %v727_v1  ;;  %vm1110_vm6 = vmand %vm5284_vm8, %vm5276_vm9 }
  0xf8   : > { %v850_v46 = vsel %vm826_vm1, %v813_v58, 0.0  ;;  %v851_v33 = vsel %vm827_vm0, %v812_v63, 0.0  ;;  %v761_v8 = vsel %vm5241_vm11, %v732_v19, 0.0  ;;  %v762_v48 = vsel %vm5251_vm3, %v731_v6, 0.0  ;;  %v1340_v47 = vld [vmem:[#allocation2 + $0xd8] sm:$0x7]  ;;  %vm7154_vm1 = vmmov %vm7153_vm12 }
  0xf9   : > { %v866_v2 = vrot.slane %v850_v46, 2  ;;  %v867_v49 = vrot.slane %v851_v33, 2  ;;  %v777_v43 = vrot.slane %v761_v8, 5  ;;  %v778_v16 = vrot.slane %v762_v48, 5  ;;  %v1339_v53 = vld [vmem:[#allocation2 + $0xd0] sm:$0x7]  ;;  %vm680_vm4 = vmand %vm5241_vm11, %vm5272_vm14 }
  0xfa   : > { %v1004_v24 = vpop.permute.xlu1 %1003  ;;  %v905_v34 = vpop.permute.xlu0 %904  ;;  %v3966_v7 = vpack.c.bf16 %v1340_v47, %v1332_v41  ;;  %v3969_v9 = vpack.c.bf16 %v1339_v53, %v1331_v29  ;;  %vm7155_vm0 = vcmp.lt.s32.totalorder %v4703_v13, 1  ;;  %vm7157_vm13 = vnez %v7091_v27  ;;  %vm1280_vm11 = vmand %vm5284_vm8, %vm5255_vm10 }
  0xfb   : > { %882 = vst [vmem:[#allocation2 + $0x70] ss:$-60 sps:$4 sm:$0xc1] %v866_v2   ;;  %883 = vst [vmem:[#allocation2 + $0x78] ss:$-60 sps:$4 sm:$0xc1] %v867_v49   ;;  %v1006_v50 = vsel %vm7153_vm12, %v5102_v35, %v1004_v24  ;;  %v1013_v60 = vsel %vm7154_vm1, %v1004_v24, %v4817_v56  ;;  %v909_v12 = vsel %vm7155_vm0, %v905_v34, %v4819_v57 }
  0xfc   : > { %793 = vst [vmem:[#allocation2 + $0x30] sm:$0x38] %v777_v43  ;;  %794 = vst [vmem:[#allocation2 + $0x38] sm:$0x38] %v778_v16  ;;  %v1036_v35 = vsel %vm5245_vm15, %v1006_v50, 0.0  ;;  %v1037_v56 = vsel %vm5255_vm10, %v1013_v60, 0.0  ;;  %3968 = vmatprep.subr.msk.bf16.mxu1 %vm7157_vm13, %v3966_v7 }
  0xfd   : > { %vm7156_vm2 = vmmov %vm7155_vm0  ;;  %v940_v10 = vsel %vm5276_vm9, %v909_v12, 0.0  ;;  %v1052_v30 = vrot.slane %v1036_v35, 1  ;;  %v1053_v15 = vrot.slane %v1037_v56, 1  ;;  %3971 = vmatpush1.bf16.msk.msra.mxu1 %vm7157_vm13, %v3969_v9  ;;  %v1341_v18 = vld [vmem:[#allocation2 + $0xe0] sm:$0x7]  ;;  %vm7158_vm1 = vcmp.lt.s32.totalorder %v4703_v13, 97 }
  0xfe   : > { %v910_v17 = vsel %vm7156_vm2, %v5082_v55, %v905_v34  ;;  %v1342_v55 = vld [vmem:[#allocation2 + $0xe8] sm:$0x7]  ;;  %v956_v36 = vrot.slane %v940_v10, 7  ;;  %v1093_v31 = vpop.permute.xlu1 %1092  ;;  %v662_v32 = vpop.permute.xlu0 %661  ;;  %v3979_v21 = vpack.c.bf16 %v1341_v18, %v1333_v25  ;;  %vm7159_vm0 = vmmov %vm7158_vm1  ;;  %vm7160_vm2 = vcmp.lt.s32.totalorder %v4703_v13, 33 }
  0xff   : > { %v939_v57 = vsel %vm5272_vm14, %v910_v17, 0.0  ;;  %v3976_v38 = vpack.c.bf16 %v1342_v55, %v1334_v20  ;;  %1068 = vst [vmem:[#allocation2 + $0xb0] ss:$-60 sps:$4 sm:$0x83] %v1052_v30   ;;  %v1095_v61 = vsel %vm7158_vm1, %v5186_v26, %v1093_v31  ;;  %v1102_v42 = vsel %vm7159_vm0, %v1093_v31, %v4877_v22  ;;  %vm7161_vm12 = vmmov %vm7160_vm2  ;;  %v1802_v55 = vld [vmem:[%s7026_s3 + $0x208] sm:$0xff]  ;;  %v1804_v30 = vld [vmem:[%s7026_s3 + $0x218] sm:$0xff] }
 0x100   : > { %v955_v59 = vrot.slane %v939_v57, 7  ;;  %1069 = vst [vmem:[#allocation2 + $0xb8] ss:$-60 sps:$4 sm:$0x83] %v1053_v15   ;;  %972 = vst [vmem:[#allocation2 + $0x78] sm:$0xe] %v956_v36  ;;  %v666_v1 = vsel %vm7160_vm2, %v662_v32, %v4845_v5  ;;  %v667_v63 = vsel %vm7161_vm12, %v5140_v0, %v662_v32 }
 0x101   : > { %v1133_v58 = vsel %vm1109_vm5, %v1095_v61, 0.0  ;;  %v1134_v22 = vsel %vm1110_vm6, %v1102_v42, 0.0  ;;  %v704_v5 = vsel %vm680_vm4, %v667_v63, 0.0  ;;  %vm7162_vm12 = vmand %vm5251_vm3, %vm5276_vm9  ;;  %3978 = vmatprep.subr.msk.bf16.mxu0 %vm7157_vm13, %v3976_v38  ;;  %vm7163_vm5 = vcmask 220160   ;;  %v1801_v15 = vld [vmem:[%s7026_s3 + $0x200] sm:$0xff]  ;;  %v1803_v36 = vld [vmem:[%s7026_s3 + $0x210] sm:$0xff] }
 0x102   : > { %971 = vst [vmem:[#allocation2 + $0x70] sm:$0xe] %v955_v59  ;;  %v705_v0 = vsel %vm7162_vm12, %v666_v1, 0.0  ;;  %3762 = vmatmul.mubr.msk.f32.vlgmr.msra.gmra.mrb[0].mxu1 %vm7163_vm5, %v5035_v23  ;;  %vm1279_vm6 = vmand %vm5280_vm7, %vm5245_vm15  ;;  %v1149_v26 = vrot.slane %v1133_v58, 6  ;;  %v1150_v4 = vrot.slane %v1134_v22, 6  ;;  %3981 = vmatpush1.bf16.msk.msra.mxu0 %vm7157_vm13, %v3979_v21  ;;  %v1263_v37 = vpop.permute.xlu1 %1262  ;;  %v1182_v44 = vpop.permute.xlu0 %1181  ;;  %vm7164_vm3 = vcmp.lt.s32.totalorder %v4703_v13, 95 }
 0x103   : > { %712 = vst [vmem:[#allocation2 + $0x30] sm:$0x7] %v704_v5  ;;  %713 = vst [vmem:[#allocation2 + $0x38] sm:$0x7] %v705_v0  ;;  %1658 = vmatprep.mubr.f32.mxu1 %v4483_v11  ;;  %v1265_v45 = vsel %vm7164_vm3, %v5249_v39, %v1263_v37  ;;  %vm7166_vm9 = vcmp.lt.s32.totalorder %v4703_v13, 96  ;;  %v4056_v59 = vpack.c.bf16 %v1804_v30, %v1802_v55  ;;  %v1806_v18 = vld [vmem:[%s7026_s3 + $0x228] sm:$0xff] }
 0x104   : > { %1165 = vst [vmem:[#allocation2 + $0xb0] sm:$0x1c] %v1149_v26  ;;  %1166 = vst [vmem:[#allocation2 + $0xb8] sm:$0x1c] %v1150_v4  ;;  %v1184_v54 = vsel %vm7166_vm9, %v5208_v3, %v1182_v44  ;;  %v1303_v41 = vsel %vm1279_vm6, %v1265_v45, 0.0  ;;  %v1808_v31 = vld [vmem:[%s7026_s3 + $0x238] sm:$0xff]  ;;  %v4058_v32 = vpack.c.bf16 %v1803_v36, %v1801_v15 }
 0x105   : > { %vm7165_vm14 = vmmov %vm7164_vm3  ;;  %v1214_v39 = vsel %vm5280_vm7, %v1184_v54, 0.0  ;;  %1311 = vst [vmem:[#allocation2 + $0xf0] sm:$0x7] %v1303_v41  ;;  %v4060_v38 = vpack.c.bf16 %v1808_v31, %v1806_v18  ;;  %v1805_v21 = vld [vmem:[%s7026_s3 + $0x220] sm:$0xff]  ;;  %v1807_v61 = vld [vmem:[%s7026_s3 + $0x230] sm:$0xff]  ;;  %4057 = vmatprep.subr.bf16.mxu0 %v4056_v59  ;;  %vm7173_vm1 = vcmp.lt.s32.totalorder %v4703_v13, 127 }
 0x106   : > { %v1272_v6 = vsel %vm7165_vm14, %v1263_v37, %v4919_v51  ;;  %vm7167_vm10 = vmmov %vm7166_vm9  ;;  %v1230_v3 = vrot.slane %v1214_v39, 3  ;;  %v1810_v42 = vld [vmem:[%s7026_s3 + $0x248] sm:$0xff]  ;;  %v1812_v1 = vld [vmem:[%s7026_s3 + $0x258] sm:$0xff]  ;;  %v4062_v58 = vpack.c.bf16 %v1807_v61, %v1805_v21 }
 0x107   : > { %v1191_v19 = vsel %vm7167_vm10, %v1182_v44, %v4895_v40  ;;  %v1304_v29 = vsel %vm1280_vm11, %v1272_v6, 0.0  ;;  %vm7168_vm4 = vmmov %vm7163_vm5  ;;  %v1328_v46 = vld [vmem:[#allocation2 + $0x78] sm:$0xff]  ;;  %v4064_v5 = vpack.c.bf16 %v1812_v1, %v1810_v42  ;;  %v1809_v0 = vld [vmem:[%s7026_s3 + $0x240] sm:$0xff] }
 0x108   : > { %v1215_v51 = vsel %vm5284_vm8, %v1191_v19, 0.0  ;;  %3765 = vmatmul.mubr.msk.f32.vlgmr.msra.gmra.mrb[2].mxu0 %vm7168_vm4, %v5035_v23  ;;  %1312 = vst [vmem:[#allocation2 + $0xf8] sm:$0x7] %v1304_v29  ;;  %1246 = vst [vmem:[#allocation2 + $0xb0] sm:$0xe0] %v1230_v3  ;;  %v1811_v26 = vld [vmem:[%s7026_s3 + $0x250] sm:$0xff] }
 0x109   : > { %v1231_v40 = vrot.slane %v1215_v51, 3  ;;  %v1327_v8 = vld [vmem:[#allocation2 + $0x70] sm:$0xff]  ;;  %vm7169_vm15 = vmmov %vm7168_vm4  ;;  %4059 = vmatpush1.bf16.msra.mxu0 %v4058_v32  ;;  %v1814_v4 = vld [vmem:[%s7026_s3 + $0x268] sm:$0xff]  ;;  %v4066_v44 = vpack.c.bf16 %v1811_v26, %v1809_v0 }
 0x10a   : > { %v1320_v52 = vld [vmem:[#allocation2 + $0x38] sm:$0xff]  ;;  %v1319_v33 = vld [vmem:[#allocation2 + $0x30] sm:$0xff]  ;;  %4061 = vmatprep.subr.bf16.mxu0 %v4060_v38  ;;  %v1813_v6 = vld [vmem:[%s7026_s3 + $0x260] sm:$0xff] }
 0x10b   : > { %1247 = vst [vmem:[#allocation2 + $0xb8] sm:$0xe0] %v1231_v40  ;;  %v3982_v48 = vpack.c.bf16 %v1328_v46, %v1320_v52  ;;  %v3984_v47 = vpack.c.bf16 %v1327_v8, %v1319_v33  ;;  %v1816_v37 = vld [vmem:[%s7026_s3 + $0x278] sm:$0xff]  ;;  %v1815_v54 = vld [vmem:[%s7026_s3 + $0x270] sm:$0xff]  ;;  %v1818_v19 = vld [vmem:[%s7026_s3 + $0x288] sm:$0xff] }
 0x10c   : > { %v1343_v49 = vld [vmem:[#allocation2 + $0xf0] sm:$0x7]  ;;  %v4068_v45 = vpack.c.bf16 %v1816_v37, %v1814_v4  ;;  %v1820_v41 = vld [vmem:[%s7026_s3 + $0x298] sm:$0xff]  ;;  %v4070_v29 = vpack.c.bf16 %v1815_v54, %v1813_v6  ;;  %v1817_v51 = vld [vmem:[%s7026_s3 + $0x280] sm:$0xff] }
 0x10d   : > { %3983 = vmatprep.subr.bf16.mxu1 %v3982_v48  ;;  %4063 = vmatpush1.bf16.msra.mxu0 %v4062_v58  ;;  %v4072_v39 = vpack.c.bf16 %v1820_v41, %v1818_v19  ;;  %v1819_v3 = vld [vmem:[%s7026_s3 + $0x290] sm:$0xff]  ;;  %v1822_v40 = vld [vmem:[%s7026_s3 + $0x2a8] sm:$0xff]  ;;  %v1824_v46 = vld [vmem:[%s7026_s3 + $0x2b8] sm:$0xff] }
 0x10e   : > { %3985 = vmatpush1.bf16.msra.mxu1 %v3984_v47  ;;  %4065 = vmatprep.subr.bf16.mxu0 %v4064_v5  ;;  %v4074_v52 = vpack.c.bf16 %v1819_v3, %v1817_v51  ;;  %v4076_v33 = vpack.c.bf16 %v1824_v46, %v1822_v40  ;;  %v1821_v8 = vld [vmem:[%s7026_s3 + $0x2a0] sm:$0xff]  ;;  %v1823_v48 = vld [vmem:[%s7026_s3 + $0x2b0] sm:$0xff]  ;;  %v1826_v47 = vld [vmem:[%s7026_s3 + $0x2c8] sm:$0xff] }
 0x10f   : > { %v1344_v28 = vld [vmem:[#allocation2 + $0xf8] sm:$0x7]  ;;  %v1335_v2 = vld [vmem:[#allocation2 + $0xb0] sm:$0xff]  ;;  %v1833_v59 = vld [vmem:[%s7026_s3 + $0x300] sm:$0xff] }
 0x110   : > { %v3989_v16 = vpack.c.bf16 %v1343_v49, %v1335_v2  ;;  %v1825_v49 = vld [vmem:[%s7026_s3 + $0x2c0] sm:$0xff]  ;;  %v1836_v55 = vld [vmem:[%s7026_s3 + $0x318] sm:$0xff]  ;;  %v1835_v36 = vld [vmem:[%s7026_s3 + $0x310] sm:$0xff] }
 0x111   : > { %4067 = vmatpush1.bf16.msra.mxu0 %v4066_v44  ;;  %v1838_v18 = vld [vmem:[%s7026_s3 + $0x328] sm:$0xff]  ;;  %v1840_v31 = vld [vmem:[%s7026_s3 + $0x338] sm:$0xff]  ;;  %v4090_v32 = vpack.c.bf16 %v1835_v36, %v1833_v59  ;;  %v1837_v21 = vld [vmem:[%s7026_s3 + $0x320] sm:$0xff] }
 0x112   : > { %v1336_v62 = vld [vmem:[#allocation2 + $0xb8] sm:$0xff]  ;;  %4069 = vmatprep.subr.bf16.mxu0 %v4068_v45  ;;  %v4092_v38 = vpack.c.bf16 %v1840_v31, %v1838_v18  ;;  %v1839_v61 = vld [vmem:[%s7026_s3 + $0x330] sm:$0xff]  ;;  %v1842_v42 = vld [vmem:[%s7026_s3 + $0x348] sm:$0xff] }
 0x113   : > { %v3986_v43 = vpack.c.bf16 %v1344_v28, %v1336_v62  ;;  %v5429_v7 = vpop.permute.xlu0 %1349  ;;  %v1828_v28 = vld [vmem:[%s7026_s3 + $0x2d8] sm:$0xff]  ;;  %v4078_v62 = vpack.c.bf16 %v1823_v48, %v1821_v8  ;;  %v4094_v58 = vpack.c.bf16 %v1839_v61, %v1837_v21  ;;  %v1841_v0 = vld [vmem:[%s7026_s3 + $0x340] sm:$0xff]  ;;  %v1843_v26 = vld [vmem:[%s7026_s3 + $0x350] sm:$0xff] }
 0x114   : > { %v4080_v2 = vpack.c.bf16 %v1828_v28, %v1826_v47  ;;  %v1844_v1 = vld [vmem:[%s7026_s3 + $0x358] sm:$0xff]  ;;  %v1846_v4 = vld [vmem:[%s7026_s3 + $0x368] sm:$0xff]  ;;  %v4098_v44 = vpack.c.bf16 %v1843_v26, %v1841_v0  ;;  %v1845_v6 = vld [vmem:[%s7026_s3 + $0x360] sm:$0xff] }
 0x115   : > { %3988 = vmatprep.subr.msk.bf16.mxu1 %vm7157_vm13, %v3986_v43  ;;  %4071 = vmatpush1.bf16.msra.mxu0 %v4070_v29  ;;  %v1827_v43 = vld [vmem:[%s7026_s3 + $0x2d0] sm:$0xff]  ;;  %v4096_v5 = vpack.c.bf16 %v1844_v1, %v1842_v42  ;;  %v1848_v37 = vld [vmem:[%s7026_s3 + $0x378] sm:$0xff]  ;;  %v1850_v19 = vld [vmem:[%s7026_s3 + $0x388] sm:$0xff] }
 0x116   : > { %3991 = vmatpush1.bf16.msk.msra.mxu1 %vm7157_vm13, %v3989_v16  ;;  %4073 = vmatprep.subr.bf16.mxu0 %v4072_v39  ;;  %v1830_v16 = vld [vmem:[%s7026_s3 + $0x2e8] sm:$0xff]  ;;  %v4100_v45 = vpack.c.bf16 %v1848_v37, %v1846_v4  ;;  %v1847_v54 = vld [vmem:[%s7026_s3 + $0x370] sm:$0xff]  ;;  %v1852_v41 = vld [vmem:[%s7026_s3 + $0x398] sm:$0xff] }
 0x117   : > { %v4102_v29 = vpack.c.bf16 %v1847_v54, %v1845_v6  ;;  %v4104_v39 = vpack.c.bf16 %v1852_v41, %v1850_v19  ;;  %v1849_v51 = vld [vmem:[%s7026_s3 + $0x380] sm:$0xff]  ;;  %v1851_v3 = vld [vmem:[%s7026_s3 + $0x390] sm:$0xff]  ;;  %v1854_v40 = vld [vmem:[%s7026_s3 + $0x3a8] sm:$0xff] }
 0x118   : > { %v1856_v46 = vld [vmem:[%s7026_s3 + $0x3b8] sm:$0xff]  ;;  %v1853_v8 = vld [vmem:[%s7026_s3 + $0x3a0] sm:$0xff]  ;;  %v1855_v48 = vld [vmem:[%s7026_s3 + $0x3b0] sm:$0xff] }
 0x119   : > { %3768 = vmatmul.mubr.msk.f32.vlgmr.msra.gmra.mrb[2].mxu1 %vm7169_vm15, %v5035_v23  ;;  %4075 = vmatpush1.bf16.msra.mxu0 %v4074_v52  ;;  %v4106_v52 = vpack.c.bf16 %v1851_v3, %v1849_v51  ;;  %v4110_v47 = vpack.c.bf16 %v1855_v48, %v1853_v8  ;;  %v1858_v28 = vld [vmem:[%s7026_s3 + $0x3c8] sm:$0xff]  ;;  %vm7170_vm7 = vmmov %vm7166_vm9  ;;  %v1740_v0 = vld [vmem:[%s7026_s3 + $0x18] sm:$0xff] }
 0x11a   : > { %4077 = vmatprep.subr.bf16.mxu0 %v4076_v33  ;;  %v4108_v33 = vpack.c.bf16 %v1856_v46, %v1854_v40  ;;  %vm7171_vm8 = vmmov %vm7170_vm7  ;;  %v1737_v4 = vld [vmem:[%s7026_s3] sm:$0xff]  ;;  %v1739_v37 = vld [vmem:[%s7026_s3 + $0x10] sm:$0xff] }
 0x11b   : > { %vm7172_vm13 = vmmov %vm7170_vm7  ;;  %v1742_v6 = vld [vmem:[%s7026_s3 + $0x28] sm:$0xff]  ;;  %v1744_v54 = vld [vmem:[%s7026_s3 + $0x38] sm:$0xff] }
 0x11c   : > { %v3996_v19 = vpack.c.bf16 %v1744_v54, %v1742_v6  ;;  %v1741_v41 = vld [vmem:[%s7026_s3 + $0x20] sm:$0xff]  ;;  %v1746_v51 = vld [vmem:[%s7026_s3 + $0x48] sm:$0xff]  ;;  %v1748_v3 = vld [vmem:[%s7026_s3 + $0x58] sm:$0xff] }
 0x11d   : > { %4079 = vmatpush1.bf16.msra.mxu0 %v4078_v62  ;;  %v1860_v62 = vld [vmem:[%s7026_s3 + $0x3d8] sm:$0xff]  ;;  %v4000_v40 = vpack.c.bf16 %v1748_v3, %v1746_v51  ;;  %v1745_v46 = vld [vmem:[%s7026_s3 + $0x40] sm:$0xff]  ;;  %v1750_v8 = vld [vmem:[%s7026_s3 + $0x68] sm:$0xff] }
 0x11e   : > { %4081 = vmatprep.subr.bf16.mxu0 %v4080_v2  ;;  %v4112_v2 = vpack.c.bf16 %v1860_v62, %v1858_v28  ;;  %v1752_v48 = vld [vmem:[%s7026_s3 + $0x78] sm:$0xff]  ;;  %v1749_v28 = vld [vmem:[%s7026_s3 + $0x60] sm:$0xff]  ;;  %v1751_v62 = vld [vmem:[%s7026_s3 + $0x70] sm:$0xff] }
 0x11f   : > { %v1769_v6 = vld [vmem:[%s7026_s3 + $0x100] sm:$0xff]  ;;  %v1771_v54 = vld [vmem:[%s7026_s3 + $0x110] sm:$0xff]  ;;  %vm7174_vm0 = vmmov %vm7173_vm1 }
 0x120   : > { %v1773_v51 = vld [vmem:[%s7026_s3 + $0x120] sm:$0xff]  ;;  %v1775_v3 = vld [vmem:[%s7026_s3 + $0x130] sm:$0xff]  ;;  %vm7175_vm2 = vmmov %vm7170_vm7 }
 0x121   : > { %vm7176_vm12 = vmmov %vm7175_vm2 }
 0x122   : > { %vm7177_vm5 = vmmov %vm7175_vm2 }
 0x123   : > { %vm7178_vm6 = vmmov %vm7175_vm2 }
 0x124   : > { %vm7179_vm11 = vmmov %vm7175_vm2 }
 0x125   : > { %vm7180_vm3 = vmmov %vm7174_vm0 }
 0x126   : > { %vm7181_vm14 = vmmov %vm7174_vm0 }
 0x127   : > { %vm7182_vm9 = vmmov %vm7174_vm0 }
 0x128   : > { %vm7183_vm10 = vmmov %vm7174_vm0 }
 0x129   : > { %vm7184_vm4 = vmmov %vm7174_vm0 }
 0x12a   : > { %vm7185_vm15 = vmmov %vm7174_vm0 }
 0x196   : > { %v5425_v53 = vpop.f32.mrb[0].mxu0 }
 0x197   : > { %v5427_v24 = vpop.f32.mrb[1].mxu0  ;;  %v5689_v1 = vadd.f32 %v5425_v53, %v5429_v7 }
 0x1d5   : > { %v1518_v34 = vpop.f32.mrb[0].mxu1 }
 0x1d6   : > { %v1520_v9 = vpop.f32.mrb[1].mxu1  ;;  %v5442_v20 = vadd.f32 %v1518_v34, %v5429_v7  ;;  %v1832_v34 = vld [vmem:[%s7026_s3 + $0x2f8] sm:$0xff] }
 0x1d7   : > { %v5432_v50 = vadd.f32 %v1520_v9, %v5429_v7  ;;  %v4082_v9 = vpack.c.bf16 %v1827_v43, %v1825_v49  ;;  %v1857_v49 = vld [vmem:[%s7026_s3 + $0x3c0] sm:$0xff]  ;;  %v1859_v43 = vld [vmem:[%s7026_s3 + $0x3d0] sm:$0xff] }
 0x1d8   : > { %v1667_v57 = vmax.f32 %v5442_v20, 0.0 }
 0x1d9   : > { %v1668_v12 = vmax.f32 %v5432_v50, 0.0  ;;  %4083 = vmatpush1.bf16.msra.mxu0 %v4082_v9  ;;  %v1864_v9 = vld [vmem:[%s7026_s3 + $0x3f8] sm:$0xff] }
 0x1db   : > { %v1589_v60 = vpop.f32.mrb[2].mxu0 }
 0x1dc   : > { %v5436_v27 = vadd.f32 %v1589_v60, %v5429_v7  ;;  %v1591_v17 = vpop.f32.mrb[3].mxu0  ;;  %v4084_v60 = vpack.c.bf16 %v1832_v34, %v1830_v16  ;;  %v4114_v16 = vpack.c.bf16 %v1859_v43, %v1857_v49  ;;  %v1862_v34 = vld [vmem:[%s7026_s3 + $0x3e8] sm:$0xff]  ;;  %v1756_v49 = vld [vmem:[%s7026_s3 + $0x98] sm:$0xff]  ;;  %v4006_v43 = vpack.c.bf16 %v1751_v62, %v1749_v28 }
 0x1dd   : > { %v5439_v23 = vadd.f32 %v1591_v17, %v5429_v7  ;;  %v1829_v17 = vld [vmem:[%s7026_s3 + $0x2e0] sm:$0xff]  ;;  %v1784_v28 = vld [vmem:[%s7026_s3 + $0x178] sm:$0xff] }
 0x1de   : > { %v1669_v25 = vmax.f32 %v5436_v27, 0.0  ;;  %4085 = vmatprep.subr.bf16.mxu0 %v4084_v60  ;;  %v4116_v60 = vpack.c.bf16 %v1864_v9, %v1862_v34  ;;  %v1665_v27 = vmax.f32 %v5689_v1, 0.0  ;;  %v1753_v34 = vld [vmem:[%s7026_s3 + $0x80] sm:$0xff]  ;;  %v1755_v9 = vld [vmem:[%s7026_s3 + $0x90] sm:$0xff] }
 0x1df   : > { %v1670_v56 = vmax.f32 %v5439_v23, 0.0 }
 0x1e0   : > { %v4413_v35 = vpack.i.bf16 %v1669_v25, %v1668_v12 }
 0x1e1   : > { %v4418_v10 = vpack.i.bf16 %v1667_v57, %v1670_v56 }
 0x1e2   : > { %4414 = vrot.lane.b32.xlu1 %v4413_v35, %s4481_s25  ;;  %v1831_v35 = vld [vmem:[%s7026_s3 + $0x2f0] sm:$0xff] }
 0x1e3   : > { %v4086_v30 = vpack.c.bf16 %v1831_v35, %v1829_v17  ;;  %v1861_v17 = vld [vmem:[%s7026_s3 + $0x3e0] sm:$0xff]  ;;  %v1863_v35 = vld [vmem:[%s7026_s3 + $0x3f0] sm:$0xff] }
 0x1e5   : > { %4087 = vmatpush1.bf16.msra.mxu0 %v4086_v30 }
 0x1e6   : > { %4419 = vrot.lane.b32.xlu1 %v4418_v10, %s4481_s25  ;;  %v1834_v10 = vld [vmem:[%s7026_s3 + $0x308] sm:$0xff] }
 0x1e7   : > { %v4088_v15 = vpack.c.bf16 %v1836_v55, %v1834_v10  ;;  %v4118_v55 = vpack.c.bf16 %v1863_v35, %v1861_v17  ;;  %v1760_v17 = vld [vmem:[%s7026_s3 + $0xb8] sm:$0xff]  ;;  %v4010_v35 = vpack.c.bf16 %v1755_v9, %v1753_v34 }
 0x1e8   : > { %v1788_v34 = vld [vmem:[%s7026_s3 + $0x198] sm:$0xff] }
 0x1e9   : > { %4089 = vmatprep.subr.bf16.mxu0 %v4088_v15 }
 0x1ea   : > { %4091 = vmatpush1.bf16.msra.mxu0 %v4090_v32 }
 0x1eb   : > { %4093 = vmatprep.subr.bf16.mxu0 %v4092_v38 }
 0x1ec   : > { %v5487_v63 = vpop.f32.mrb[2].mxu1 }
 0x1ed   : > { %v5489_v22 = vpop.f32.mrb[3].mxu1  ;;  %v5661_v32 = vadd.f32 %v5487_v63, %v5429_v7 }
 0x1ee   : > { %4095 = vmatpush1.bf16.msra.mxu0 %v4094_v58  ;;  %v5665_v38 = vadd.f32 %v5489_v22, %v5429_v7 }
 0x1ef   : > { %4097 = vmatprep.subr.bf16.mxu0 %v4096_v5  ;;  %v1671_v58 = vmax.f32 %v5661_v32, 0.0  ;;  %v1878_v32 = vld [vmem:[%s7026_s3 + $0x468] sm:$0xff] }
 0x1f0   : > { %v1672_v5 = vmax.f32 %v5665_v38, 0.0  ;;  %v1879_v38 = vld [vmem:[%s7026_s3 + $0x470] sm:$0xff] }
 0x1f2   : > { %4099 = vmatpush1.bf16.msra.mxu0 %v4098_v44  ;;  %v4428_v53 = vpack.i.bf16 %v1672_v5, %v1671_v58 }
 0x1f3   : > { %4101 = vmatprep.subr.bf16.mxu0 %v4100_v45  ;;  %v3994_v45 = vpack.c.bf16 %v1739_v37, %v1737_v4  ;;  %v1770_v4 = vld [vmem:[%s7026_s3 + $0x108] sm:$0xff]  ;;  %v1772_v37 = vld [vmem:[%s7026_s3 + $0x118] sm:$0xff] }
 0x1f6   : > { %4103 = vmatpush1.bf16.msra.mxu0 %v4102_v29  ;;  %v1743_v29 = vld [vmem:[%s7026_s3 + $0x30] sm:$0xff] }
 0x1f7   : > { %4105 = vmatprep.subr.bf16.mxu0 %v4104_v39  ;;  %v3998_v39 = vpack.c.bf16 %v1743_v29, %v1741_v41  ;;  %v1776_v41 = vld [vmem:[%s7026_s3 + $0x138] sm:$0xff]  ;;  %v4026_v29 = vpack.c.bf16 %v1771_v54, %v1769_v6 }
 0x1f8   : > { %v1872_v54 = vld [vmem:[%s7026_s3 + $0x438] sm:$0xff] }
 0x1fa   : > { %4107 = vmatpush1.bf16.msra.mxu0 %v4106_v52  ;;  %v1747_v52 = vld [vmem:[%s7026_s3 + $0x50] sm:$0xff] }
 0x1fb   : > { %4109 = vmatprep.subr.bf16.mxu0 %v4108_v33  ;;  %v4002_v33 = vpack.c.bf16 %v1747_v52, %v1745_v46  ;;  %v1780_v46 = vld [vmem:[%s7026_s3 + $0x158] sm:$0xff]  ;;  %v4030_v52 = vpack.c.bf16 %v1775_v3, %v1773_v51 }
 0x1fe   : > { %4111 = vmatpush1.bf16.msra.mxu0 %v4110_v47  ;;  %v4004_v47 = vpack.c.bf16 %v1752_v48, %v1750_v8  ;;  %v1777_v8 = vld [vmem:[%s7026_s3 + $0x140] sm:$0xff]  ;;  %v1779_v48 = vld [vmem:[%s7026_s3 + $0x150] sm:$0xff] }
 0x1ff   : > { %4113 = vmatprep.subr.bf16.mxu0 %v4112_v2  ;;  %v1754_v2 = vld [vmem:[%s7026_s3 + $0x88] sm:$0xff]  ;;  %v4034_v62 = vpack.c.bf16 %v1779_v48, %v1777_v8  ;;  %v1799_v8 = vld [vmem:[%s7026_s3 + $0x1f0] sm:$0xff] }
 0x202   : > { %4115 = vmatpush1.bf16.msra.mxu0 %v4114_v16  ;;  %v4008_v16 = vpack.c.bf16 %v1756_v49, %v1754_v2  ;;  %v1781_v49 = vld [vmem:[%s7026_s3 + $0x160] sm:$0xff] }
 0x203   : > { %4117 = vmatprep.subr.bf16.mxu0 %v4116_v60  ;;  %v1758_v60 = vld [vmem:[%s7026_s3 + $0xa8] sm:$0xff] }
 0x206   : > { %4119 = vmatpush1.bf16.msra.mxu0 %v4118_v55  ;;  %v1757_v55 = vld [vmem:[%s7026_s3 + $0xa0] sm:$0xff] }
 0x254   : > { %v4415_v10 = vpop.permute.xlu1 %4414 }
 0x255   : > { %v4417_v30 = vunpack.i.h.bf16 %v4415_v10  ;;  %v4416_v15 = vunpack.i.l.bf16 %v4415_v10  ;;  %v4012_v10 = vpack.c.bf16 %v1760_v17, %v1758_v60  ;;  %v1785_v17 = vld [vmem:[%s7026_s3 + $0x180] sm:$0xff] }
 0x257   : > { %v1692_v36 = vsel %vm7170_vm7, %v4416_v15, %v4417_v30  ;;  %vm2310_vm7 = vcmp.lt.s32.totalorder %v4703_v13, 16 }
 0x258   : > { %v5653_v59 = vpop.permute.xlu1 %4419  ;;  %v5681_v63 = vmax.f32 %v1668_v12, %v1692_v36  ;;  %v5699_v12 = vadd.f32 %v5427_v24, %v5429_v7  ;;  %v1868_v24 = vld [vmem:[%s7026_s3 + $0x418] sm:$0xff] }
 0x259   : > { %v4422_v18 = vunpack.i.h.bf16 %v5653_v59  ;;  %v4421_v31 = vunpack.i.l.bf16 %v5653_v59  ;;  %v1764_v36 = vld [vmem:[%s7026_s3 + $0xd8] sm:$0xff] }
 0x25a   : > { %v1666_v20 = vmax.f32 %v5699_v12, 0.0  ;;  %v1884_v12 = vld [vmem:[%s7026_s3 + $0x498] sm:$0xff] }
 0x25b   : > { %v1691_v21 = vsel %vm7171_vm8, %v4417_v30, %v4421_v31  ;;  %v1693_v61 = vsel %vm7172_vm13, %v4422_v18, %v4416_v15  ;;  %v1759_v30 = vld [vmem:[%s7026_s3 + $0xb0] sm:$0xff]  ;;  %v1762_v15 = vld [vmem:[%s7026_s3 + $0xc8] sm:$0xff] }
 0x25c   : > { %v5677_v42 = vmax.f32 %v1667_v57, %v1693_v61  ;;  %v5685_v22 = vmax.f32 %v1669_v25, %v1691_v21  ;;  %v1866_v25 = vld [vmem:[%s7026_s3 + $0x408] sm:$0xff]  ;;  %v4438_v44 = vpack.i.bf16 %v1666_v20, %v1665_v27  ;;  %v4014_v21 = vpack.c.bf16 %v1759_v30, %v1757_v55  ;;  %v1792_v55 = vld [vmem:[%s7026_s3 + $0x1b8] sm:$0xff] }
 0x25d   : > { %v4120_v7 = vpack.c.bf16 %v1868_v24, %v1866_v25  ;;  %v1738_v57 = vld [vmem:[%s7026_s3 + $0x8] sm:$0xff]  ;;  %v4016_v61 = vpack.c.bf16 %v1764_v36, %v1762_v15  ;;  %v1768_v24 = vld [vmem:[%s7026_s3 + $0xf8] sm:$0xff]  ;;  %v1789_v36 = vld [vmem:[%s7026_s3 + $0x1a0] sm:$0xff] }
 0x25e   : > { %1709 = vrot.lane.b32.xlu1 %v5677_v42, %s4478_s2  ;;  %v4423_v50 = vpack.i.bf16 %v5685_v22, %v5681_v63  ;;  %v3992_v26 = vpack.c.bf16 %v1740_v0, %v1738_v57  ;;  %v1766_v25 = vld [vmem:[%s7026_s3 + $0xe8] sm:$0xff]  ;;  %v1765_v0 = vld [vmem:[%s7026_s3 + $0xe0] sm:$0xff] }
 0x25f   : > { %4121 = vmatprep.subr.bf16.mxu0 %v4120_v7  ;;  %v4020_v57 = vpack.c.bf16 %v1768_v24, %v1766_v25  ;;  %v1793_v24 = vld [vmem:[%s7026_s3 + $0x1c0] sm:$0xff] }
 0x260   : > { %4424 = vrot.lane.b32.xlu0 %v4423_v50, %s4478_s2  ;;  %3993 = vmatprep.subr.bf16.mxu1 %v3992_v26  ;;  %v1761_v50 = vld [vmem:[%s7026_s3 + $0xc0] sm:$0xff]  ;;  %v1767_v26 = vld [vmem:[%s7026_s3 + $0xf0] sm:$0xff] }
 0x261   : > { %3995 = vmatpush1.bf16.msra.mxu1 %v3994_v45  ;;  %v4024_v45 = vpack.c.bf16 %v1772_v37, %v1770_v4  ;;  %v1865_v37 = vld [vmem:[%s7026_s3 + $0x400] sm:$0xff] }
 0x262   : > { %3997 = vmatprep.subr.bf16.mxu1 %v3996_v19  ;;  %v1774_v19 = vld [vmem:[%s7026_s3 + $0x128] sm:$0xff] }
 0x264   : > { %4429 = vrot.lane.b32.xlu0 %v4428_v53, %s4481_s25  ;;  %v1763_v53 = vld [vmem:[%s7026_s3 + $0xd0] sm:$0xff] }
 0x265   : > { %3999 = vmatpush1.bf16.msra.mxu1 %v3998_v39  ;;  %v4018_v7 = vpack.c.bf16 %v1763_v53, %v1761_v50  ;;  %v4028_v39 = vpack.c.bf16 %v1776_v41, %v1774_v19  ;;  %v1794_v50 = vld [vmem:[%s7026_s3 + $0x1c8] sm:$0xff]  ;;  %v1796_v53 = vld [vmem:[%s7026_s3 + $0x1d8] sm:$0xff] }
 0x266   : > { %4001 = vmatprep.subr.bf16.mxu1 %v4000_v40  ;;  %v1778_v40 = vld [vmem:[%s7026_s3 + $0x148] sm:$0xff]  ;;  %v4048_v25 = vpack.c.bf16 %v1796_v53, %v1794_v50  ;;  %v1800_v41 = vld [vmem:[%s7026_s3 + $0x1f8] sm:$0xff]  ;;  %v1877_v53 = vld [vmem:[%s7026_s3 + $0x460] sm:$0xff] }
 0x267   : > { %v1798_v19 = vld [vmem:[%s7026_s3 + $0x1e8] sm:$0xff] }
 0x268   : > { %4439 = vrot.lane.b32.xlu0 %v4438_v44, %s4481_s25  ;;  %v4022_v44 = vpack.c.bf16 %v1767_v26, %v1765_v0  ;;  %v4052_v51 = vpack.c.bf16 %v1800_v41, %v1798_v19  ;;  %v1892_v19 = vld [vmem:[%s7026_s3 + $0x4d8] sm:$0xff]  ;;  %s4486_s25 = smov 16  }
 0x269   : > { %4003 = vmatpush1.bf16.msra.mxu1 %v4002_v33  ;;  %v4032_v33 = vpack.c.bf16 %v1780_v46, %v1778_v40 }
 0x26a   : > { %4005 = vmatprep.subr.bf16.mxu1 %v4004_v47  ;;  %v1782_v47 = vld [vmem:[%s7026_s3 + $0x168] sm:$0xff] }
 0x26b   : > { %v4036_v2 = vpack.c.bf16 %v1784_v28, %v1782_v47 }
 0x26d   : > { %4007 = vmatpush1.bf16.msra.mxu1 %v4006_v43  ;;  %v1783_v43 = vld [vmem:[%s7026_s3 + $0x170] sm:$0xff] }
 0x26e   : > { %4009 = vmatprep.subr.bf16.mxu1 %v4008_v16  ;;  %v1786_v16 = vld [vmem:[%s7026_s3 + $0x188] sm:$0xff]  ;;  %v4038_v9 = vpack.c.bf16 %v1783_v43, %v1781_v49  ;;  %v1876_v49 = vld [vmem:[%s7026_s3 + $0x458] sm:$0xff] }
 0x26f   : > { %v4040_v60 = vpack.c.bf16 %v1788_v34, %v1786_v16 }
 0x271   : > { %4011 = vmatpush1.bf16.msra.mxu1 %v4010_v35  ;;  %v1787_v35 = vld [vmem:[%s7026_s3 + $0x190] sm:$0xff] }
 0x272   : > { %4013 = vmatprep.subr.bf16.mxu1 %v4012_v10  ;;  %v1790_v10 = vld [vmem:[%s7026_s3 + $0x1a8] sm:$0xff]  ;;  %v4042_v30 = vpack.c.bf16 %v1787_v35, %v1785_v17  ;;  %v1873_v35 = vld [vmem:[%s7026_s3 + $0x440] sm:$0xff] }
 0x273   : > { %v4044_v15 = vpack.c.bf16 %v1792_v55, %v1790_v10 }
 0x275   : > { %4015 = vmatpush1.bf16.msra.mxu1 %v4014_v21  ;;  %v1791_v21 = vld [vmem:[%s7026_s3 + $0x1b0] sm:$0xff] }
 0x276   : > { %4017 = vmatprep.subr.bf16.mxu1 %v4016_v61  ;;  %v4046_v61 = vpack.c.bf16 %v1791_v21, %v1789_v36 }
 0x279   : > { %4019 = vmatpush1.bf16.msra.mxu1 %v4018_v7  ;;  %v1795_v7 = vld [vmem:[%s7026_s3 + $0x1d0] sm:$0xff] }
 0x27a   : > { %4021 = vmatprep.subr.bf16.mxu1 %v4020_v57  ;;  %v4050_v0 = vpack.c.bf16 %v1795_v7, %v1793_v24  ;;  %v1883_v24 = vld [vmem:[%s7026_s3 + $0x490] sm:$0xff]  ;;  %v1886_v7 = vld [vmem:[%s7026_s3 + $0x4a8] sm:$0xff] }
 0x27d   : > { %4023 = vmatpush1.bf16.msra.mxu1 %v4022_v44  ;;  %v1867_v44 = vld [vmem:[%s7026_s3 + $0x410] sm:$0xff] }
 0x27e   : > { %4025 = vmatprep.subr.bf16.mxu1 %v4024_v45  ;;  %v1870_v45 = vld [vmem:[%s7026_s3 + $0x428] sm:$0xff] }
 0x27f   : > { %v4124_v28 = vpack.c.bf16 %v1872_v54, %v1870_v45  ;;  %v1887_v45 = vld [vmem:[%s7026_s3 + $0x4b0] sm:$0xff]  ;;  %v1890_v54 = vld [vmem:[%s7026_s3 + $0x4c8] sm:$0xff] }
 0x281   : > { %4027 = vmatpush1.bf16.msra.mxu1 %v4026_v29 }
 0x282   : > { %4029 = vmatprep.subr.bf16.mxu1 %v4028_v39 }
 0x285   : > { %4031 = vmatpush1.bf16.msra.mxu1 %v4030_v52  ;;  %v4122_v52 = vpack.c.bf16 %v1867_v44, %v1865_v37  ;;  %v1885_v44 = vld [vmem:[%s7026_s3 + $0x4a0] sm:$0xff] }
 0x286   : > { %4033 = vmatprep.subr.bf16.mxu1 %v4032_v33  ;;  %v1797_v33 = vld [vmem:[%s7026_s3 + $0x1e0] sm:$0xff]  ;;  %v4142_v41 = vpack.c.bf16 %v1887_v45, %v1885_v44 }
 0x289   : > { %4035 = vmatpush1.bf16.msra.mxu1 %v4034_v62  ;;  %v1869_v62 = vld [vmem:[%s7026_s3 + $0x420] sm:$0xff] }
 0x28a   : > { %4037 = vmatprep.subr.bf16.mxu1 %v4036_v2  ;;  %v1874_v2 = vld [vmem:[%s7026_s3 + $0x448] sm:$0xff] }
 0x28b   : > { %v4128_v23 = vpack.c.bf16 %v1876_v49, %v1874_v2  ;;  %v1902_v2 = vld [vmem:[%s7026_s3 + $0x528] sm:$0xff]  ;;  %v1904_v49 = vld [vmem:[%s7026_s3 + $0x538] sm:$0xff] }
 0x28d   : > { %4039 = vmatpush1.bf16.msra.mxu1 %v4038_v9 }
 0x28e   : > { %4041 = vmatprep.subr.bf16.mxu1 %v4040_v60 }
 0x291   : > { %4043 = vmatpush1.bf16.msra.mxu1 %v4042_v30 }
 0x292   : > { %4045 = vmatprep.subr.bf16.mxu1 %v4044_v15 }
 0x295   : > { %4047 = vmatpush1.bf16.msra.mxu1 %v4046_v61 }
 0x296   : > { %4049 = vmatprep.subr.bf16.mxu1 %v4048_v25  ;;  %v1881_v25 = vld [vmem:[%s7026_s3 + $0x480] sm:$0xff] }
 0x299   : > { %4051 = vmatpush1.bf16.msra.mxu1 %v4050_v0  ;;  %v1888_v0 = vld [vmem:[%s7026_s3 + $0x4b8] sm:$0xff] }
 0x29a   : > { %4053 = vmatprep.subr.bf16.mxu1 %v4052_v51  ;;  %v4140_v37 = vpack.c.bf16 %v1888_v0, %v1886_v7  ;;  %v1891_v51 = vld [vmem:[%s7026_s3 + $0x4d0] sm:$0xff]  ;;  %v1917_v7 = vld [vmem:[%s7026_s3 + $0x5a0] sm:$0xff] }
 0x29b   : > { %v1919_v0 = vld [vmem:[%s7026_s3 + $0x5b0] sm:$0xff] }
 0x29c   : > { %v4174_v44 = vpack.c.bf16 %v1919_v0, %v1917_v7  ;;  %v1947_v7 = vld [vmem:[%s7026_s3 + $0x690] sm:$0xff]  ;;  %v1950_v0 = vld [vmem:[%s7026_s3 + $0x6a8] sm:$0xff] }
 0x2d0   : > { %v5913_v6 = vpop.permute.xlu1 %1709 }
 0x2d2   : > { %v5900_v57 = vpop.permute.xlu0 %4424 }
 0x2d3   : > { %v4427_v26 = vunpack.i.h.bf16 %v5900_v57  ;;  %v4426_v4 = vunpack.i.l.bf16 %v5900_v57  ;;  %v1933_v57 = vld [vmem:[%s7026_s3 + $0x620] sm:$0xff] }
 0x2d5   : > { %v1725_v29 = vsel %vm7173_vm1, %v5913_v6, %v4426_v4  ;;  %v1724_v39 = vsel %vm7174_vm0, %v4426_v4, %v4427_v26  ;;  %v4138_v4 = vpack.c.bf16 %v1883_v24, %v1881_v25 }
 0x2d6   : > { %v1731_v3 = vmax.f32 %v5677_v42, %v1725_v29  ;;  %v4430_v40 = vpop.permute.xlu0 %4429  ;;  %v1732_v46 = vmax.f32 %v5681_v63, %v1724_v39  ;;  %v1871_v42 = vld [vmem:[%s7026_s3 + $0x430] sm:$0xff]  ;;  %v4054_v63 = vpack.c.bf16 %v1799_v8, %v1797_v33  ;;  %v4144_v29 = vpack.c.bf16 %v1892_v19, %v1890_v54  ;;  %v1889_v39 = vld [vmem:[%s7026_s3 + $0x4c0] sm:$0xff] }
 0x2d7   : > { %v4432_v48 = vunpack.i.h.bf16 %v4430_v40  ;;  %v4431_v47 = vunpack.i.l.bf16 %v4430_v40  ;;  %v4126_v17 = vpack.c.bf16 %v1871_v42, %v1869_v62  ;;  %v1896_v40 = vld [vmem:[%s7026_s3 + $0x4f8] sm:$0xff]  ;;  %v1893_v33 = vld [vmem:[%s7026_s3 + $0x4e0] sm:$0xff]  ;;  %v1895_v8 = vld [vmem:[%s7026_s3 + $0x4f0] sm:$0xff] }
 0x2d8   : > { %2128 = vmatprep.mubr.f32.mxu0 %v1732_v46  ;;  %4055 = vmatpush1.bf16.msra.mxu1 %v4054_v63  ;;  %v4146_v46 = vpack.c.bf16 %v1891_v51, %v1889_v39  ;;  %v1897_v42 = vld [vmem:[%s7026_s3 + $0x500] sm:$0xff]  ;;  %v1899_v63 = vld [vmem:[%s7026_s3 + $0x510] sm:$0xff] }
 0x2d9   : > { %v1689_v43 = vsel %vm7175_vm2, %v4431_v47, %v4432_v48  ;;  %v1690_v16 = vsel %vm7176_vm12, %v4421_v31, %v4431_v47  ;;  %2129 = vmatmul.mubr.f32.vlgmr.msra.gmra.mrb[4].mxu0 %v1731_v3  ;;  %v1875_v31 = vld [vmem:[%s7026_s3 + $0x450] sm:$0xff]  ;;  %v1894_v3 = vld [vmem:[%s7026_s3 + $0x4e8] sm:$0xff]  ;;  %v1900_v47 = vld [vmem:[%s7026_s3 + $0x518] sm:$0xff]  ;;  %vm7195_vm2 = vcmp.lt.s32.totalorder %v4703_v13, 1 }
 0x2da   : > { %v4440_v34 = vpop.permute.xlu0 %4439  ;;  %v5959_v9 = vmax.f32 %v1670_v56, %v1690_v16  ;;  %v5963_v60 = vmax.f32 %v1671_v58, %v1689_v43  ;;  %4123 = vmatpush1.bf16.msra.mxu0 %v4122_v52  ;;  %v1880_v58 = vld [vmem:[%s7026_s3 + $0x478] sm:$0xff]  ;;  %v4130_v21 = vpack.c.bf16 %v1875_v31, %v1873_v35  ;;  %v4148_v52 = vpack.c.bf16 %v1896_v40, %v1894_v3  ;;  %v1906_v35 = vld [vmem:[%s7026_s3 + $0x548] sm:$0xff]  ;;  %v1921_v54 = vld [vmem:[%s7026_s3 + $0x5c0] sm:$0xff] }
 0x2db   : > { %v4442_v10 = vunpack.i.h.bf16 %v4440_v34  ;;  %v4441_v55 = vunpack.i.l.bf16 %v4440_v34  ;;  %4125 = vmatprep.subr.bf16.mxu0 %v4124_v28  ;;  %v4150_v28 = vpack.c.bf16 %v1895_v8, %v1893_v33  ;;  %v4154_v43 = vpack.c.bf16 %v1899_v63, %v1897_v42  ;;  %v1901_v34 = vld [vmem:[%s7026_s3 + $0x520] sm:$0xff]  ;;  %v1908_v31 = vld [vmem:[%s7026_s3 + $0x558] sm:$0xff]  ;;  %v1923_v19 = vld [vmem:[%s7026_s3 + $0x5d0] sm:$0xff] }
 0x2dc   : > { %v4433_v56 = vpack.i.bf16 %v5963_v60, %v5959_v9  ;;  %v4156_v16 = vpack.c.bf16 %v1904_v49, %v1902_v2  ;;  %v4178_v39 = vpack.c.bf16 %v1923_v19, %v1921_v54  ;;  %v1925_v3 = vld [vmem:[%s7026_s3 + $0x5e0] sm:$0xff]  ;;  %v1927_v40 = vld [vmem:[%s7026_s3 + $0x5f0] sm:$0xff]  ;;  %v1934_v63 = vld [vmem:[%s7026_s3 + $0x628] sm:$0xff] }
 0x2dd   : > { %v1694_v30 = vsel %vm7177_vm5, %v4442_v10, %v4422_v18  ;;  %v1695_v15 = vsel %vm7178_vm6, %v4441_v55, %v4442_v10  ;;  %v1696_v36 = vsel %vm7179_vm11, %v4432_v48, %v4441_v55  ;;  %v4132_v18 = vpack.c.bf16 %v1880_v58, %v1878_v32  ;;  %v1898_v48 = vld [vmem:[%s7026_s3 + $0x508] sm:$0xff]  ;;  %v1912_v58 = vld [vmem:[%s7026_s3 + $0x578] sm:$0xff]  ;;  %v1931_v42 = vld [vmem:[%s7026_s3 + $0x610] sm:$0xff] }
 0x2de   : > { %4434 = vrot.lane.b32.xlu1 %v4433_v56, %s4478_s2  ;;  %v5990_v61 = vmax.f32 %v1672_v5, %v1696_v36  ;;  %v5994_v50 = vmax.f32 %v1665_v27, %v1695_v15  ;;  %v5998_v59 = vmax.f32 %v1666_v20, %v1694_v30  ;;  %4127 = vmatpush1.bf16.msra.mxu0 %v4126_v17  ;;  %v1882_v5 = vld [vmem:[%s7026_s3 + $0x488] sm:$0xff]  ;;  %v1903_v17 = vld [vmem:[%s7026_s3 + $0x530] sm:$0xff]  ;;  %v1909_v36 = vld [vmem:[%s7026_s3 + $0x560] sm:$0xff]  ;;  %vm2293_vm5 = vcmp.lt.s32.totalorder %v4703_v13, 17 }
 0x2df   : > { %4129 = vmatprep.subr.bf16.mxu0 %v4128_v23  ;;  %v4134_v27 = vpack.c.bf16 %v1879_v38, %v1877_v53  ;;  %v4136_v20 = vpack.c.bf16 %v1884_v12, %v1882_v5  ;;  %v4152_v62 = vpack.c.bf16 %v1900_v47, %v1898_v48  ;;  %v4158_v10 = vpack.c.bf16 %v1903_v17, %v1901_v34  ;;  %v1905_v23 = vld [vmem:[%s7026_s3 + $0x540] sm:$0xff]  ;;  %v1907_v56 = vld [vmem:[%s7026_s3 + $0x550] sm:$0xff]  ;;  %v1910_v32 = vld [vmem:[%s7026_s3 + $0x568] sm:$0xff] }
 0x2e0   : > { %1719 = vrot.lane.b32.xlu0 %v5990_v61, %s4478_s2  ;;  %v4443_v1 = vpack.i.bf16 %v5998_v59, %v5994_v50  ;;  %v4160_v55 = vpack.c.bf16 %v1908_v31, %v1906_v35  ;;  %v4162_v30 = vpack.c.bf16 %v1907_v56, %v1905_v23  ;;  %v4164_v15 = vpack.c.bf16 %v1912_v58, %v1910_v32  ;;  %v1916_v53 = vld [vmem:[%s7026_s3 + $0x598] sm:$0xff]  ;;  %v1913_v5 = vld [vmem:[%s7026_s3 + $0x580] sm:$0xff]  ;;  %v1915_v12 = vld [vmem:[%s7026_s3 + $0x590] sm:$0xff] }
 0x2e1   : > { %v4170_v25 = vpack.c.bf16 %v1915_v12, %v1913_v5  ;;  %v4182_v33 = vpack.c.bf16 %v1927_v40, %v1925_v3  ;;  %v1936_v2 = vld [vmem:[%s7026_s3 + $0x638] sm:$0xff]  ;;  %v1943_v5 = vld [vmem:[%s7026_s3 + $0x670] sm:$0xff]  ;;  %v1946_v12 = vld [vmem:[%s7026_s3 + $0x688] sm:$0xff] }
 0x2e2   : > { %4444 = vrot.lane.b32.xlu1 %v4443_v1, %s4478_s2  ;;  %4131 = vmatpush1.bf16.msra.mxu0 %v4130_v21  ;;  %v1911_v21 = vld [vmem:[%s7026_s3 + $0x570] sm:$0xff]  ;;  %v1954_v19 = vld [vmem:[%s7026_s3 + $0x6c8] sm:$0xff]  ;;  %vm7196_vm12 = vmmov %vm7195_vm2 }
 0x2e3   : > { %4133 = vmatprep.subr.bf16.mxu0 %v4132_v18  ;;  %v1914_v18 = vld [vmem:[%s7026_s3 + $0x588] sm:$0xff]  ;;  %v4166_v38 = vpack.c.bf16 %v1911_v21, %v1909_v36  ;;  %v1951_v54 = vld [vmem:[%s7026_s3 + $0x6b0] sm:$0xff] }
 0x2e4   : > { %v4168_v1 = vpack.c.bf16 %v1916_v53, %v1914_v18  ;;  %v1937_v53 = vld [vmem:[%s7026_s3 + $0x640] sm:$0xff]  ;;  %v1955_v3 = vld [vmem:[%s7026_s3 + $0x6d0] sm:$0xff]  ;;  %v1958_v40 = vld [vmem:[%s7026_s3 + $0x6e8] sm:$0xff] }
 0x2e6   : > { %4135 = vmatpush1.bf16.msra.mxu0 %v4134_v27  ;;  %v1918_v27 = vld [vmem:[%s7026_s3 + $0x5a8] sm:$0xff] }
 0x2e7   : > { %4137 = vmatprep.subr.bf16.mxu0 %v4136_v20  ;;  %v1920_v20 = vld [vmem:[%s7026_s3 + $0x5b8] sm:$0xff] }
 0x2e8   : > { %v4172_v24 = vpack.c.bf16 %v1920_v20, %v1918_v27  ;;  %v1948_v27 = vld [vmem:[%s7026_s3 + $0x698] sm:$0xff] }
 0x2ea   : > { %4139 = vmatpush1.bf16.msra.mxu0 %v4138_v4  ;;  %v1922_v4 = vld [vmem:[%s7026_s3 + $0x5c8] sm:$0xff] }
 0x2eb   : > { %4141 = vmatprep.subr.bf16.mxu0 %v4140_v37  ;;  %v1924_v37 = vld [vmem:[%s7026_s3 + $0x5d8] sm:$0xff] }
 0x2ec   : > { %v4176_v45 = vpack.c.bf16 %v1924_v37, %v1922_v4  ;;  %v1952_v4 = vld [vmem:[%s7026_s3 + $0x6b8] sm:$0xff] }
 0x2ee   : > { %4143 = vmatpush1.bf16.msra.mxu0 %v4142_v41  ;;  %v1926_v41 = vld [vmem:[%s7026_s3 + $0x5e8] sm:$0xff] }
 0x2ef   : > { %4145 = vmatprep.subr.bf16.mxu0 %v4144_v29  ;;  %v1928_v29 = vld [vmem:[%s7026_s3 + $0x5f8] sm:$0xff] }
 0x2f0   : > { %v4180_v51 = vpack.c.bf16 %v1928_v29, %v1926_v41  ;;  %v1956_v41 = vld [vmem:[%s7026_s3 + $0x6d8] sm:$0xff] }
 0x2f2   : > { %4147 = vmatpush1.bf16.msra.mxu0 %v4146_v46  ;;  %v1930_v46 = vld [vmem:[%s7026_s3 + $0x608] sm:$0xff] }
 0x2f3   : > { %4149 = vmatprep.subr.bf16.mxu0 %v4148_v52  ;;  %v1932_v52 = vld [vmem:[%s7026_s3 + $0x618] sm:$0xff] }
 0x2f4   : > { %v4184_v8 = vpack.c.bf16 %v1932_v52, %v1930_v46  ;;  %v1960_v46 = vld [vmem:[%s7026_s3 + $0x6f8] sm:$0xff] }
 0x2f6   : > { %4151 = vmatpush1.bf16.msra.mxu0 %v4150_v28 }
 0x2f7   : > { %4153 = vmatprep.subr.bf16.mxu0 %v4152_v62  ;;  %v1929_v62 = vld [vmem:[%s7026_s3 + $0x600] sm:$0xff] }
 0x2f8   : > { %v4186_v35 = vpack.c.bf16 %v1931_v42, %v1929_v62  ;;  %v1962_v62 = vld [vmem:[%s7026_s3 + $0x708] sm:$0xff]  ;;  %v1964_v42 = vld [vmem:[%s7026_s3 + $0x718] sm:$0xff] }
 0x2fa   : > { %4155 = vmatpush1.bf16.msra.mxu0 %v4154_v43 }
 0x2fb   : > { %4157 = vmatprep.subr.bf16.mxu0 %v4156_v16 }
 0x2fe   : > { %4159 = vmatpush1.bf16.msra.mxu0 %v4158_v10 }
 0x2ff   : > { %4161 = vmatprep.subr.bf16.mxu0 %v4160_v55  ;;  %v4188_v55 = vpack.c.bf16 %v1936_v2, %v1934_v63  ;;  %v4216_v2 = vpack.c.bf16 %v1964_v42, %v1962_v62 }
 0x302   : > { %4163 = vmatpush1.bf16.msra.mxu0 %v4162_v30 }
 0x303   : > { %4165 = vmatprep.subr.bf16.mxu0 %v4164_v15 }
 0x306   : > { %4167 = vmatpush1.bf16.msra.mxu0 %v4166_v38 }
 0x307   : > { %4169 = vmatprep.subr.bf16.mxu0 %v4168_v1  ;;  %v1941_v1 = vld [vmem:[%s7026_s3 + $0x660] sm:$0xff] }
 0x308   : > { %v4198_v20 = vpack.c.bf16 %v1943_v5, %v1941_v1  ;;  %v1984_v1 = vld [vmem:[%s7026_s3 + $0x7b8] sm:$0xff] }
 0x30a   : > { %4171 = vmatpush1.bf16.msra.mxu0 %v4170_v25  ;;  %v4200_v25 = vpack.c.bf16 %v1948_v27, %v1946_v12  ;;  %v1981_v27 = vld [vmem:[%s7026_s3 + $0x7a0] sm:$0xff] }
 0x30b   : > { %4173 = vmatprep.subr.bf16.mxu0 %v4172_v24  ;;  %v1945_v24 = vld [vmem:[%s7026_s3 + $0x680] sm:$0xff] }
 0x30c   : > { %v4202_v37 = vpack.c.bf16 %v1947_v7, %v1945_v24  ;;  %v1988_v24 = vld [vmem:[%s7026_s3 + $0x7d8] sm:$0xff] }
 0x30e   : > { %4175 = vmatpush1.bf16.msra.mxu0 %v4174_v44  ;;  %v4204_v44 = vpack.c.bf16 %v1952_v4, %v1950_v0  ;;  %v1985_v4 = vld [vmem:[%s7026_s3 + $0x7c0] sm:$0xff] }
 0x30f   : > { %4177 = vmatprep.subr.bf16.mxu0 %v4176_v45  ;;  %v1949_v45 = vld [vmem:[%s7026_s3 + $0x6a0] sm:$0xff] }
 0x310   : > { %v4206_v29 = vpack.c.bf16 %v1951_v54, %v1949_v45  ;;  %v1992_v45 = vld [vmem:[%s7026_s3 + $0x7f8] sm:$0xff] }
 0x312   : > { %4179 = vmatpush1.bf16.msra.mxu0 %v4178_v39  ;;  %v4208_v39 = vpack.c.bf16 %v1956_v41, %v1954_v19  ;;  %v1989_v41 = vld [vmem:[%s7026_s3 + $0x7e0] sm:$0xff] }
 0x313   : > { %4181 = vmatprep.subr.bf16.mxu0 %v4180_v51  ;;  %v1953_v51 = vld [vmem:[%s7026_s3 + $0x6c0] sm:$0xff] }
 0x314   : > { %v4210_v52 = vpack.c.bf16 %v1955_v3, %v1953_v51 }
 0x316   : > { %4183 = vmatpush1.bf16.msra.mxu0 %v4182_v33  ;;  %v4212_v33 = vpack.c.bf16 %v1960_v46, %v1958_v40 }
 0x317   : > { %4185 = vmatprep.subr.bf16.mxu0 %v4184_v8  ;;  %v1957_v8 = vld [vmem:[%s7026_s3 + $0x6e0] sm:$0xff] }
 0x350   : > { %v6161_v48 = vpop.permute.xlu1 %4434 }
 0x351   : > { %v4437_v47 = vunpack.i.h.bf16 %v6161_v48  ;;  %v4436_v28 = vunpack.i.l.bf16 %v6161_v48  ;;  %v2279_v48 = vshra.s32 %v4703_v13, 4 }
 0x352   : > { %v6193_v23 = vpop.permute.xlu0 %1719 }
 0x353   : > { %v1723_v49 = vsel %vm7180_vm3, %v4427_v26, %v4436_v28  ;;  %v1722_v43 = vsel %vm7181_vm14, %v4436_v28, %v4437_v47  ;;  %v1935_v26 = vld [vmem:[%s7026_s3 + $0x630] sm:$0xff]  ;;  %v1721_v51 = vsel %vm7185_vm15, %v4437_v47, %v6193_v23  ;;  %v2280_v47 = vshra.s32 %v4709_v14, 4 }
 0x354   : > { %v1733_v16 = vmax.f32 %v5685_v22, %v1723_v49  ;;  %v4445_v34 = vpop.permute.xlu1 %4444  ;;  %v1734_v17 = vmax.f32 %v5959_v9, %v1722_v43  ;;  %v1938_v22 = vld [vmem:[%s7026_s3 + $0x648] sm:$0xff]  ;;  %v1940_v9 = vld [vmem:[%s7026_s3 + $0x658] sm:$0xff]  ;;  %v4190_v21 = vpack.c.bf16 %v1935_v26, %v1933_v57  ;;  %v1959_v28 = vld [vmem:[%s7026_s3 + $0x6f0] sm:$0xff]  ;;  %v1735_v3 = vmax.f32 %v5963_v60, %v1721_v51 }
 0x355   : > { %v4447_v31 = vunpack.i.h.bf16 %v4445_v34  ;;  %v4446_v10 = vunpack.i.l.bf16 %v4445_v34  ;;  %v4192_v18 = vpack.c.bf16 %v1940_v9, %v1938_v22  ;;  %v4214_v63 = vpack.c.bf16 %v1959_v28, %v1957_v8  ;;  %v1961_v49 = vld [vmem:[%s7026_s3 + $0x700] sm:$0xff]  ;;  %v1963_v43 = vld [vmem:[%s7026_s3 + $0x710] sm:$0xff]  ;;  %v1968_v34 = vld [vmem:[%s7026_s3 + $0x738] sm:$0xff] }
 0x356   : > { %2199 = vmatprep.mubr.f32.mxu0 %v1734_v17  ;;  %v4218_v17 = vpack.c.bf16 %v1963_v43, %v1961_v49  ;;  %v1972_v57 = vld [vmem:[%s7026_s3 + $0x758] sm:$0xff]  ;;  %v1969_v9 = vld [vmem:[%s7026_s3 + $0x740] sm:$0xff]  ;;  %vm6397_vm8 = vcmp.ge.s32.totalorder %v2279_v48, 1  ;;  %vm6401_vm13 = vcmp.ge.s32.totalorder %v2280_v47, 1 }
 0x357   : > { %v1727_v56 = vsel %vm7182_vm9, %v4446_v10, %v4447_v31  ;;  %2200 = vmatmul.mubr.f32.vlgmr.msra.gmra.mrb[4].mxu0 %v1733_v16  ;;  %v1726_v32 = vsel %vm7183_vm10, %v4447_v31, %v5913_v6  ;;  %v1728_v58 = vsel %vm7184_vm4, %v6193_v23, %v4446_v10  ;;  %v1939_v6 = vld [vmem:[%s7026_s3 + $0x650] sm:$0xff]  ;;  %v1966_v16 = vld [vmem:[%s7026_s3 + $0x728] sm:$0xff]  ;;  %v1965_v31 = vld [vmem:[%s7026_s3 + $0x720] sm:$0xff]  ;;  %vm2331_vm9 = vcmp.lt.s32.totalorder %v4703_v13, 15 }
 0x358   : > { %v1729_v30 = vmax.f32 %v5994_v50, %v1727_v56  ;;  %4187 = vmatpush1.bf16.msra.mxu0 %v4186_v35  ;;  %v1730_v15 = vmax.f32 %v5998_v59, %v1726_v32  ;;  %v1736_v36 = vmax.f32 %v5990_v61, %v1728_v58  ;;  %v1942_v50 = vld [vmem:[%s7026_s3 + $0x668] sm:$0xff]  ;;  %v1944_v61 = vld [vmem:[%s7026_s3 + $0x678] sm:$0xff]  ;;  %v4194_v59 = vpack.c.bf16 %v1939_v6, %v1937_v53  ;;  %v1967_v10 = vld [vmem:[%s7026_s3 + $0x730] sm:$0xff] }
 0x359   : > { %4189 = vmatprep.subr.bf16.mxu0 %v4188_v55  ;;  %v4196_v38 = vpack.c.bf16 %v1944_v61, %v1942_v50  ;;  %v4220_v35 = vpack.c.bf16 %v1968_v34, %v1966_v16  ;;  %v1970_v55 = vld [vmem:[%s7026_s3 + $0x748] sm:$0xff]  ;;  %v4222_v26 = vpack.c.bf16 %v1967_v10, %v1965_v31  ;;  %v1971_v56 = vld [vmem:[%s7026_s3 + $0x750] sm:$0xff]  ;;  %v1976_v58 = vld [vmem:[%s7026_s3 + $0x778] sm:$0xff] }
 0x35a   : > { %2057 = vmatprep.mubr.f32.mxu1 %v1730_v15  ;;  %2270 = vmatprep.mubr.f32.mxu0 %v1736_v36  ;;  %v4224_v22 = vpack.c.bf16 %v1972_v57, %v1970_v55  ;;  %v1974_v32 = vld [vmem:[%s7026_s3 + $0x768] sm:$0xff]  ;;  %v1973_v36 = vld [vmem:[%s7026_s3 + $0x760] sm:$0xff]  ;;  %v1980_v53 = vld [vmem:[%s7026_s3 + $0x798] sm:$0xff] }
 0x35b   : > { %2058 = vmatmul.mubr.f32.vlgmr.msra.gmra.mrb[4].mxu1 %v1729_v30  ;;  %v4226_v30 = vpack.c.bf16 %v1971_v56, %v1969_v9  ;;  %v4228_v15 = vpack.c.bf16 %v1976_v58, %v1974_v32  ;;  %v1977_v61 = vld [vmem:[%s7026_s3 + $0x780] sm:$0xff] }
 0x35c   : > { %4191 = vmatpush1.bf16.msra.mxu0 %v4190_v21  ;;  %v1975_v21 = vld [vmem:[%s7026_s3 + $0x770] sm:$0xff]  ;;  %v2452_v60 = vld [vmem:[%s7028_s5] sm:$0xff] }
 0x35d   : > { %4193 = vmatprep.subr.bf16.mxu0 %v4192_v18  ;;  %v1978_v18 = vld [vmem:[%s7026_s3 + $0x788] sm:$0xff]  ;;  %v4230_v6 = vpack.c.bf16 %v1975_v21, %v1973_v36 }
 0x35e   : > { %v4232_v50 = vpack.c.bf16 %v1980_v53, %v1978_v18  ;;  %v2575_v21 = vld [vmem:[%s7029_s6 + $0x88] sm:$0xff] }
 0x360   : > { %4195 = vmatpush1.bf16.msra.mxu0 %v4194_v59  ;;  %v1979_v59 = vld [vmem:[%s7026_s3 + $0x790] sm:$0xff] }
 0x361   : > { %4197 = vmatprep.subr.bf16.mxu0 %v4196_v38  ;;  %v1982_v38 = vld [vmem:[%s7026_s3 + $0x7a8] sm:$0xff]  ;;  %v4234_v5 = vpack.c.bf16 %v1979_v59, %v1977_v61 }
 0x362   : > { %v4236_v12 = vpack.c.bf16 %v1984_v1, %v1982_v38 }
 0x364   : > { %4199 = vmatpush1.bf16.msra.mxu0 %v4198_v20  ;;  %v1983_v20 = vld [vmem:[%s7026_s3 + $0x7b0] sm:$0xff] }
 0x365   : > { %4201 = vmatprep.subr.bf16.mxu0 %v4200_v25  ;;  %v1986_v25 = vld [vmem:[%s7026_s3 + $0x7c8] sm:$0xff]  ;;  %v4238_v7 = vpack.c.bf16 %v1983_v20, %v1981_v27 }
 0x366   : > { %v4240_v0 = vpack.c.bf16 %v1988_v24, %v1986_v25 }
 0x368   : > { %4203 = vmatpush1.bf16.msra.mxu0 %v4202_v37  ;;  %v1987_v37 = vld [vmem:[%s7026_s3 + $0x7d0] sm:$0xff] }
 0x369   : > { %4205 = vmatprep.subr.bf16.mxu0 %v4204_v44  ;;  %v1990_v44 = vld [vmem:[%s7026_s3 + $0x7e8] sm:$0xff]  ;;  %v4242_v54 = vpack.c.bf16 %v1987_v37, %v1985_v4 }
 0x36a   : > { %v4244_v19 = vpack.c.bf16 %v1992_v45, %v1990_v44  ;;  %v2581_v45 = vld [vmem:[%s7029_s6 + $0xb8] sm:$0xff] }
 0x36c   : > { %4207 = vmatpush1.bf16.msra.mxu0 %v4206_v29  ;;  %v1991_v29 = vld [vmem:[%s7026_s3 + $0x7f0] sm:$0xff] }
 0x36d   : > { %4209 = vmatprep.subr.bf16.mxu0 %v4208_v39  ;;  %v4246_v39 = vpack.c.bf16 %v1991_v29, %v1989_v41 }
 0x370   : > { %4211 = vmatpush1.bf16.msra.mxu0 %v4210_v52 }
 0x371   : > { %4213 = vmatprep.subr.bf16.mxu0 %v4212_v33 }
 0x374   : > { %4215 = vmatpush1.bf16.msra.mxu0 %v4214_v63  ;;  %v2277_v63 = vand.u32 15, %v4703_v13 }
 0x375   : > { %4217 = vmatprep.subr.bf16.mxu0 %v4216_v2  ;;  %v2278_v2 = vand.u32 15, %v4709_v14 }
 0x376   : > { %vm6411_vm1 = vcmp.ge.s32.totalorder %v2277_v63, 1  ;;  %vm6436_vm3 = vcmp.le.s32.totalorder %v2277_v63, 14 }
 0x377   : > { %vm6415_vm0 = vcmp.ge.s32.totalorder %v2278_v2, 1  ;;  %vm2296_vm6 = vmand %vm6397_vm8, %vm6411_vm1  ;;  %vm6440_vm14 = vcmp.le.s32.totalorder %v2278_v2, 14 }
 0x378   : > { %4219 = vmatpush1.bf16.msra.mxu0 %v4218_v17  ;;  %vm2297_vm11 = vmand %vm6401_vm13, %vm6415_vm0 }
 0x379   : > { %4221 = vmatprep.subr.bf16.mxu0 %v4220_v35  ;;  %vm2334_vm10 = vmand %vm6397_vm8, %vm6436_vm3 }
 0x37a   : > { %vm2335_vm4 = vmand %vm6401_vm13, %vm6440_vm14 }
 0x37c   : > { %4223 = vmatpush1.bf16.msra.mxu0 %v4222_v26 }
 0x37d   : > { %4225 = vmatprep.subr.bf16.mxu0 %v4224_v22 }
 0x380   : > { %4227 = vmatpush1.bf16.msra.mxu0 %v4226_v30 }
 0x381   : > { %4229 = vmatprep.subr.bf16.mxu0 %v4228_v15 }
 0x384   : > { %4231 = vmatpush1.bf16.msra.mxu0 %v4230_v6 }
 0x385   : > { %4233 = vmatprep.subr.bf16.mxu0 %v4232_v50 }
 0x388   : > { %4235 = vmatpush1.bf16.msra.mxu0 %v4234_v5 }
 0x389   : > { %4237 = vmatprep.subr.bf16.mxu0 %v4236_v12 }
 0x38c   : > { %4239 = vmatpush1.bf16.msra.mxu0 %v4238_v7 }
 0x38d   : > { %4241 = vmatprep.subr.bf16.mxu0 %v4240_v0 }
 0x390   : > { %4243 = vmatpush1.bf16.msra.mxu0 %v4242_v54 }
 0x391   : > { %4245 = vmatprep.subr.bf16.mxu0 %v4244_v19 }
 0x394   : > { %4247 = vmatpush1.bf16.msra.mxu0 %v4246_v39 }
 0x397   : > { %2271 = vmatmul.mubr.f32.vlgmr.msra.gmra.mrb[4].mxu0 %v1735_v3 }
 0x398   : > { %2533 = vmatprep.mubr.f32.mxu0 %v4483_v11 }
 0x42e   : > { %v2059_v40 = vpop.f32.mrb[4].mxu1 }
 0x42f   : > { %v2061_v46 = vpop.f32.mrb[5].mxu1 }
 0x46a   : > { %v2272_v52 = vpop.f32.mrb[4].mxu0 }
 0x46b   : > { %v4363_v33 = vadd.f32 %v2272_v52, %v2059_v40  ;;  %v2274_v8 = vpop.f32.mrb[5].mxu0 }
 0x46c   : > { %v4364_v28 = vadd.f32 %v2274_v8, %v2061_v46 }
 0x46d   : > { %2364 = vst [vmem:[#allocation2 + $0x80] sm:$0xf] %v4363_v33  ;;  %2306 = vrot.lane.b32.xlu1 %v4363_v33, %s4486_s25 }
 0x46e   : > { %2365 = vst [vmem:[#allocation2 + $0x88] sm:$0xf] %v4364_v28  ;;  %2308 = vrot.lane.b32.xlu0 %v4364_v28, %s4486_s25 }
 0x471   : > { %2344 = vrot.lane.b32.xlu1 %v4363_v33, %s7186_s22 }
 0x472   : > { %2346 = vrot.lane.b32.xlu0 %v4364_v28, %s7186_s22  ;;  %s4492_s22 = smov 64  }
 0x475   : > { %2289 = vrot.lane.b32.xlu1 %v4363_v33, %s4487_s21 }
 0x476   : > { %2291 = vrot.lane.b32.xlu0 %v4364_v28, %s4487_s21  ;;  %s4495_s21 = smov 73  }
 0x479   : > { %2327 = vrot.lane.b32.xlu1 %v4363_v33, %s4488_s23 }
 0x47a   : > { %2329 = vrot.lane.b32.xlu0 %v4364_v28, %s4488_s23  ;;  %s4496_s23 = smov 65  }
 0x47d   : > { %2366 = vrot.lane.b32.xlu1 %v4363_v33, %s4478_s2 }
 0x47e   : > { %2368 = vrot.lane.b32.xlu0 %v4364_v28, %s4478_s2 }
 0x481   : > { %2403 = vrot.lane.b32.xlu1 %v4363_v33, %s4489_s24 }
 0x482   : > { %2405 = vrot.lane.b32.xlu0 %v4364_v28, %s4489_s24 }
 0x485   : > { %2386 = vrot.lane.b32.xlu1 %v4363_v33, %s7056_s26 }
 0x486   : > { %2388 = vrot.lane.b32.xlu0 %v4364_v28, %s7056_s26 }
 0x489   : > { %2424 = vrot.lane.b32.xlu1 %v4363_v33, %s4491_s30 }
 0x48a   : > { %2426 = vrot.lane.b32.xlu0 %v4364_v28, %s4491_s30  ;;  %s4497_s30 = smov 71  }
 0x48d   : > { %2455 = vperm.xlu1 %4448, %v2452_v60  }
 0x4df   : > { %v2307_v23 = vpop.permute.xlu1 %2306 }
 0x4e0   : > { %v2309_v49 = vpop.permute.xlu0 %2308 }
 0x4e1   : > { %v2311_v43 = vsel %vm2310_vm7, %v2307_v23, %v2309_v49  ;;  %v2312_v16 = vsel %vm2310_vm7, %v2309_v49, %v2307_v23  ;;  %vm7201_vm7 = vmmov %vm7185_vm15 }
 0x4e2   : > { %v2317_v34 = vsel %vm6397_vm8, %v2312_v16, 0.0  ;;  %v2318_v17 = vsel %vm6401_vm13, %v2311_v43, 0.0  ;;  %vm2407_vm8 = vcmp.lt.s32.totalorder %v4703_v13, 112  ;;  %vm6462_vm13 = vcmp.le.s32.totalorder %v2279_v48, 14 }
 0x4e3   : > { %v2321_v35 = vrot.slane %v2317_v34, 4  ;;  %v2322_v31 = vrot.slane %v2318_v17, 4  ;;  %v2345_v10 = vpop.permute.xlu1 %2344 }
 0x4e4   : > { %v2347_v14 = vpop.permute.xlu0 %2346 }
 0x4e5   : > { %2325 = vst [vmem:[#allocation2] sm:$0xf0] %v2321_v35  ;;  %2326 = vst [vmem:[#allocation2 + $0x8] sm:$0xf0] %v2322_v31  ;;  %v2348_v26 = vsel %vm7195_vm2, %v2345_v10, %v2347_v14  ;;  %v2349_v22 = vsel %vm7196_vm12, %v2347_v14, %v2345_v10  ;;  %vm6466_vm2 = vcmp.le.s32.totalorder %v2280_v47, 14 }
 0x4e6   : > { %v2354_v9 = vsel %vm6411_vm1, %v2349_v22, 0.0  ;;  %v2355_v56 = vsel %vm6415_vm0, %v2348_v26, 0.0  ;;  %vm2393_vm12 = vmand %vm6462_vm13, %vm6411_vm1  ;;  %vm2462_vm1 = vcmask 1043456   ;;  %v2451_v22 = vld [vmem:[%s7027_s4] sm:$0xff] }
 0x4e7   : > { %v2358_v32 = vrot.slane %v2354_v9, 4  ;;  %v2359_v58 = vrot.slane %v2355_v56, 4  ;;  %v2290_v30 = vpop.permute.xlu1 %2289 }
 0x4e8   : > { %v2292_v36 = vpop.permute.xlu0 %2291 }
 0x4e9   : > { %2362 = vst [vmem:[#allocation2 + $0x40] sm:$0xf0] %v2358_v32  ;;  %2363 = vst [vmem:[#allocation2 + $0x48] sm:$0xf0] %v2359_v58  ;;  %v2294_v18 = vsel %vm2293_vm5, %v2290_v30, %v2292_v36  ;;  %v2295_v53 = vsel %vm2293_vm5, %v2292_v36, %v2290_v30  ;;  %vm2390_vm5 = vcmp.lt.s32.totalorder %v4703_v13, 113  ;;  %v2574_v36 = vld [vmem:[%s7029_s6 + $0x80] sm:$0xff] }
 0x4ea   : > { %v2302_v6 = vsel %vm2296_vm6, %v2295_v53, 0.0  ;;  %v2303_v50 = vsel %vm2297_vm11, %v2294_v18, 0.0  ;;  %vm2394_vm6 = vmand %vm6466_vm2, %vm6415_vm0  ;;  %vm2428_vm11 = vcmp.lt.s32.totalorder %v4703_v13, 111  ;;  %v2558_v18 = vld [vmem:[%s7029_s6] sm:$0xff] }
 0x4eb   : > { %2304 = vst [vmem:[#allocation2] sm:$0xf] %v2302_v6  ;;  %2305 = vst [vmem:[#allocation2 + $0x8] sm:$0xf] %v2303_v50  ;;  %v2328_v61 = vpop.permute.xlu1 %2327  ;;  %v4256_v6 = vpack.c.bf16 %v2575_v21, %v2574_v36  ;;  %v2559_v50 = vld [vmem:[%s7029_s6 + $0x8] sm:$0xff] }
 0x4ec   : > { %v2330_v59 = vpop.permute.xlu0 %2329  ;;  %vm2431_vm0 = vmand %vm6462_vm13, %vm6436_vm3 }
 0x4ed   : > { %v2332_v38 = vsel %vm2331_vm9, %v2328_v61, %v2330_v59  ;;  %v2333_v1 = vsel %vm2331_vm9, %v2330_v59, %v2328_v61  ;;  %vm2432_vm9 = vmand %vm6466_vm2, %vm6440_vm14  ;;  %v2576_v61 = vld [vmem:[%s7029_s6 + $0x90] sm:$0xff]  ;;  %v2577_v59 = vld [vmem:[%s7029_s6 + $0x98] sm:$0xff]  ;;  %4257 = vmatprep.subr.bf16.mxu1 %v4256_v6 }
 0x4ee   : > { %v2340_v5 = vsel %vm2334_vm10, %v2333_v1, 0.0  ;;  %v2341_v12 = vsel %vm2335_vm4, %v2332_v38, 0.0  ;;  %v4258_v1 = vpack.c.bf16 %v2559_v50, %v2558_v18  ;;  %vm7207_vm10 = vmmov %vm7201_vm7  ;;  %vm2681_vm4 = vcmask 523264  }
 0x4ef   : > { %2342 = vst [vmem:[#allocation2 + $0x40] sm:$0xf] %v2340_v5  ;;  %2343 = vst [vmem:[#allocation2 + $0x48] sm:$0xf] %v2341_v12  ;;  %v2367_v27 = vpop.permute.xlu1 %2366  ;;  %v4260_v5 = vpack.c.bf16 %v2577_v59, %v2576_v61  ;;  %v2560_v12 = vld [vmem:[%s7029_s6 + $0x10] sm:$0xff] }
 0x4f0   : > { %v2369_v20 = vpop.permute.xlu0 %2368  ;;  %4259 = vmatpush3.bf16.msra.mxu1 %v4258_v1  ;;  %v4493_v1 = vmov 0.0|0.0  }
 0x4f1   : > { %v2370_v25 = vsel %vm7185_vm15, %v2367_v27, %v2369_v20  ;;  %v2371_v24 = vsel %vm7201_vm7, %v2369_v20, %v2367_v27  ;;  %v2561_v27 = vld [vmem:[%s7029_s6 + $0x18] sm:$0xff]  ;;  %v2578_v20 = vld [vmem:[%s7029_s6 + $0xa0] sm:$0xff]  ;;  %4261 = vmatprep.subr.bf16.mxu1 %v4260_v5  ;;  %vm2666_vm15 = vcmask 1048064  }
 0x4f2   : > { %v2376_v7 = vsel %vm6436_vm3, %v2370_v25, 0.0  ;;  %v2377_v0 = vsel %vm6440_vm14, %v2371_v24, 0.0  ;;  %v2442_v39 = vld [vmem:[#allocation2 + $0x8] sm:$0xff]  ;;  %v2441_v46 = vld [vmem:[#allocation2] sm:$0xff]  ;;  %vm2458_vm3 = vcmask 293888   ;;  %vm7206_vm14 = vmmov %vm7201_vm7  ;;  %vm4501_vm7 = vmmov 0  }
 0x4f3   : > { %v2380_v4 = vrot.slane %v2376_v7, 4  ;;  %v2381_v37 = vrot.slane %v2377_v0, 4  ;;  %v2404_v44 = vpop.permute.xlu1 %2403  ;;  %v2579_v25 = vld [vmem:[%s7029_s6 + $0xa8] sm:$0xff]  ;;  %v4262_v7 = vpack.c.bf16 %v2561_v27, %v2560_v12  ;;  %v2746_v27 = vld [vmem:[%s7031_s8] sm:$0xff] }
 0x4f4   : > { %v2406_v19 = vpop.permute.xlu0 %2405  ;;  %v4264_v0 = vpack.c.bf16 %v2579_v25, %v2578_v20  ;;  %v2661_v20 = vshra.s32 %v4703_v13, 3  ;;  %v2660_v25 = vand.u32 7, %v4703_v13 }
 0x4f5   : > { %2384 = vst [vmem:[#allocation2 + $0x80] sm:$0xf0] %v2380_v4  ;;  %2385 = vst [vmem:[#allocation2 + $0x88] sm:$0xf0] %v2381_v37  ;;  %v2408_v41 = vsel %vm2407_vm8, %v2404_v44, %v2406_v19  ;;  %v2409_v29 = vsel %vm2407_vm8, %v2406_v19, %v2404_v44  ;;  %v2562_v4 = vld [vmem:[%s7029_s6 + $0x20] sm:$0xff]  ;;  %v2563_v37 = vld [vmem:[%s7029_s6 + $0x28] sm:$0xff]  ;;  %4263 = vmatpush3.bf16.msra.mxu1 %v4262_v7 }
 0x4f6   : > { %v2414_v51 = vsel %vm6462_vm13, %v2408_v41, 0.0  ;;  %v2415_v3 = vsel %vm6466_vm2, %v2409_v29, 0.0  ;;  %v2444_v40 = vld [vmem:[#allocation2 + $0x48] sm:$0xff]  ;;  %v2443_v52 = vld [vmem:[#allocation2 + $0x40] sm:$0xff]  ;;  %v2580_v44 = vld [vmem:[%s7029_s6 + $0xb0] sm:$0xff]  ;;  %v4266_v54 = vpack.c.bf16 %v2563_v37, %v2562_v4  ;;  %4265 = vmatprep.subr.bf16.mxu1 %v4264_v0  ;;  %vm6645_vm13 = vcmp.ge.s32.totalorder %v2660_v25, 1 }
 0x4f7   : > { %v2418_v33 = vrot.slane %v2414_v51, 4  ;;  %v2419_v8 = vrot.slane %v2415_v3, 4  ;;  %v2387_v28 = vpop.permute.xlu1 %2386  ;;  %v4248_v60 = vpack.c.bf16 %v2444_v40, %v2442_v39  ;;  %v4250_v48 = vpack.c.bf16 %v2443_v52, %v2441_v46  ;;  %v2564_v41 = vld [vmem:[%s7029_s6 + $0x30] sm:$0xff]  ;;  %v2565_v29 = vld [vmem:[%s7029_s6 + $0x38] sm:$0xff]  ;;  %v2582_v39 = vld [vmem:[%s7029_s6 + $0xc0] sm:$0xff] }
 0x4f8   : > { %v2389_v47 = vpop.permute.xlu0 %2388  ;;  %v4268_v19 = vpack.c.bf16 %v2581_v45, %v2580_v44  ;;  %v2583_v51 = vld [vmem:[%s7029_s6 + $0xc8] sm:$0xff]  ;;  %v4270_v3 = vpack.c.bf16 %v2565_v29, %v2564_v41  ;;  %v2566_v46 = vld [vmem:[%s7029_s6 + $0x40] sm:$0xff] }
 0x4f9   : > { %2422 = vst [vmem:[#allocation2 + $0xc0] sm:$0xf0] %v2418_v33  ;;  %2423 = vst [vmem:[#allocation2 + $0xc8] sm:$0xf0] %v2419_v8  ;;  %v2391_v23 = vsel %vm2390_vm5, %v2387_v28, %v2389_v47  ;;  %v2392_v62 = vsel %vm2390_vm5, %v2389_v47, %v2387_v28  ;;  %4249 = vmatprep.subr.bf16.mxu0 %v4248_v60  ;;  %4267 = vmatpush3.bf16.msra.mxu1 %v4266_v54  ;;  %v2567_v52 = vld [vmem:[%s7029_s6 + $0x48] sm:$0xff]  ;;  %v2584_v33 = vld [vmem:[%s7029_s6 + $0xd0] sm:$0xff] }
 0x4fa   : > { %v2399_v42 = vsel %vm2393_vm12, %v2391_v23, 0.0  ;;  %v2400_v63 = vsel %vm2394_vm6, %v2392_v62, 0.0  ;;  %4251 = vmatpush1.bf16.msra.mxu0 %v4250_v48  ;;  %4269 = vmatprep.subr.bf16.mxu1 %v4268_v19  ;;  %v4272_v40 = vpack.c.bf16 %v2583_v51, %v2582_v39  ;;  %v2585_v8 = vld [vmem:[%s7029_s6 + $0xd8] sm:$0xff]  ;;  %v4274_v28 = vpack.c.bf16 %v2567_v52, %v2566_v46  ;;  %v2568_v48 = vld [vmem:[%s7029_s6 + $0x50] sm:$0xff]  ;;  %v2586_v23 = vld [vmem:[%s7029_s6 + $0xe0] sm:$0xff] }
 0x4fb   : > { %2401 = vst [vmem:[#allocation2 + $0xc0] sm:$0xf] %v2399_v42  ;;  %2402 = vst [vmem:[#allocation2 + $0xc8] sm:$0xf] %v2400_v63  ;;  %v2425_v2 = vpop.permute.xlu1 %2424  ;;  %v4276_v60 = vpack.c.bf16 %v2585_v8, %v2584_v33  ;;  %v2569_v47 = vld [vmem:[%s7029_s6 + $0x58] sm:$0xff]  ;;  %v2587_v62 = vld [vmem:[%s7029_s6 + $0xe8] sm:$0xff] }
 0x4fc   : > { %v2427_v49 = vpop.permute.xlu0 %2426  ;;  %v2446_v35 = vld [vmem:[#allocation2 + $0x88] sm:$0xff]  ;;  %v2445_v10 = vld [vmem:[#allocation2 + $0x80] sm:$0xff]  ;;  %v4278_v42 = vpack.c.bf16 %v2569_v47, %v2568_v48  ;;  %v4280_v63 = vpack.c.bf16 %v2587_v62, %v2586_v23  ;;  %vm6653_vm12 = vcmp.le.s32.totalorder %v2660_v25, 6  ;;  %vm6665_vm6 = vcmp.le.s32.totalorder %v2661_v20, 6 }
 0x4fd   : > { %v2429_v43 = vsel %vm2428_vm11, %v2425_v2, %v2427_v49  ;;  %v2430_v16 = vsel %vm2428_vm11, %v2427_v49, %v2425_v2  ;;  %4271 = vmatpush3.bf16.msra.mxu1 %v4270_v3  ;;  %v2570_v2 = vld [vmem:[%s7029_s6 + $0x60] sm:$0xff]  ;;  %v2571_v49 = vld [vmem:[%s7029_s6 + $0x68] sm:$0xff]  ;;  %vm2713_vm11 = vmand %vm6665_vm6, %vm6645_vm13 }
 0x4fe   : > { %v2437_v34 = vsel %vm2431_vm0, %v2429_v43, 0.0  ;;  %v2438_v17 = vsel %vm2432_vm9, %v2430_v16, 0.0  ;;  %4273 = vmatprep.subr.bf16.mxu1 %v4272_v40  ;;  %v4282_v43 = vpack.c.bf16 %v2571_v49, %v2570_v2  ;;  %v2588_v16 = vld [vmem:[%s7029_s6 + $0xf0] sm:$0xff]  ;;  %vm2728_vm0 = vmand %vm6665_vm6, %vm6653_vm12  ;;  %vm2752_vm9 = vcmask 588800   ;;  %v3015_v54 = vld [vmem:[%s7033_s10] sm:$0xff] }
 0x4ff   : > { %2439 = vst [vmem:[#allocation2 + $0x100] sm:$0xf] %v2437_v34  ;;  %2440 = vst [vmem:[#allocation2 + $0x108] sm:$0xf] %v2438_v17  ;;  %v2589_v34 = vld [vmem:[%s7029_s6 + $0xf8] sm:$0xff] }
 0x500   : > { %v4284_v17 = vpack.c.bf16 %v2589_v34, %v2588_v16 }
 0x501   : > { %4275 = vmatpush3.bf16.msra.mxu1 %v4274_v28 }
 0x502   : > { %v2448_v31 = vld [vmem:[#allocation2 + $0xc8] sm:$0xff]  ;;  %v2447_v55 = vld [vmem:[#allocation2 + $0xc0] sm:$0xff]  ;;  %4277 = vmatprep.subr.bf16.mxu1 %v4276_v60 }
 0x503   : > { %v4252_v57 = vpack.c.bf16 %v2448_v31, %v2446_v35  ;;  %v4254_v14 = vpack.c.bf16 %v2447_v55, %v2445_v10  ;;  %v2572_v35 = vld [vmem:[%s7029_s6 + $0x70] sm:$0xff]  ;;  %v2573_v31 = vld [vmem:[%s7029_s6 + $0x78] sm:$0xff] }
 0x504   : > { %v4286_v10 = vpack.c.bf16 %v2573_v31, %v2572_v35 }
 0x505   : > { %4253 = vmatprep.subr.bf16.mxu0 %v4252_v57  ;;  %4279 = vmatpush3.bf16.msra.mxu1 %v4278_v42 }
 0x506   : > { %4255 = vmatpush1.bf16.msra.mxu0 %v4254_v14  ;;  %v2450_v26 = vld [vmem:[#allocation2 + $0x108] sm:$0xf]  ;;  %v2449_v9 = vld [vmem:[#allocation2 + $0x100] sm:$0xf]  ;;  %4281 = vmatprep.subr.bf16.mxu1 %v4280_v63 }
 0x507   : > { %3769 = vmatprep.subr.msk.mxu0 %vm2462_vm1, %v2450_v26 }
 0x509   : > { %4283 = vmatpush3.bf16.msra.mxu1 %v4282_v43 }
 0x50a   : > { %3770 = vmatpush1.msk.msra.mxu0 %vm2462_vm1, %v2449_v9  ;;  %4285 = vmatprep.subr.bf16.mxu1 %v4284_v17  ;;  %v2745_v17 = vld [vmem:[%s7030_s7] sm:$0xff] }
 0x50b   : > { %3771 = vmatmul.mubr.msk.f32.vlgmr.msra.gmra.mrb[6].mxu0 %vm2458_vm3, %v2451_v22  ;;  %vm2951_vm3 = vcmask 130048  }
 0x50c   : > { %v2456_v56 = vpop.permute.xlu1 %2455 }
 0x50d   : > { %4287 = vmatpush3.bf16.msra.mxu1 %v4286_v10 }
 0x50e   : > { %4288 = vmatprep.subr.bf16.mxu1 %v4493_v1 }
 0x5de   : > { %v2535_v32 = vpop.f32.mrb[6].mxu0 }
 0x5df   : > { %v6506_v58 = vadd.f32 %v2535_v32, %v2456_v56  ;;  %v2537_v30 = vpop.f32.mrb[7].mxu0 }
 0x5e0   : > { %v6508_v15 = vadd.f32 %v2537_v30, %v2456_v56 }
 0x5e1   : > { %v2540_v53 = vmax.f32 %v6506_v58, 0.0 }
 0x5e2   : > { %v2541_v38 = vmax.f32 %v6508_v15, 0.0 }
 0x5e4   : > { %v4449_v24 = vpack.i.bf16 %v2541_v38, %v2540_v53 }
 0x5e6   : > { %4450 = vrot.lane.b32.xlu0 %v4449_v24, %s4489_s24  ;;  %s4494_s24 = smov 72  }
 0x658   : > { %v4451_v55 = vpop.permute.xlu0 %4450 }
 0x659   : > { %v4453_v57 = vunpack.i.h.bf16 %v4451_v55  ;;  %v4452_v14 = vunpack.i.l.bf16 %v4451_v55 }
 0x65b   : > { %v2546_v26 = vsel %vm2407_vm8, %v4452_v14, %v4453_v57  ;;  %v2547_v22 = vsel %vm2407_vm8, %v4453_v57, %v4452_v14  ;;  %vm6641_vm8 = vcmp.ge.s32.totalorder %v2661_v20, 1 }
 0x65c   : > { %v2548_v9 = vmax.f32 %v2540_v53, %v2546_v26  ;;  %v2549_v56 = vmax.f32 %v2541_v38, %v2547_v22  ;;  %vm2673_vm2 = vmand %vm6641_vm8, %vm6645_vm13 }
 0x65d   : > { %vm2690_vm5 = vmand %vm6641_vm8, %vm6653_vm12 }
 0x65e   : > { %v4454_v32 = vpack.i.bf16 %v2549_v56, %v2548_v9 }
 0x660   : > { %4455 = vrot.lane.b32.xlu1 %v4454_v32, %s4478_s2 }
 0x6d2   : > { %v4456_v30 = vpop.permute.xlu1 %4455 }
 0x6d3   : > { %v4458_v36 = vunpack.i.h.bf16 %v4456_v30  ;;  %v4457_v21 = vunpack.i.l.bf16 %v4456_v30 }
 0x6d5   : > { %v2554_v18 = vsel %vm7206_vm14, %v4457_v21, %v4458_v36  ;;  %v2555_v6 = vsel %vm7207_vm10, %v4458_v36, %v4457_v21  ;;  %v2850_v36 = vld [vmem:[%s7032_s9 + $0x8] sm:$0xff]  ;;  %v2851_v21 = vld [vmem:[%s7032_s9 + $0x10] sm:$0xff]  ;;  %vm2936_vm14 = vcmask 1047680  }
 0x6d6   : > { %v2556_v50 = vmax.f32 %v2548_v9, %v2554_v18  ;;  %v2557_v61 = vmax.f32 %v2549_v56, %v2555_v6  ;;  %v2852_v6 = vld [vmem:[%s7032_s9 + $0x18] sm:$0xff] }
 0x6d8   : > { %2654 = vmatprep.mubr.f32.mxu1 %v2557_v61  ;;  %v2853_v61 = vld [vmem:[%s7032_s9 + $0x20] sm:$0xff] }
 0x6d9   : > { %2655 = vmatmul.mubr.f32.vlgmr.msra.gmra.mrb[6].mxu1 %v2556_v50  ;;  %v4304_v50 = vpack.c.bf16 %v2852_v6, %v2851_v21 }
 0x6da   : > { %3887 = vmatprep.mubr.msk.f32.mxu1 %vm4501_vm7, %v4483_v11 }
 0x7ac   : > { %v3823_v58 = vpop.f32.mrb[6].mxu1 }
 0x7ad   : > { %v3824_v53 = vpop.f32.mrb[7].mxu1 }
 0x7ae   : > { %v3825_v15 = vadd.f32 %v3824_v53, %v3823_v58  ;;  %v2854_v58 = vld [vmem:[%s7032_s9 + $0x28] sm:$0xff] }
 0x7af   : > { %v4307_v53 = vpack.c.bf16 %v2854_v58, %v2853_v61 }
 0x7b0   : > { %2705 = vst.msk [vmem:[#allocation2 + $0x100] sm:$0xff] %vm2681_vm4, %v3825_v15  ;;  %2667 = vrot.lane.b32.xlu0 %v3825_v15, %s4492_s22 }
 0x7b7   : > { %v2740_v63 = vld [vmem:[#allocation2 + $0x100] sm:$0xff] }
 0x822   : > { %v2668_v59 = vpop.permute.xlu0 %2667 }
 0x823   : > { %v2669_v38 = vsel %vm2666_vm15, %v2668_v59, %v3825_v15  ;;  %v2856_v59 = vld [vmem:[%s7032_s9 + $0x38] sm:$0xff] }
 0x824   : > { %2670 = vrot.lane.b32.xlu1 %v2669_v38, %s4492_s22 }
 0x896   : > { %v2671_v5 = vpop.permute.xlu1 %2670 }
 0x897   : > { %v2672_v12 = vsel %vm2666_vm15, %v2671_v5, %v3825_v15  ;;  %v2855_v15 = vld [vmem:[%s7032_s9 + $0x30] sm:$0xff] }
 0x898   : > { %2685 = vrot.lane.b32.xlu1 %v2672_v12, %s4494_s24  ;;  %2677 = vrot.lane.b32.xlu0 %v2672_v12, %s4495_s21  ;;  %s4505_s24 = smov 125   ;;  %s4506_s21 = smov 123  }
 0x89c   : > { %2700 = vrot.lane.b32.xlu1 %v2672_v12, %s4496_s23  ;;  %2693 = vrot.lane.b32.xlu0 %v2672_v12, %s4497_s30  ;;  %s4507_s23 = smov 124  }
 0x8a0   : > { %2716 = vrot.lane.b32.xlu1 %v2672_v12, %s4498_s0  ;;  %2708 = vrot.lane.b32.xlu0 %v2672_v12, %s4478_s2 }
 0x8a4   : > { %2731 = vrot.lane.b32.xlu1 %v2672_v12, %s4499_s19  ;;  %2723 = vrot.lane.b32.xlu0 %v2672_v12, %s4500_s1  ;;  %v4310_v12 = vpack.c.bf16 %v2856_v59, %v2855_v15  ;;  %s4509_s19 = smov 126  }
 0x8a8   : > { %2749 = vperm.xlu0 %4412, %v2746_v27  }
 0x90a   : > { %v2686_v4 = vpop.permute.xlu1 %2685  ;;  %v2678_v37 = vpop.permute.xlu0 %2677 }
 0x90b   : > { %v2688_v44 = vsel %vm6641_vm8, %v2686_v4, 0.0  ;;  %v2680_v45 = vsel %vm2673_vm2, %v2678_v37, 0.0 }
 0x90c   : > { %2689 = vst.msk [vmem:[#allocation2 + $0x40] sm:$0xff] %vm2681_vm4, %v2688_v44  ;;  %2682 = vst.msk [vmem:[#allocation2] sm:$0xff] %vm2681_vm4, %v2680_v45 }
 0x90e   : > { %v2701_v19 = vpop.permute.xlu1 %2700  ;;  %v2694_v41 = vpop.permute.xlu0 %2693 }
 0x90f   : > { %v2703_v29 = vsel %vm6645_vm13, %v2701_v19, 0.0  ;;  %v2696_v39 = vsel %vm2690_vm5, %v2694_v41, 0.0  ;;  %v3018_v19 = vld [vmem:[%s7034_s11 + $0x8] sm:$0xff]  ;;  %v3017_v41 = vld [vmem:[%s7034_s11] sm:$0xff]  ;;  %vm3271_vm5 = vcmask 31744  }
 0x910   : > { %2704 = vst.msk [vmem:[#allocation2 + $0xc0] sm:$0xff] %vm2681_vm4, %v2703_v29  ;;  %2697 = vst.msk [vmem:[#allocation2 + $0x80] sm:$0xff] %vm2681_vm4, %v2696_v39  ;;  %v2931_v29 = vshra.s32 %v4703_v13, 2  ;;  %v2930_v39 = vand.u32 3, %v4703_v13 }
 0x912   : > { %v2717_v51 = vpop.permute.xlu1 %2716  ;;  %v2709_v3 = vpop.permute.xlu0 %2708  ;;  %vm6759_vm10 = vcmp.ge.s32.totalorder %v2931_v29, 1  ;;  %vm6783_vm13 = vcmp.le.s32.totalorder %v2931_v29, 2 }
 0x913   : > { %v2719_v40 = vsel %vm2713_vm11, %v2717_v51, 0.0  ;;  %v2711_v46 = vsel %vm6653_vm12, %v2709_v3, 0.0  ;;  %v2736_v52 = vld [vmem:[#allocation2] sm:$0xff] }
 0x914   : > { %v2737_v33 = vld [vmem:[#allocation2 + $0x40] sm:$0xff]  ;;  %2720 = vst.msk [vmem:[#allocation2 + $0x180] sm:$0xff] %vm2681_vm4, %v2719_v40  ;;  %2712 = vst.msk [vmem:[#allocation2 + $0x140] sm:$0xff] %vm2681_vm4, %v2711_v46 }
 0x915   : > { %v4289_v8 = vpack.c.bf16 %v2737_v33, %v2736_v52 }
 0x916   : > { %v2732_v28 = vpop.permute.xlu1 %2731  ;;  %v2724_v60 = vpop.permute.xlu0 %2723 }
 0x917   : > { %4290 = vmatpush3.bf16.msra.mxu1 %v4289_v8  ;;  %v2734_v48 = vsel %vm2728_vm0, %v2732_v28, 0.0  ;;  %v2726_v47 = vsel %vm6665_vm6, %v2724_v60, 0.0  ;;  %v2738_v23 = vld [vmem:[#allocation2 + $0x80] sm:$0xff]  ;;  %vm3245_vm6 = vcmask 1047584  }
 0x918   : > { %4291 = vmatprep.subr.bf16.mxu1 %v4493_v1  ;;  %v2739_v62 = vld [vmem:[#allocation2 + $0xc0] sm:$0xff]  ;;  %2735 = vst.msk [vmem:[#allocation2 + $0x200] sm:$0xff] %vm2681_vm4, %v2734_v48  ;;  %2727 = vst.msk [vmem:[#allocation2 + $0x1c0] sm:$0xff] %vm2681_vm4, %v2726_v47 }
 0x919   : > { %v4292_v42 = vpack.c.bf16 %v2739_v62, %v2738_v23 }
 0x91b   : > { %4293 = vmatpush3.bf16.msra.mxu1 %v4292_v42  ;;  %v2741_v2 = vld [vmem:[#allocation2 + $0x140] sm:$0xff] }
 0x91c   : > { %4294 = vmatprep.subr.bf16.mxu1 %v4493_v1  ;;  %v4295_v49 = vpack.c.bf16 %v2741_v2, %v2740_v63  ;;  %v2742_v43 = vld [vmem:[#allocation2 + $0x180] sm:$0xff] }
 0x91f   : > { %4296 = vmatpush3.bf16.msra.mxu1 %v4295_v49  ;;  %v2743_v16 = vld [vmem:[#allocation2 + $0x1c0] sm:$0xff] }
 0x920   : > { %4297 = vmatprep.subr.bf16.mxu1 %v4493_v1  ;;  %v4298_v34 = vpack.c.bf16 %v2743_v16, %v2742_v43  ;;  %v2744_v35 = vld [vmem:[#allocation2 + $0x200] sm:$0xff] }
 0x923   : > { %4299 = vmatpush3.bf16.msra.mxu1 %v4298_v34 }
 0x924   : > { %3885 = vmatprep.subr.mxu1 %v4483_v11 }
 0x927   : > { %3886 = vmatpush3.msra.mxu1 %v2744_v35  ;;  %v2750_v31 = vpop.permute.xlu0 %2749 }
 0x928   : > { %3888 = vmatmul.mubr.msk.f32.vlgmr.msra.gmra.mrb[8].mxu1 %vm2752_vm9, %v2745_v17  ;;  %4300 = vmatprep.subr.bf16.mxu1 %v4493_v1 }
 0x929   : > { %3906 = vmatprep.mubr.msk.f32.mxu1 %vm4501_vm7, %v4483_v11  ;;  %v2849_v11 = vld [vmem:[%s7032_s9] sm:$0xff]  ;;  %vm6771_vm7 = vcmp.le.s32.totalorder %v2930_v39, 2 }
 0x92a   : > { %v4301_v18 = vpack.c.bf16 %v2850_v36, %v2849_v11  ;;  %vm2960_vm8 = vmand %vm6759_vm10, %vm6771_vm7  ;;  %v3016_v11 = vld [vmem:[%s7033_s10 + $0x8] sm:$0xff] }
 0x92b   : > { %vm2998_vm12 = vmand %vm6783_vm13, %vm6771_vm7 }
 0x92c   : > { %4302 = vmatpush3.bf16.msra.mxu1 %v4301_v18 }
 0x92d   : > { %4303 = vmatprep.subr.bf16.mxu1 %v4493_v1 }
 0x930   : > { %4305 = vmatpush3.bf16.msra.mxu1 %v4304_v50 }
 0x931   : > { %4306 = vmatprep.subr.bf16.mxu1 %v4493_v1 }
 0x934   : > { %4308 = vmatpush3.bf16.msra.mxu1 %v4307_v53 }
 0x935   : > { %4309 = vmatprep.subr.bf16.mxu1 %v4493_v1 }
 0x938   : > { %4311 = vmatpush3.bf16.msra.mxu1 %v4310_v12 }
 0x9fb   : > { %v2822_v10 = vpop.f32.mrb[8].mxu1 }
 0x9fc   : > { %v2823_v55 = vadd.f32 %v2822_v10, %v2750_v31  ;;  %v3889_v57 = vpop.f32.mrb[9].mxu1 }
 0x9fe   : > { %v2826_v14 = vmax.f32 %v2823_v55, 0.0 }
 0xa00   : > { %2827 = vrot.lane.b32.xlu1 %v2826_v14, %s4492_s22 }
 0xa72   : > { %v2828_v26 = vpop.permute.xlu1 %2827 }
 0xa73   : > { %v2829_v22 = vsel %vm2666_vm15, %v2828_v26, %v2826_v14 }
 0xa74   : > { %2830 = vrot.lane.b32.xlu0 %v2829_v22, %s4492_s22 }
 0xae6   : > { %v2831_v9 = vpop.permute.xlu0 %2830 }
 0xae7   : > { %v2832_v56 = vsel %vm2666_vm15, %v2831_v9, %v2826_v14 }
 0xae8   : > { %2834 = vrot.lane.b32.xlu1 %v2832_v56, %s4500_s1  ;;  %s4504_s1 = smov 115  }
 0xb5a   : > { %v2835_v32 = vpop.permute.xlu1 %2834 }
 0xb5b   : > { %v2837_v30 = vmax.f32 %v2826_v14, %v2835_v32 }
 0xb5d   : > { %2838 = vrot.lane.b32.xlu0 %v2837_v30, %s4492_s22 }
 0xbcf   : > { %v2839_v38 = vpop.permute.xlu0 %2838 }
 0xbd0   : > { %v2840_v5 = vsel %vm2666_vm15, %v2839_v38, %v2837_v30 }
 0xbd1   : > { %2841 = vrot.lane.b32.xlu1 %v2840_v5, %s4492_s22  ;;  %s4502_s22 = smov 116  }
 0xc43   : > { %v2842_v27 = vpop.permute.xlu1 %2841 }
 0xc44   : > { %v2843_v20 = vsel %vm2666_vm15, %v2842_v27, %v2837_v30 }
 0xc45   : > { %2845 = vrot.lane.b32.xlu0 %v2843_v20, %s4478_s2 }
 0xcb7   : > { %v2846_v25 = vpop.permute.xlu0 %2845 }
 0xcb8   : > { %v2848_v24 = vmax.f32 %v2837_v30, %v2846_v25 }
 0xcba   : > { %3907 = vmatmul.mubr.msk.f32.vlgmr.msra.gmra.mrb[10].mxu1 %vm2681_vm4, %v2848_v24  ;;  %vm6763_vm4 = vcmp.ge.s32.totalorder %v2930_v39, 1 }
 0xcbb   : > { %3927 = vmatprep.mubr.msk.f32.mxu1 %vm2752_vm9, %v3015_v54  ;;  %vm2943_vm15 = vmand %vm6759_vm10, %vm6763_vm4 }
 0xcbc   : > { %vm2983_vm2 = vmand %vm6783_vm13, %vm6763_vm4 }
 0xd8d   : > { %v2926_v7 = vpop.f32.mrb[10].mxu1 }
 0xd8e   : > { %2975 = vst.msk [vmem:[#allocation2 + $0x100] sm:$0xff] %vm2951_vm3, %v2926_v7  ;;  %2937 = vrot.lane.b32.xlu1 %v2926_v7, %s4486_s25  ;;  %v3908_v0 = vpop.f32.mrb[11].mxu1 }
 0xd95   : > { %v3010_v14 = vld [vmem:[#allocation2 + $0x100] sm:$0xff] }
 0xe00   : > { %v2938_v4 = vpop.permute.xlu1 %2937 }
 0xe01   : > { %v2939_v37 = vsel %vm2936_vm14, %v2938_v4, %v2926_v7 }
 0xe02   : > { %2940 = vrot.lane.b32.xlu0 %v2939_v37, %s4486_s25 }
 0xe74   : > { %v2941_v44 = vpop.permute.xlu0 %2940 }
 0xe75   : > { %v2942_v45 = vsel %vm2936_vm14, %v2941_v44, %v2926_v7 }
 0xe76   : > { %2955 = vrot.lane.b32.xlu0 %v2942_v45, %s4502_s22  ;;  %2947 = vrot.lane.b32.xlu1 %v2942_v45, %s4503_s29 }
 0xe7a   : > { %2970 = vrot.lane.b32.xlu0 %v2942_v45, %s7216_s20  ;;  %2963 = vrot.lane.b32.xlu1 %v2942_v45, %s4504_s1  ;;  %s7233_s20 = sshll.u32 %s7235_s28, 5 }
 0xe7e   : > { %2986 = vrot.lane.b32.xlu0 %v2942_v45, %s4505_s24  ;;  %2978 = vrot.lane.b32.xlu1 %v2942_v45, %s4478_s2 }
 0xe82   : > { %3001 = vrot.lane.b32.xlu0 %v2942_v45, %s4506_s21  ;;  %2993 = vrot.lane.b32.xlu1 %v2942_v45, %s4507_s23 }
 0xe86   : > { %3026 = vperm.xlu0 %4412, %v3018_v19   ;;  %3021 = vperm.xlu1 %4448, %v3017_v41   ;;  %v3156_v19 = vld [vmem:[%s7035_s12] sm:$0xff]  ;;  %v3157_v41 = vld [vmem:[%s7035_s12 + $0x8] sm:$0xff] }
 0xe87   : > { %v4328_v29 = vpack.c.bf16 %v3157_v41, %v3156_v19 }
 0xee8   : > { %v2956_v46 = vpop.permute.xlu0 %2955  ;;  %v2948_v52 = vpop.permute.xlu1 %2947 }
 0xee9   : > { %v2958_v33 = vsel %vm6759_vm10, %v2956_v46, 0.0  ;;  %v2950_v8 = vsel %vm2943_vm15, %v2948_v52, 0.0 }
 0xeea   : > { %2959 = vst.msk [vmem:[#allocation2 + $0x40] sm:$0xff] %vm2951_vm3, %v2958_v33  ;;  %2952 = vst.msk [vmem:[#allocation2] sm:$0xff] %vm2951_vm3, %v2950_v8 }
 0xeec   : > { %v2971_v60 = vpop.permute.xlu0 %2970  ;;  %v2964_v48 = vpop.permute.xlu1 %2963 }
 0xeed   : > { %v2973_v47 = vsel %vm6763_vm4, %v2971_v60, 0.0  ;;  %v2966_v23 = vsel %vm2960_vm8, %v2964_v48, 0.0 }
 0xeee   : > { %2974 = vst.msk [vmem:[#allocation2 + $0xc0] sm:$0xff] %vm2951_vm3, %v2973_v47  ;;  %2967 = vst.msk [vmem:[#allocation2 + $0x80] sm:$0xff] %vm2951_vm3, %v2966_v23 }
 0xef0   : > { %v2987_v62 = vpop.permute.xlu0 %2986  ;;  %v2979_v42 = vpop.permute.xlu1 %2978 }
 0xef1   : > { %v2989_v63 = vsel %vm2983_vm2, %v2987_v62, 0.0  ;;  %v2981_v2 = vsel %vm6771_vm7, %v2979_v42, 0.0  ;;  %v3006_v49 = vld [vmem:[#allocation2] sm:$0xff] }
 0xef2   : > { %v3007_v43 = vld [vmem:[#allocation2 + $0x40] sm:$0xff]  ;;  %2990 = vst.msk [vmem:[#allocation2 + $0x180] sm:$0xff] %vm2951_vm3, %v2989_v63  ;;  %2982 = vst.msk [vmem:[#allocation2 + $0x140] sm:$0xff] %vm2951_vm3, %v2981_v2 }
 0xef3   : > { %v4312_v16 = vpack.c.bf16 %v3007_v43, %v3006_v49  ;;  %v3356_v43 = vld [vmem:[%s7037_s14 + $0x8] sm:$0xff] }
 0xef4   : > { %v3002_v34 = vpop.permute.xlu0 %3001  ;;  %v2994_v17 = vpop.permute.xlu1 %2993 }
 0xef5   : > { %4313 = vmatprep.subr.bf16.mxu1 %v4312_v16  ;;  %v3004_v35 = vsel %vm2998_vm12, %v3002_v34, 0.0  ;;  %v2996_v31 = vsel %vm6783_vm13, %v2994_v17, 0.0  ;;  %v3008_v10 = vld [vmem:[#allocation2 + $0x80] sm:$0xff]  ;;  %v3352_v34 = vld [vmem:[%s7036_s13 + $0x8] sm:$0xff]  ;;  %v3239_v17 = vand.u32 1, %v4703_v13 }
 0xef6   : > { %4315 = vmatpush3.bf16.msra.mxu1 %v4312_v16  ;;  %v3009_v55 = vld [vmem:[#allocation2 + $0xc0] sm:$0xff]  ;;  %3005 = vst.msk [vmem:[#allocation2 + $0x200] sm:$0xff] %vm2951_vm3, %v3004_v35  ;;  %2997 = vst.msk [vmem:[#allocation2 + $0x1c0] sm:$0xff] %vm2951_vm3, %v2996_v31  ;;  %v3240_v35 = vshra.s32 %v4703_v13, 1 }
 0xef7   : > { %v4316_v57 = vpack.c.bf16 %v3009_v55, %v3008_v10  ;;  %v3355_v16 = vld [vmem:[%s7037_s14] sm:$0xff]  ;;  %vm6872_vm0 = vcmp.ge.s32.totalorder %v3239_v17, 1  ;;  %vm6884_vm10 = vcmp.le.s32.totalorder %v3239_v17, 0 }
 0xef8   : > { %vm6868_vm11 = vcmp.ge.s32.totalorder %v3240_v35, 1 }
 0xef9   : > { %4317 = vmatprep.subr.bf16.mxu1 %v4316_v57  ;;  %v3011_v26 = vld [vmem:[#allocation2 + $0x140] sm:$0xff]  ;;  %vm3286_vm15 = vmand %vm6868_vm11, %vm6884_vm10 }
 0xefa   : > { %4319 = vmatpush3.bf16.msra.mxu1 %v4316_v57  ;;  %v4320_v22 = vpack.c.bf16 %v3011_v26, %v3010_v14  ;;  %v3012_v9 = vld [vmem:[#allocation2 + $0x180] sm:$0xff] }
 0xefc   : > { %4321 = vmatprep.subr.bf16.mxu1 %v4320_v22 }
 0xefd   : > { %v3013_v56 = vld [vmem:[#allocation2 + $0x1c0] sm:$0xff] }
 0xefe   : > { %4323 = vmatpush3.bf16.msra.mxu1 %v4320_v22  ;;  %v4324_v32 = vpack.c.bf16 %v3013_v56, %v3012_v9  ;;  %v3014_v30 = vld [vmem:[#allocation2 + $0x200] sm:$0xff] }
 0xf00   : > { %4325 = vmatprep.subr.bf16.mxu1 %v4324_v32 }
 0xf02   : > { %4327 = vmatpush3.bf16.msra.mxu1 %v4324_v32 }
 0xf03   : > { %3925 = vmatprep.subr.mxu1 %v3014_v30 }
 0xf05   : > { %v3027_v36 = vpop.permute.xlu0 %3026  ;;  %v3022_v18 = vpop.permute.xlu1 %3021 }
 0xf06   : > { %3926 = vmatpush3.msra.mxu1 %v3014_v30 }
 0xf07   : > { %3928 = vmatmul.mubr.msk.f32.vlgmr.msra.gmra.mrb[12].mxu1 %vm2752_vm9, %v3016_v11  ;;  %4329 = vmatprep.subr.bf16.mxu1 %v4328_v29  ;;  %vm6876_vm9 = vcmp.le.s32.totalorder %v3240_v35, 0 }
 0xf08   : > { %4331 = vmatpush3.bf16.msra.mxu1 %v4328_v29  ;;  %vm3313_vm4 = vmand %vm6876_vm9, %vm6872_vm0 }
 0xf09   : > { %4332 = vmatprep.subr.bf16.mxu1 %v4493_v1  ;;  %vm3326_vm7 = vmand %vm6876_vm9, %vm6884_vm10 }
 0xfda   : > { %v3929_v21 = vpop.f32.mrb[12].mxu1 }
 0xfdb   : > { %v3107_v6 = vadd.f32 %v3929_v21, %v3027_v36  ;;  %v3101_v50 = vpop.f32.mrb[13].mxu1 }
 0xfdc   : > { %v3102_v61 = vadd.f32 %v3101_v50, %v3022_v18 }
 0xfdd   : > { %v3111_v58 = vmax.f32 %v3107_v6, 0.0 }
 0xfde   : > { %v3110_v53 = vmax.f32 %v3102_v61, 0.0 }
 0xfdf   : > { %3115 = vrot.lane.b32.xlu0 %v3111_v58, %s4486_s25 }
 0xfe0   : > { %3112 = vrot.lane.b32.xlu1 %v3110_v53, %s4486_s25 }
0x1051   : > { %v3116_v15 = vpop.permute.xlu0 %3115 }
0x1052   : > { %v3117_v59 = vsel %vm2936_vm14, %v3116_v15, %v3111_v58  ;;  %v3113_v38 = vpop.permute.xlu1 %3112 }
0x1053   : > { %v3114_v5 = vsel %vm2936_vm14, %v3113_v38, %v3110_v53  ;;  %3120 = vrot.lane.b32.xlu0 %v3117_v59, %s4486_s25 }
0x1054   : > { %3118 = vrot.lane.b32.xlu1 %v3114_v5, %s4486_s25 }
0x10c5   : > { %v3121_v12 = vpop.permute.xlu0 %3120 }
0x10c6   : > { %v3123_v27 = vsel %vm2936_vm14, %v3121_v12, %v3111_v58  ;;  %v3119_v20 = vpop.permute.xlu1 %3118 }
0x10c7   : > { %v3122_v25 = vsel %vm2936_vm14, %v3119_v20, %v3110_v53  ;;  %3128 = vrot.lane.b32.xlu0 %v3123_v27, %s4507_s23 }
0x10c8   : > { %3126 = vrot.lane.b32.xlu1 %v3122_v25, %s4507_s23 }
0x1139   : > { %v3129_v24 = vpop.permute.xlu0 %3128 }
0x113a   : > { %v3133_v7 = vmax.f32 %v3111_v58, %v3129_v24  ;;  %v3127_v0 = vpop.permute.xlu1 %3126 }
0x113b   : > { %v3132_v4 = vmax.f32 %v3110_v53, %v3127_v0 }
0x113c   : > { %3137 = vrot.lane.b32.xlu0 %v3133_v7, %s4486_s25 }
0x113d   : > { %3134 = vrot.lane.b32.xlu1 %v3132_v4, %s4486_s25 }
0x11ae   : > { %v3138_v37 = vpop.permute.xlu0 %3137 }
0x11af   : > { %v3139_v44 = vsel %vm2936_vm14, %v3138_v37, %v3133_v7  ;;  %v3135_v45 = vpop.permute.xlu1 %3134 }
0x11b0   : > { %v3136_v54 = vsel %vm2936_vm14, %v3135_v45, %v3132_v4  ;;  %3142 = vrot.lane.b32.xlu0 %v3139_v44, %s4486_s25 }
0x11b1   : > { %3140 = vrot.lane.b32.xlu1 %v3136_v54, %s4486_s25  ;;  %s4508_s25 = smov 4  }
0x1222   : > { %v3143_v39 = vpop.permute.xlu0 %3142 }
0x1223   : > { %v3145_v51 = vsel %vm2936_vm14, %v3143_v39, %v3133_v7  ;;  %v3141_v3 = vpop.permute.xlu1 %3140 }
0x1224   : > { %v3144_v40 = vsel %vm2936_vm14, %v3141_v3, %v3132_v4  ;;  %3150 = vrot.lane.b32.xlu0 %v3145_v51, %s4478_s2  ;;  %vm3258_vm14 = vmand %vm6868_vm11, %vm6872_vm0 }
0x1225   : > { %3148 = vrot.lane.b32.xlu1 %v3144_v40, %s4478_s2 }
0x1296   : > { %v3151_v46 = vpop.permute.xlu0 %3150 }
0x1297   : > { %v3149_v52 = vpop.permute.xlu1 %3148  ;;  %v3155_v8 = vmax.f32 %v3133_v7, %v3151_v46 }
0x1298   : > { %v3154_v33 = vmax.f32 %v3132_v4, %v3149_v52 }
0x129a   : > { %3934 = vmatprep.mubr.msk.f32.mxu1 %vm2951_vm3, %v3154_v33 }
0x129b   : > { %3935 = vmatmul.mubr.msk.f32.vlgmr.msra.gmra.mrb[14].mxu1 %vm2951_vm3, %v3155_v8 }
0x129c   : > { %3778 = vmatprep.mubr.msk.f32.mxu1 %vm2951_vm3, %v3352_v34 }
0x136e   : > { %v3936_v28 = vpop.f32.mrb[14].mxu1 }
0x136f   : > { %3306 = vst.msk [vmem:[#allocation2 + $0x240] sm:$0xff] %vm3271_vm5, %v3936_v28  ;;  %3249 = vrot.lane.b32.xlu0 %v3936_v28, %s4508_s25  ;;  %v3230_v60 = vpop.f32.mrb[15].mxu1 }
0x1370   : > { %3305 = vst.msk [vmem:[#allocation2 + $0x200] sm:$0xff] %vm3271_vm5, %v3230_v60  ;;  %3246 = vrot.lane.b32.xlu1 %v3230_v60, %s4508_s25 }
0x1376   : > { %v3342_v29 = vld [vmem:[#allocation2 + $0x240] sm:$0xff] }
0x1377   : > { %v3341_v41 = vld [vmem:[#allocation2 + $0x200] sm:$0xff] }
0x1378   : > { %v4345_v39 = vpack.c.bf16 %v3342_v29, %v3341_v41 }
0x13e1   : > { %v3250_v48 = vpop.permute.xlu0 %3249 }
0x13e2   : > { %v3251_v47 = vsel %vm3245_vm6, %v3250_v48, %v3936_v28  ;;  %v3247_v23 = vpop.permute.xlu1 %3246 }
0x13e3   : > { %v3248_v62 = vsel %vm3245_vm6, %v3247_v23, %v3230_v60  ;;  %3254 = vrot.lane.b32.xlu0 %v3251_v47, %s4508_s25 }
0x13e4   : > { %3252 = vrot.lane.b32.xlu1 %v3248_v62, %s4508_s25  ;;  %v3351_v62 = vld [vmem:[%s7036_s13] sm:$0xff] }
0x1455   : > { %v3255_v42 = vpop.permute.xlu0 %3254 }
0x1456   : > { %v3257_v63 = vsel %vm3245_vm6, %v3255_v42, %v3936_v28  ;;  %v3253_v2 = vpop.permute.xlu1 %3252  ;;  %v3354_v42 = vld [vmem:[%s7036_s13 + $0x18] sm:$0xff] }
0x1457   : > { %v3256_v49 = vsel %vm3245_vm6, %v3253_v2, %v3230_v60  ;;  %3265 = vrot.lane.b32.xlu0 %v3257_v63, %s4478_s2 }
0x1458   : > { %3263 = vrot.lane.b32.xlu1 %v3256_v49, %s4478_s2 }
0x145b   : > { %3278 = vrot.lane.b32.xlu0 %v3257_v63, %s4509_s19 }
0x145c   : > { %3276 = vrot.lane.b32.xlu1 %v3256_v49, %s4509_s19 }
0x145f   : > { %3291 = vrot.lane.b32.xlu0 %v3257_v63, %s4505_s24  ;;  %v3353_v63 = vld [vmem:[%s7036_s13 + $0x10] sm:$0xff] }
0x1460   : > { %3289 = vrot.lane.b32.xlu1 %v3256_v49, %s4505_s24 }
0x1463   : > { %3364 = vperm.xlu0 %4412, %v3356_v43  }
0x1464   : > { %3359 = vperm.xlu1 %4448, %v3355_v16  }
0x14c9   : > { %v3266_v13 = vpop.permute.xlu0 %3265 }
0x14ca   : > { %v3270_v14 = vsel %vm3258_vm14, %v3266_v13, 0.0  ;;  %v3310_v26 = vsel %vm6884_vm10, %v3266_v13, 0.0  ;;  %v3317_v22 = vsel %vm3313_vm4, %v3266_v13, 0.0  ;;  %v3264_v9 = vpop.permute.xlu1 %3263 }
0x14cb   : > { %3273 = vst.msk [vmem:[#allocation2 + $0x40] sm:$0xff] %vm3271_vm5, %v3270_v14  ;;  %3312 = vst.msk [vmem:[#allocation2 + $0x2c0] sm:$0xff] %vm3271_vm5, %v3310_v26  ;;  %v3269_v56 = vsel %vm3258_vm14, %v3264_v9, 0.0  ;;  %v3309_v32 = vsel %vm6884_vm10, %v3264_v9, 0.0  ;;  %v3316_v30 = vsel %vm3313_vm4, %v3264_v9, 0.0 }
0x14cc   : > { %3319 = vst.msk [vmem:[#allocation2 + $0x340] sm:$0xff] %vm3271_vm5, %v3317_v22  ;;  %3272 = vst.msk [vmem:[#allocation2] sm:$0xff] %vm3271_vm5, %v3269_v56 }
0x14cd   : > { %3311 = vst.msk [vmem:[#allocation2 + $0x280] sm:$0xff] %vm3271_vm5, %v3309_v32  ;;  %3318 = vst.msk [vmem:[#allocation2 + $0x300] sm:$0xff] %vm3271_vm5, %v3316_v30  ;;  %v3279_v11 = vpop.permute.xlu0 %3278 }
0x14ce   : > { %v3283_v36 = vsel %vm6868_vm11, %v3279_v11, 0.0  ;;  %v3323_v21 = vsel %vm6876_vm9, %v3279_v11, 0.0  ;;  %v3277_v18 = vpop.permute.xlu1 %3276 }
0x14cf   : > { %3285 = vst.msk [vmem:[#allocation2 + $0xc0] sm:$0xff] %vm3271_vm5, %v3283_v36  ;;  %3325 = vst.msk [vmem:[#allocation2 + $0x3c0] sm:$0xff] %vm3271_vm5, %v3323_v21  ;;  %v3282_v6 = vsel %vm6868_vm11, %v3277_v18, 0.0  ;;  %v3322_v50 = vsel %vm6876_vm9, %v3277_v18, 0.0  ;;  %v3494_v21 = vld [vmem:[%s7038_s15] sm:$0xf] }
0x14d0   : > { %3284 = vst.msk [vmem:[#allocation2 + $0x80] sm:$0xff] %vm3271_vm5, %v3282_v6  ;;  %3324 = vst.msk [vmem:[#allocation2 + $0x380] sm:$0xff] %vm3271_vm5, %v3322_v50 }
0x14d1   : > { %v3292_v61 = vpop.permute.xlu0 %3291 }
0x14d2   : > { %v3296_v58 = vsel %vm3286_vm15, %v3292_v61, 0.0  ;;  %v3302_v53 = vsel %vm6872_vm0, %v3292_v61, 0.0  ;;  %v3330_v15 = vsel %vm3326_vm7, %v3292_v61, 0.0  ;;  %v3290_v59 = vpop.permute.xlu1 %3289  ;;  %v3334_v38 = vld [vmem:[#allocation2 + $0x40] sm:$0xff] }
0x14d3   : > { %3298 = vst.msk [vmem:[#allocation2 + $0x140] sm:$0xff] %vm3271_vm5, %v3296_v58  ;;  %3304 = vst.msk [vmem:[#allocation2 + $0x1c0] sm:$0xff] %vm3271_vm5, %v3302_v53  ;;  %v3295_v5 = vsel %vm3286_vm15, %v3290_v59, 0.0  ;;  %v3301_v12 = vsel %vm6872_vm0, %v3290_v59, 0.0  ;;  %v3329_v27 = vsel %vm3326_vm7, %v3290_v59, 0.0  ;;  %v3333_v20 = vld [vmem:[#allocation2] sm:$0xff] }
0x14d4   : > { %3332 = vst.msk [vmem:[#allocation2 + $0x440] sm:$0xff] %vm3271_vm5, %v3330_v15  ;;  %3297 = vst.msk [vmem:[#allocation2 + $0x100] sm:$0xff] %vm3271_vm5, %v3295_v5  ;;  %v4333_v25 = vpack.c.bf16 %v3334_v38, %v3333_v20  ;;  %v3343_v51 = vld [vmem:[#allocation2 + $0x280] sm:$0xff] }
0x14d5   : > { %3303 = vst.msk [vmem:[#allocation2 + $0x180] sm:$0xff] %vm3271_vm5, %v3301_v12  ;;  %3331 = vst.msk [vmem:[#allocation2 + $0x400] sm:$0xff] %vm3271_vm5, %v3329_v27  ;;  %v3344_v3 = vld [vmem:[#allocation2 + $0x2c0] sm:$0xff] }
0x14d6   : > { %4334 = vmatpush1.bf16.msra.mxu1 %v4333_v25  ;;  %v3336_v24 = vld [vmem:[#allocation2 + $0xc0] sm:$0xff]  ;;  %v4348_v40 = vpack.c.bf16 %v3344_v3, %v3343_v51  ;;  %v3581_v51 = vld [vmem:[%s7040_s17 + $0x10] sm:$0xff] }
0x14d7   : > { %4335 = vmatprep.subr.bf16.mxu1 %v4493_v1  ;;  %v3335_v7 = vld [vmem:[#allocation2 + $0x80] sm:$0xff] }
0x14d8   : > { %v4336_v0 = vpack.c.bf16 %v3336_v24, %v3335_v7  ;;  %v3345_v46 = vld [vmem:[#allocation2 + $0x300] sm:$0xff] }
0x14d9   : > { %v3346_v52 = vld [vmem:[#allocation2 + $0x340] sm:$0xff] }
0x14da   : > { %4337 = vmatpush1.bf16.msra.mxu1 %v4336_v0  ;;  %v3338_v4 = vld [vmem:[#allocation2 + $0x140] sm:$0xff]  ;;  %v4351_v33 = vpack.c.bf16 %v3346_v52, %v3345_v46  ;;  %v3584_v0 = vld [vmem:[%s7039_s16 + $0x8] sm:$0xff] }
0x14db   : > { %4338 = vmatprep.subr.bf16.mxu1 %v4493_v1  ;;  %v3337_v37 = vld [vmem:[#allocation2 + $0x100] sm:$0xff] }
0x14dc   : > { %v4339_v44 = vpack.c.bf16 %v3338_v4, %v3337_v37  ;;  %v3339_v45 = vld [vmem:[#allocation2 + $0x180] sm:$0xff]  ;;  %v3585_v4 = vld [vmem:[%s7039_s16 + $0x10] sm:$0xff]  ;;  %v3586_v37 = vld [vmem:[%s7039_s16 + $0x18] sm:$0xff] }
0x14dd   : > { %v3340_v54 = vld [vmem:[#allocation2 + $0x1c0] sm:$0xff] }
0x14de   : > { %4340 = vmatpush1.bf16.msra.mxu1 %v4339_v44  ;;  %v4342_v19 = vpack.c.bf16 %v3340_v54, %v3339_v45  ;;  %v3347_v8 = vld [vmem:[#allocation2 + $0x380] sm:$0xff]  ;;  %v3580_v44 = vld [vmem:[%s7040_s17 + $0x8] sm:$0xff] }
0x14df   : > { %4341 = vmatprep.subr.bf16.mxu1 %v4493_v1  ;;  %v3348_v28 = vld [vmem:[#allocation2 + $0x3c0] sm:$0xff] }
0x14e0   : > { %v4354_v60 = vpack.c.bf16 %v3348_v28, %v3347_v8  ;;  %v3349_v48 = vld [vmem:[#allocation2 + $0x400] sm:$0xff] }
0x14e1   : > { %v3350_v47 = vld [vmem:[#allocation2 + $0x440] sm:$0xff] }
0x14e2   : > { %4343 = vmatpush1.bf16.msra.mxu1 %v4342_v19  ;;  %v4357_v23 = vpack.c.bf16 %v3350_v47, %v3349_v48  ;;  %v3365_v34 = vpop.permute.xlu0 %3364  ;;  %v3583_v20 = vld [vmem:[%s7039_s16] sm:$0xff] }
0x14e3   : > { %4344 = vmatprep.subr.bf16.mxu1 %v4493_v1  ;;  %v3360_v2 = vpop.permute.xlu1 %3359  ;;  %v3579_v45 = vld [vmem:[%s7040_s17] sm:$0xff] }
0x14e6   : > { %4346 = vmatpush1.bf16.msra.mxu1 %v4345_v39  ;;  %v3582_v39 = vld [vmem:[%s7040_s17 + $0x18] sm:$0xff] }
0x14e7   : > { %4347 = vmatprep.subr.bf16.mxu1 %v4493_v1 }
0x14ea   : > { %4349 = vmatpush1.bf16.msra.mxu1 %v4348_v40 }
0x14eb   : > { %4350 = vmatprep.subr.bf16.mxu1 %v4493_v1 }
0x14ee   : > { %4352 = vmatpush1.bf16.msra.mxu1 %v4351_v33 }
0x14ef   : > { %4353 = vmatprep.subr.bf16.mxu1 %v4493_v1 }
0x14f2   : > { %4355 = vmatpush1.bf16.msra.mxu1 %v4354_v60 }
0x14f3   : > { %4356 = vmatprep.subr.bf16.mxu1 %v4493_v1 }
0x14f6   : > { %4358 = vmatpush1.bf16.msra.mxu1 %v4357_v23 }
0x14f7   : > { %3937 = vmatprep.subr.msk.mxu1 %vm2462_vm1, %v3494_v21 }
0x14f9   : > { %3438 = vmatmul.mubr.f32.vlgmr.msra.gmra.mrb[16].mxu1 %v3351_v62 }
0x14fa   : > { %3779 = vmatprep.mubr.msk.f32.mxu1 %vm2951_vm3, %v3354_v42  ;;  %3938 = vmatpush3.msk.msra.mxu1 %vm2462_vm1, %v3494_v21  ;;  %vm3688_vm1 = vcmask 7168  }
0x14fd   : > { %3443 = vmatmul.mubr.f32.gmra.mrb[18].mxu1 %v3353_v63 }
0x15cc   : > { %v3439_v1 = vpop.f32.mrb[16].mxu1 }
0x15cd   : > { %v3440_v49 = vadd.f32 %v3439_v1, %v3360_v2  ;;  %v3441_v43 = vpop.f32.mrb[17].mxu1 }
0x15cf   : > { %v3448_v16 = vmax.f32 %v3440_v49, 0.0 }
0x15d0   : > { %v3444_v17 = vpop.f32.mrb[18].mxu1 }
0x15d1   : > { %v3445_v35 = vadd.f32 %v3444_v17, %v3365_v34  ;;  %v3446_v31 = vpop.f32.mrb[19].mxu1  ;;  %3450 = vrot.lane.b32.xlu1 %v3448_v16, %s4508_s25 }
0x15d3   : > { %v3449_v10 = vmax.f32 %v3445_v35, 0.0 }
0x15d5   : > { %3453 = vrot.lane.b32.xlu0 %v3449_v10, %s4508_s25 }
0x1643   : > { %v3451_v55 = vpop.permute.xlu1 %3450 }
0x1644   : > { %v3452_v57 = vsel %vm3245_vm6, %v3451_v55, %v3448_v16 }
0x1645   : > { %3456 = vrot.lane.b32.xlu1 %v3452_v57, %s4508_s25 }
0x1647   : > { %v3454_v13 = vpop.permute.xlu0 %3453 }
0x1648   : > { %v3455_v14 = vsel %vm3245_vm6, %v3454_v13, %v3449_v10 }
0x1649   : > { %3458 = vrot.lane.b32.xlu0 %v3455_v14, %s4508_s25 }
0x16b7   : > { %v3457_v26 = vpop.permute.xlu1 %3456 }
0x16b8   : > { %v3460_v22 = vsel %vm3245_vm6, %v3457_v26, %v3448_v16 }
0x16b9   : > { %3464 = vrot.lane.b32.xlu1 %v3460_v22, %s4509_s19 }
0x16bb   : > { %v3459_v9 = vpop.permute.xlu0 %3458 }
0x16bc   : > { %v3461_v56 = vsel %vm3245_vm6, %v3459_v9, %v3449_v10 }
0x16bd   : > { %3466 = vrot.lane.b32.xlu0 %v3461_v56, %s4509_s19 }
0x172b   : > { %v3465_v32 = vpop.permute.xlu1 %3464 }
0x172c   : > { %v3470_v30 = vmax.f32 %v3448_v16, %v3465_v32 }
0x172e   : > { %3472 = vrot.lane.b32.xlu1 %v3470_v30, %s4508_s25 }
0x172f   : > { %v3467_v11 = vpop.permute.xlu0 %3466 }
0x1730   : > { %v3471_v36 = vmax.f32 %v3449_v10, %v3467_v11 }
0x1732   : > { %3475 = vrot.lane.b32.xlu0 %v3471_v36, %s4508_s25 }
0x17a0   : > { %v3473_v18 = vpop.permute.xlu1 %3472 }
0x17a1   : > { %v3474_v6 = vsel %vm3245_vm6, %v3473_v18, %v3470_v30 }
0x17a2   : > { %3478 = vrot.lane.b32.xlu1 %v3474_v6, %s4508_s25 }
0x17a4   : > { %v3476_v50 = vpop.permute.xlu0 %3475 }
0x17a5   : > { %v3477_v61 = vsel %vm3245_vm6, %v3476_v50, %v3471_v36 }
0x17a6   : > { %3480 = vrot.lane.b32.xlu0 %v3477_v61, %s4508_s25 }
0x1814   : > { %v3479_v58 = vpop.permute.xlu1 %3478 }
0x1815   : > { %v3482_v53 = vsel %vm3245_vm6, %v3479_v58, %v3470_v30 }
0x1816   : > { %3486 = vrot.lane.b32.xlu1 %v3482_v53, %s4478_s2 }
0x1818   : > { %v3481_v15 = vpop.permute.xlu0 %3480 }
0x1819   : > { %v3483_v59 = vsel %vm3245_vm6, %v3481_v15, %v3471_v36 }
0x181a   : > { %3488 = vrot.lane.b32.xlu0 %v3483_v59, %s4478_s2  ;;  %s575_s2 = scalar_lea.vmem %s7041_s18, %s7233_s20 }
0x1888   : > { %v3487_v38 = vpop.permute.xlu1 %3486 }
0x1889   : > { %v3492_v5 = vmax.f32 %v3470_v30, %v3487_v38 }
0x188b   : > { %3939 = vmatprep.mubr.msk.f32.mxu1 %vm3271_vm5, %v3492_v5 }
0x188c   : > { %v3489_v12 = vpop.permute.xlu0 %3488 }
0x188d   : > { %v3493_v27 = vmax.f32 %v3471_v36, %v3489_v12 }
0x188f   : > { %3940 = vmatmul.mubr.msk.f32.vlgmr.msra.gmra.mrb[20].mxu1 %vm3271_vm5, %v3493_v27 }
0x1890   : > { %3946 = vmatprep.mubr.msk.f32.mxu1 %vm2951_vm3, %v3583_v20 }
0x1962   : > { %v3941_v25 = vpop.f32.mrb[20].mxu1 }
0x1963   : > { %v3570_v24 = vpop.f32.mrb[21].mxu1 }
0x1964   : > { %v4359_v7 = vpack.c.bf16 %v3941_v25, %v3570_v24 }
0x1966   : > { %4360 = vmatprep.subr.bf16.mxu1 %v4359_v7 }
0x1967   : > { %4362 = vmatpush3.bf16.msra.mxu1 %v4359_v7 }
0x196a   : > { %3947 = vmatmul.mubr.msk.f32.vlgmr.msra.gmra.mrb[22].mxu1 %vm2951_vm3, %v3584_v0 }
0x196b   : > { %3949 = vmatprep.mubr.msk.f32.mxu1 %vm2951_vm3, %v3585_v4 }
0x196e   : > { %3950 = vmatmul.mubr.msk.f32.gmra.mrb[24].mxu1 %vm2951_vm3, %v3586_v37 }
0x1a3d   : > { %v3948_v54 = vpop.f32.mrb[22].mxu1 }
0x1a3e   : > { %v3685_v19 = vadd.f32 %v3948_v54, %v3580_v44  ;;  %v3665_v41 = vpop.f32.mrb[23].mxu1 }
0x1a3f   : > { %v3684_v29 = vadd.f32 %v3665_v41, %v3579_v45 }
0x1a40   : > { %3690 = vst.msk [vmem:[%s575_s2 + $0x8] sm:$0xff] %vm3688_vm1, %v3685_v19 }
0x1a41   : > { %3689 = vst.msk [vmem:[%s575_s2] sm:$0xff] %vm3688_vm1, %v3684_v29  ;;  %v3951_v3 = vpop.f32.mrb[24].mxu1 }
0x1a42   : > { %v3687_v40 = vadd.f32 %v3951_v3, %v3582_v39  ;;  %v3675_v46 = vpop.f32.mrb[25].mxu1 }
0x1a43   : > { %v3686_v52 = vadd.f32 %v3675_v46, %v3581_v51 }
0x1a44   : > { %3692 = vst.msk [vmem:[%s575_s2 + $0x18] sm:$0xff] %vm3688_vm1, %v3687_v40 }
0x1a45   : > { %3691 = vst.msk [vmem:[%s575_s2 + $0x10] sm:$0xff] %vm3688_vm1, %v3686_v52 }
0x1a46 PF: > { %s28_s27 = sadd.s32 1, %s4473_s27  }
0x1a47   : > { %p25_p4 = scmp.ge.s32.totalorder %s28_s27, 4  }
0x1a49   :  { %27 = sbr.rel (!%p25_p4) target bundleno = 4 (0x4), region = 122 }

</bundles_post_ra>
